<compile_context>
chip_gen: v5e
topology: v5e:2x2
jax: 0.10.0
libtpu: 0.0.40
codegen_flags: <defaults>
</compile_context>

<pallas_src>
import functools

import jax
import jax.numpy as jnp
from jax.experimental import pallas as pl
from jax.experimental.pallas import tpu as pltpu


def _tpu_tile_and_vmem():
    """Pick (query-tile, vmem_limit_bytes) per TPU generation."""
    try:
        kind = jax.devices()[0].device_kind.lower()
    except Exception:  # pragma: no cover
        kind = ""
    if "v5 lite" in kind or "v5e" in kind or "v5lite" in kind:
        return 128, 96 * 1024 * 1024          # v5e: 128x128 MXU, 128 MiB VMEM
    if "v7" in kind or "7x" in kind:
        return 256, 48 * 1024 * 1024           # v7x: 64 MiB VMEM -> leave headroom
    if "v6" in kind:
        return 256, 100 * 1024 * 1024          # v6e: 256x256 MXU, 128 MiB VMEM
    return 128, 48 * 1024 * 1024               # unknown: conservative


def _transformer_block_kernel(xq_ref, xkv_ref, bias_ref,
                              wq_ref, wk_ref, wv_ref,
                              wo_ref, bo_ref,
                              w1_ref, b1_ref, w2_ref, b2_ref,
                              gamma_ref, beta_ref,
                              out_ref,
                              k_scr, v_scr, ctx_scr, *, n_head):
    f32 = jnp.float32
    cdt = wq_ref.dtype                     # bf16 compute dtype for MXU operands

    qi = pl.program_id(1)

    # ---- K/V projections: computed ONCE per batch row (qi == 0), kept in ----
    # ---- persistent bf16 VMEM scratch for all query tiles of this row.   ----
    @pl.when(qi == 0)
    def _():
        xkv = xkv_ref[0]                   # (S, D) bf16
        k_scr[...] = jnp.dot(xkv, wk_ref[...],
                             preferred_element_type=f32).astype(cdt)
        v_scr[...] = jnp.dot(xkv, wv_ref[...],
                             preferred_element_type=f32).astype(cdt)

    xq_c = xq_ref[0]                       # (TQ, D) bf16 query / residual rows
    xq_f = xq_c.astype(f32)                # residual in f32
    TQ, D = xq_c.shape
    H = n_head
    d = D // H

    # Query projection; fold the 1/sqrt(size) softmax scale into q.
    q = jnp.dot(xq_c, wq_ref[...], preferred_element_type=f32)
    q = (q * jax.lax.rsqrt(jnp.float32(D))).astype(cdt)     # (TQ, D) bf16

    bias = bias_ref[0]                     # (1, S) f32 additive key-pad mask

    # ---- Per-head attention: static lane slices, no (TQ,H,d) relayouts,  ----
    # ---- score working set bounded to (TQ, S) per head.                  ----
    for h in range(H):
        lo, hi = h * d, (h + 1) * d
        qh = q[:, lo:hi]                   # (TQ, d) bf16
        kh = k_scr[:, lo:hi]               # (S, d)  bf16
        vh = v_scr[:, lo:hi]               # (S, d)  bf16

        s = jax.lax.dot_general(qh, kh, (((1,), (1,)), ((), ())),
                                preferred_element_type=f32)  # (TQ, S)
        s = s + bias                       # masked keys -> -1e20 (absorbs score)
        s = s - jnp.max(s, axis=-1, keepdims=True)
        p = jnp.exp(s)
        denom = jnp.sum(p, axis=-1, keepdims=True)
        attn = p * pl.reciprocal(denom, approx=True)

        ctx_scr[:, lo:hi] = jnp.dot(attn.astype(cdt), vh,
                                    preferred_element_type=f32)

    ctx = ctx_scr[...]                     # (TQ, D) f32

    attn_out = jnp.dot(ctx.astype(cdt), wo_ref[...],
                       preferred_element_type=f32) + bo_ref[0]

    gamma = gamma_ref[0]
    beta = beta_ref[0]

    def layernorm(y):
        mu = jnp.mean(y, axis=-1, keepdims=True)
        yc = y - mu
        var = jnp.mean(yc * yc, axis=-1, keepdims=True)
        return yc * jax.lax.rsqrt(var + jnp.float32(1e-5)) * gamma + beta

    # Residual + norm (same gamma/beta used for both norms, as in the module).
    x1 = layernorm(attn_out + xq_f)

    # Feed-forward: Linear -> ReLU -> Linear (bf16 MXU, f32 accumulate).
    h1 = jnp.dot(x1.astype(cdt), w1_ref[...], preferred_element_type=f32) + b1_ref[0]
    h1 = jnp.maximum(h1, 0.0)
    ff = jnp.dot(h1.astype(cdt), w2_ref[...], preferred_element_type=f32) + b2_ref[0]

    x2 = layernorm(x1 + ff)
    out_ref[0] = x2.astype(out_ref.dtype)


def transformer_block(x, bias, layer_params, *, n_head, tq, vmem_limit):
    """x: (B, S, D) bf16 (S already padded to a multiple of tq);
       bias: (B, 1, S) f32 additive key-padding mask (0 keep / -1e20 mask)."""
    B, S, D = x.shape
    (wq, wk, wv, wo, bo, w1, b1, w2, b2, gamma, beta) = layer_params
    n_q = S // tq

    def const_spec(arr):
        nd = arr.ndim
        # Grid-invariant blocks: single-buffer (no need for double-buffered DMA).
        return pl.BlockSpec(arr.shape, lambda b, qi, _nd=nd: (0,) * _nd,
                            pipeline_mode=pl.Buffered(1))

    kernel = functools.partial(_transformer_block_kernel, n_head=n_head)

    return pl.pallas_call(
        kernel,
        out_shape=jax.ShapeDtypeStruct((B, S, D), jnp.bfloat16),
        grid_spec=pltpu.PrefetchScalarGridSpec(
            num_scalar_prefetch=0,
            grid=(B, n_q),
            in_specs=[
                pl.BlockSpec((1, tq, D), lambda b, qi: (b, qi, 0)),  # query tile
                pl.BlockSpec((1, S, D), lambda b, qi: (b, 0, 0)),    # kv source (re-fetched only when b changes)
                pl.BlockSpec((1, 1, S), lambda b, qi: (b, 0, 0)),    # additive mask row
                const_spec(wq), const_spec(wk), const_spec(wv),
                const_spec(wo), const_spec(bo),
                const_spec(w1), const_spec(b1), const_spec(w2), const_spec(b2),
                const_spec(gamma), const_spec(beta),
            ],
            out_specs=pl.BlockSpec((1, tq, D), lambda b, qi: (b, qi, 0)),
            scratch_shapes=[
                pltpu.VMEM((S, D), jnp.bfloat16),   # persistent K (per batch row)
                pltpu.VMEM((S, D), jnp.bfloat16),   # persistent V (per batch row)
                pltpu.VMEM((tq, D), jnp.float32),   # per-head context accumulator
            ],
        ),
        compiler_params=pltpu.CompilerParams(
            # qi carries the K/V scratch -> "arbitrary"; batch is independent.
            dimension_semantics=("parallel", "arbitrary"),
            vmem_limit_bytes=vmem_limit,
        ),
    )(x, x, bias, wq, wk, wv, wo, bo, w1, b1, w2, b2, gamma, beta)


def init_encoder_params(key, vocab_size, pos_size, size, n_head, n_layer, exp=4):
    scale = 0.02
    keys = jax.random.split(key, 2 + n_layer)
    params = {
        "word_e": scale * jax.random.normal(keys[0], (vocab_size, size), jnp.float32),
        "pos_e":  scale * jax.random.normal(keys[1], (pos_size, size), jnp.float32),
        "layers": [],
    }

    def bf16_w(k, shape):
        return (scale * jax.random.normal(k, shape, jnp.float32)).astype(jnp.bfloat16)

    for li in range(n_layer):
        lk = jax.random.split(keys[2 + li], 8)
        wq = bf16_w(lk[0], (size, size))
        wk = bf16_w(lk[1], (size, size))
        wv = bf16_w(lk[2], (size, size))
        wo = bf16_w(lk[3], (size, size))
        bo = scale * jax.random.normal(lk[4], (1, size), jnp.float32)
        w1 = bf16_w(lk[5], (size, size * exp))
        b1 = scale * jax.random.normal(lk[6], (1, size * exp), jnp.float32)
        w2 = bf16_w(lk[7], (size * exp, size))
        b2 = jnp.zeros((1, size), jnp.float32)
        gamma = jnp.ones((1, size), jnp.float32)   # LayerNorm weight init
        beta = jnp.zeros((1, size), jnp.float32)   # LayerNorm bias init
        params["layers"].append((wq, wk, wv, wo, bo, w1, b1, w2, b2, gamma, beta))
    return params


@functools.partial(jax.jit, static_argnames=("n_head",))
def encoder_forward(tokens, mask, params, *, n_head):
    """tokens: (B, S) int32; mask: (B, 1, 1, S) int32 (1 keep / 0 mask)."""
    B, S = tokens.shape
    word_e = params["word_e"]
    pos_e = params["pos_e"]

    # Embedding lookups + positional add (glue; gather has no hot-path benefit here).
    pos = jnp.arange(S, dtype=jnp.int32)
    x = jnp.take(word_e, tokens, axis=0) + jnp.take(pos_e, pos, axis=0)[None, :, :]
    # dropout p=0 -> identity (module default); TODO(synk): dropout>0 not implemented.

    # Per-generation tile + VMEM budget; pad S to a multiple of the tile so
    # query tiling never silently turns off (padded keys are masked below).
    tq, vmem_limit = _tpu_tile_and_vmem()
    s_pad = ((S + 127) // 128) * 128
    if s_pad % tq != 0:
        tq = 128
    tq = min(tq, s_pad)

    if s_pad != S:
        x = jnp.pad(x, ((0, 0), (0, s_pad - S), (0, 0)))
    x = x.astype(jnp.bfloat16)                      # bf16 inter-layer activations

    # Tiny additive key-padding bias (B, 1, S_pad): 0 keep, -1e20 mask.
    keep = mask.reshape(B, S).astype(jnp.float32)
    if s_pad != S:
        keep = jnp.pad(keep, ((0, 0), (0, s_pad - S)))
    bias = ((1.0 - keep) * jnp.float32(-1e20)).reshape(B, 1, s_pad)

    for layer_params in params["layers"]:
        x = transformer_block(x, bias, layer_params, n_head=n_head,
                              tq=tq, vmem_limit=vmem_limit)

    return x[:, :S, :].astype(jnp.float32)


if __name__ == "__main__":
    # Small shapes consistent with the module.
    B, S = 2, 8
    vocab_size, pos_size = 50, 16
    size, n_head, n_layer, exp = 32, 4, 2, 4

    key = jax.random.PRNGKey(0)
    k_tok, k_param = jax.random.split(key)

    tokens = jax.random.randint(k_tok, (B, S), 0, vocab_size, dtype=jnp.int32)
    # padding-style mask: first sequence fully valid, second has last 3 positions masked
    lengths = jnp.array([S, S - 3], dtype=jnp.int32)
    mask = (jnp.arange(S)[None, :] < lengths[:, None]).astype(jnp.int32)  # (B, S)
    mask = mask[:, None, None, :]                                         # (B, 1, 1, S)

    params = init_encoder_params(k_param, vocab_size, pos_size, size, n_head,
                                 n_layer, exp)

    out = encoder_forward(tokens, mask, params, n_head=n_head)
    out = jax.block_until_ready(out)
    assert out.shape == (B, S, size) and out.dtype == jnp.float32
    assert bool(jnp.all(jnp.isfinite(out)))
    print("KERNEL_OK")
</pallas_src>

<mosaic_0001>
module attributes {stable_mosaic.version = 11 : i64} {
  func.func @_transformer_block_kernel(%arg0: i32, %arg1: i32, %arg2: memref<1x128x32xbf16, #tpu.memory_space<vmem>>, %arg3: memref<1x128x32xbf16, #tpu.memory_space<vmem>>, %arg4: memref<1x1x128xf32, #tpu.memory_space<vmem>>, %arg5: memref<32x32xbf16, #tpu.memory_space<vmem>>, %arg6: memref<32x32xbf16, #tpu.memory_space<vmem>>, %arg7: memref<32x32xbf16, #tpu.memory_space<vmem>>, %arg8: memref<32x32xbf16, #tpu.memory_space<vmem>>, %arg9: memref<1x32xf32, #tpu.memory_space<vmem>>, %arg10: memref<32x128xbf16, #tpu.memory_space<vmem>>, %arg11: memref<1x128xf32, #tpu.memory_space<vmem>>, %arg12: memref<128x32xbf16, #tpu.memory_space<vmem>>, %arg13: memref<1x32xf32, #tpu.memory_space<vmem>>, %arg14: memref<1x32xf32, #tpu.memory_space<vmem>>, %arg15: memref<1x32xf32, #tpu.memory_space<vmem>>, %arg16: memref<1x128x32xbf16, #tpu.memory_space<vmem>>, %arg17: memref<128x32xbf16, #tpu.memory_space<vmem>>, %arg18: memref<128x32xbf16, #tpu.memory_space<vmem>>, %arg19: memref<128x32xf32, #tpu.memory_space<vmem>>) attributes {dimension_semantics = [#tpu.dimension_semantics<parallel>, #tpu.dimension_semantics<arbitrary>], iteration_bounds = array<i64: 2, 1>, scalar_prefetch = 0 : i64, scratch_operands = 3 : i64, tpu.core_type = #tpu.core_type<tc>, window_params = [{transform_indices = @transform_0, window_bounds = array<i64: 1, 128, 32>}, {transform_indices = @transform_1, window_bounds = array<i64: 1, 128, 32>}, {transform_indices = @transform_2, window_bounds = array<i64: 1, 1, 128>}, {pipeline_mode = #tpu.pipeline_mode<synchronous>, transform_indices = @transform_3, window_bounds = array<i64: 32, 32>}, {pipeline_mode = #tpu.pipeline_mode<synchronous>, transform_indices = @transform_4, window_bounds = array<i64: 32, 32>}, {pipeline_mode = #tpu.pipeline_mode<synchronous>, transform_indices = @transform_5, window_bounds = array<i64: 32, 32>}, {pipeline_mode = #tpu.pipeline_mode<synchronous>, transform_indices = @transform_6, window_bounds = array<i64: 32, 32>}, {pipeline_mode = #tpu.pipeline_mode<synchronous>, transform_indices = @transform_7, window_bounds = array<i64: 1, 32>}, {pipeline_mode = #tpu.pipeline_mode<synchronous>, transform_indices = @transform_8, window_bounds = array<i64: 32, 128>}, {pipeline_mode = #tpu.pipeline_mode<synchronous>, transform_indices = @transform_9, window_bounds = array<i64: 1, 128>}, {pipeline_mode = #tpu.pipeline_mode<synchronous>, transform_indices = @transform_10, window_bounds = array<i64: 128, 32>}, {pipeline_mode = #tpu.pipeline_mode<synchronous>, transform_indices = @transform_11, window_bounds = array<i64: 1, 32>}, {pipeline_mode = #tpu.pipeline_mode<synchronous>, transform_indices = @transform_12, window_bounds = array<i64: 1, 32>}, {pipeline_mode = #tpu.pipeline_mode<synchronous>, transform_indices = @transform_13, window_bounds = array<i64: 1, 32>}, {transform_indices = @transform_14, window_bounds = array<i64: 1, 128, 32>}]} {
    %c0_i32 = arith.constant 0 : i32
    %0 = arith.cmpi eq, %arg1, %c0_i32 : i32
    %1 = arith.extui %0 : i1 to i32
    %c0_i32_0 = arith.constant 0 : i32
    %2 = arith.cmpi ne, %1, %c0_i32_0 : i32
    scf.if %2 {
      %c0_81 = arith.constant 0 : index
      %c0_82 = arith.constant 0 : index
      %c0_83 = arith.constant 0 : index
      %171 = vector.load %arg3[%c0_81, %c0_82, %c0_83] : memref<1x128x32xbf16, #tpu.memory_space<vmem>>, vector<1x128x32xbf16>
      %172 = vector.shape_cast %171 : vector<1x128x32xbf16> to vector<128x32xbf16>
      %c0_84 = arith.constant 0 : index
      %c0_85 = arith.constant 0 : index
      %173 = vector.load %arg6[%c0_84, %c0_85] : memref<32x32xbf16, #tpu.memory_space<vmem>>, vector<32x32xbf16>
      %cst_86 = arith.constant dense<0.000000e+00> : vector<128x32xf32>
      %174 = tpu.matmul %172, %173, %cst_86 {dimension_numbers = #tpu.dot_dimension_numbers<[1], [0], [0], [1], [0, 0, 1, 1], [], []>} : vector<128x32xbf16>, vector<32x32xbf16>, vector<128x32xf32> -> vector<128x32xf32>
      %175 = arith.truncf %174 : vector<128x32xf32> to vector<128x32xbf16>
      %c0_87 = arith.constant 0 : index
      %c0_88 = arith.constant 0 : index
      %176 = vector.load %arg17[%c0_87, %c0_88] : memref<128x32xbf16, #tpu.memory_space<vmem>>, vector<128x32xbf16>
      tpu.vector_store %arg17[%c0_87, %c0_88], %175 {strides = array<i32>} : memref<128x32xbf16, #tpu.memory_space<vmem>>, vector<128x32xbf16>,
      %c0_89 = arith.constant 0 : index
      %c0_90 = arith.constant 0 : index
      %177 = vector.load %arg7[%c0_89, %c0_90] : memref<32x32xbf16, #tpu.memory_space<vmem>>, vector<32x32xbf16>
      %cst_91 = arith.constant dense<0.000000e+00> : vector<128x32xf32>
      %178 = tpu.matmul %172, %177, %cst_91 {dimension_numbers = #tpu.dot_dimension_numbers<[1], [0], [0], [1], [0, 0, 1, 1], [], []>} : vector<128x32xbf16>, vector<32x32xbf16>, vector<128x32xf32> -> vector<128x32xf32>
      %179 = arith.truncf %178 : vector<128x32xf32> to vector<128x32xbf16>
      %c0_92 = arith.constant 0 : index
      %c0_93 = arith.constant 0 : index
      %180 = vector.load %arg18[%c0_92, %c0_93] : memref<128x32xbf16, #tpu.memory_space<vmem>>, vector<128x32xbf16>
      tpu.vector_store %arg18[%c0_92, %c0_93], %179 {strides = array<i32>} : memref<128x32xbf16, #tpu.memory_space<vmem>>, vector<128x32xbf16>,
    } else {
    }
    %c0 = arith.constant 0 : index
    %c0_1 = arith.constant 0 : index
    %c0_2 = arith.constant 0 : index
    %3 = vector.load %arg2[%c0, %c0_1, %c0_2] : memref<1x128x32xbf16, #tpu.memory_space<vmem>>, vector<1x128x32xbf16>
    %4 = vector.shape_cast %3 : vector<1x128x32xbf16> to vector<128x32xbf16>
    %5 = arith.extf %4 : vector<128x32xbf16> to vector<128x32xf32>
    %c0_3 = arith.constant 0 : index
    %c0_4 = arith.constant 0 : index
    %6 = vector.load %arg5[%c0_3, %c0_4] : memref<32x32xbf16, #tpu.memory_space<vmem>>, vector<32x32xbf16>
    %cst = arith.constant dense<0.000000e+00> : vector<128x32xf32>
    %7 = tpu.matmul %4, %6, %cst {dimension_numbers = #tpu.dot_dimension_numbers<[1], [0], [0], [1], [0, 0, 1, 1], [], []>} : vector<128x32xbf16>, vector<32x32xbf16>, vector<128x32xf32> -> vector<128x32xf32>
    %cst_5 = arith.constant 3.200000e+01 : f32
    %8 = math.rsqrt %cst_5 : f32
    %9 = vector.broadcast %8 : f32 to vector<128x32xf32>
    %10 = arith.mulf %7, %9 : vector<128x32xf32>
    %11 = arith.truncf %10 : vector<128x32xf32> to vector<128x32xbf16>
    %c0_6 = arith.constant 0 : index
    %c0_7 = arith.constant 0 : index
    %c0_8 = arith.constant 0 : index
    %12 = vector.load %arg4[%c0_6, %c0_7, %c0_8] : memref<1x1x128xf32, #tpu.memory_space<vmem>>, vector<1x1x128xf32>
    %13 = vector.shape_cast %12 : vector<1x1x128xf32> to vector<1x128xf32>
    %14 = vector.extract_strided_slice %11 {offsets = [0, 0], sizes = [128, 8], strides = [1, 1]} : vector<128x32xbf16> to vector<128x8xbf16>
    %c0_9 = arith.constant 0 : index
    %c0_10 = arith.constant 0 : index
    %15 = vector.load %arg17[%c0_9, %c0_10] : memref<128x32xbf16, #tpu.memory_space<vmem>>, vector<128x8xbf16>
    %c0_11 = arith.constant 0 : index
    %c0_12 = arith.constant 0 : index
    %16 = vector.load %arg18[%c0_11, %c0_12] : memref<128x32xbf16, #tpu.memory_space<vmem>>, vector<128x8xbf16>
    %cst_13 = arith.constant dense<0.000000e+00> : vector<128x128xf32>
    %17 = tpu.matmul %14, %15, %cst_13 {dimension_numbers = #tpu.dot_dimension_numbers<[1], [1], [0], [0], [0, 0, 1, 0], [], []>} : vector<128x8xbf16>, vector<128x8xbf16>, vector<128x128xf32> -> vector<128x128xf32>
    %18 = vector.broadcast %13 : vector<1x128xf32> to vector<128x128xf32>
    %19 = arith.addf %17, %18 : vector<128x128xf32>
    %cst_14 = arith.constant dense<0xFF800000> : vector<128xf32>
    %20 = vector.multi_reduction <maximumf>, %19, %cst_14 [1] : vector<128x128xf32> to vector<128xf32>
    %21 = vector.shape_cast %20 : vector<128xf32> to vector<128x1xf32>
    %22 = vector.broadcast %21 : vector<128x1xf32> to vector<128x128xf32>
    %23 = arith.subf %19, %22 : vector<128x128xf32>
    %24 = math.exp %23 : vector<128x128xf32>
    %cst_15 = arith.constant dense<0.000000e+00> : vector<128xf32>
    %25 = vector.multi_reduction <add>, %24, %cst_15 [1] : vector<128x128xf32> to vector<128xf32>
    %26 = vector.shape_cast %25 : vector<128xf32> to vector<128x1xf32>
    %27 = tpu.reciprocal %26 {approx = true} : vector<128x1xf32> -> vector<128x1xf32>
    %28 = vector.broadcast %27 : vector<128x1xf32> to vector<128x128xf32>
    %29 = arith.mulf %24, %28 : vector<128x128xf32>
    %30 = arith.truncf %29 : vector<128x128xf32> to vector<128x128xbf16>
    %cst_16 = arith.constant dense<0.000000e+00> : vector<128x8xf32>
    %31 = tpu.matmul %30, %16, %cst_16 {dimension_numbers = #tpu.dot_dimension_numbers<[1], [0], [0], [1], [0, 0, 1, 1], [], []>} : vector<128x128xbf16>, vector<128x8xbf16>, vector<128x8xf32> -> vector<128x8xf32>
    %c0_17 = arith.constant 0 : index
    %c0_18 = arith.constant 0 : index
    %32 = vector.load %arg19[%c0_17, %c0_18] : memref<128x32xf32, #tpu.memory_space<vmem>>, vector<128x8xf32>
    tpu.vector_store %arg19[%c0_17, %c0_18], %31 {strides = array<i32>} : memref<128x32xf32, #tpu.memory_space<vmem>>, vector<128x8xf32>,
    %33 = vector.extract_strided_slice %11 {offsets = [0, 8], sizes = [128, 8], strides = [1, 1]} : vector<128x32xbf16> to vector<128x8xbf16>
    %c0_19 = arith.constant 0 : index
    %c8 = arith.constant 8 : index
    %34 = vector.load %arg17[%c0_19, %c8] : memref<128x32xbf16, #tpu.memory_space<vmem>>, vector<128x8xbf16>
    %c0_20 = arith.constant 0 : index
    %c8_21 = arith.constant 8 : index
    %35 = vector.load %arg18[%c0_20, %c8_21] : memref<128x32xbf16, #tpu.memory_space<vmem>>, vector<128x8xbf16>
    %cst_22 = arith.constant dense<0.000000e+00> : vector<128x128xf32>
    %36 = tpu.matmul %33, %34, %cst_22 {dimension_numbers = #tpu.dot_dimension_numbers<[1], [1], [0], [0], [0, 0, 1, 0], [], []>} : vector<128x8xbf16>, vector<128x8xbf16>, vector<128x128xf32> -> vector<128x128xf32>
    %37 = vector.broadcast %13 : vector<1x128xf32> to vector<128x128xf32>
    %38 = arith.addf %36, %37 : vector<128x128xf32>
    %cst_23 = arith.constant dense<0xFF800000> : vector<128xf32>
    %39 = vector.multi_reduction <maximumf>, %38, %cst_23 [1] : vector<128x128xf32> to vector<128xf32>
    %40 = vector.shape_cast %39 : vector<128xf32> to vector<128x1xf32>
    %41 = vector.broadcast %40 : vector<128x1xf32> to vector<128x128xf32>
    %42 = arith.subf %38, %41 : vector<128x128xf32>
    %43 = math.exp %42 : vector<128x128xf32>
    %cst_24 = arith.constant dense<0.000000e+00> : vector<128xf32>
    %44 = vector.multi_reduction <add>, %43, %cst_24 [1] : vector<128x128xf32> to vector<128xf32>
    %45 = vector.shape_cast %44 : vector<128xf32> to vector<128x1xf32>
    %46 = tpu.reciprocal %45 {approx = true} : vector<128x1xf32> -> vector<128x1xf32>
    %47 = vector.broadcast %46 : vector<128x1xf32> to vector<128x128xf32>
    %48 = arith.mulf %43, %47 : vector<128x128xf32>
    %49 = arith.truncf %48 : vector<128x128xf32> to vector<128x128xbf16>
    %cst_25 = arith.constant dense<0.000000e+00> : vector<128x8xf32>
    %50 = tpu.matmul %49, %35, %cst_25 {dimension_numbers = #tpu.dot_dimension_numbers<[1], [0], [0], [1], [0, 0, 1, 1], [], []>} : vector<128x128xbf16>, vector<128x8xbf16>, vector<128x8xf32> -> vector<128x8xf32>
    %c0_26 = arith.constant 0 : index
    %c8_27 = arith.constant 8 : index
    %51 = vector.load %arg19[%c0_26, %c8_27] : memref<128x32xf32, #tpu.memory_space<vmem>>, vector<128x8xf32>
    tpu.vector_store %arg19[%c0_26, %c8_27], %50 {strides = array<i32>} : memref<128x32xf32, #tpu.memory_space<vmem>>, vector<128x8xf32>,
    %52 = vector.extract_strided_slice %11 {offsets = [0, 16], sizes = [128, 8], strides = [1, 1]} : vector<128x32xbf16> to vector<128x8xbf16>
    %c0_28 = arith.constant 0 : index
    %c16 = arith.constant 16 : index
    %53 = vector.load %arg17[%c0_28, %c16] : memref<128x32xbf16, #tpu.memory_space<vmem>>, vector<128x8xbf16>
    %c0_29 = arith.constant 0 : index
    %c16_30 = arith.constant 16 : index
    %54 = vector.load %arg18[%c0_29, %c16_30] : memref<128x32xbf16, #tpu.memory_space<vmem>>, vector<128x8xbf16>
    %cst_31 = arith.constant dense<0.000000e+00> : vector<128x128xf32>
    %55 = tpu.matmul %52, %53, %cst_31 {dimension_numbers = #tpu.dot_dimension_numbers<[1], [1], [0], [0], [0, 0, 1, 0], [], []>} : vector<128x8xbf16>, vector<128x8xbf16>, vector<128x128xf32> -> vector<128x128xf32>
    %56 = vector.broadcast %13 : vector<1x128xf32> to vector<128x128xf32>
    %57 = arith.addf %55, %56 : vector<128x128xf32>
    %cst_32 = arith.constant dense<0xFF800000> : vector<128xf32>
    %58 = vector.multi_reduction <maximumf>, %57, %cst_32 [1] : vector<128x128xf32> to vector<128xf32>
    %59 = vector.shape_cast %58 : vector<128xf32> to vector<128x1xf32>
    %60 = vector.broadcast %59 : vector<128x1xf32> to vector<128x128xf32>
    %61 = arith.subf %57, %60 : vector<128x128xf32>
    %62 = math.exp %61 : vector<128x128xf32>
    %cst_33 = arith.constant dense<0.000000e+00> : vector<128xf32>
    %63 = vector.multi_reduction <add>, %62, %cst_33 [1] : vector<128x128xf32> to vector<128xf32>
    %64 = vector.shape_cast %63 : vector<128xf32> to vector<128x1xf32>
    %65 = tpu.reciprocal %64 {approx = true} : vector<128x1xf32> -> vector<128x1xf32>
    %66 = vector.broadcast %65 : vector<128x1xf32> to vector<128x128xf32>
    %67 = arith.mulf %62, %66 : vector<128x128xf32>
    %68 = arith.truncf %67 : vector<128x128xf32> to vector<128x128xbf16>
    %cst_34 = arith.constant dense<0.000000e+00> : vector<128x8xf32>
    %69 = tpu.matmul %68, %54, %cst_34 {dimension_numbers = #tpu.dot_dimension_numbers<[1], [0], [0], [1], [0, 0, 1, 1], [], []>} : vector<128x128xbf16>, vector<128x8xbf16>, vector<128x8xf32> -> vector<128x8xf32>
    %c0_35 = arith.constant 0 : index
    %c16_36 = arith.constant 16 : index
    %70 = vector.load %arg19[%c0_35, %c16_36] : memref<128x32xf32, #tpu.memory_space<vmem>>, vector<128x8xf32>
    tpu.vector_store %arg19[%c0_35, %c16_36], %69 {strides = array<i32>} : memref<128x32xf32, #tpu.memory_space<vmem>>, vector<128x8xf32>,
    %71 = vector.extract_strided_slice %11 {offsets = [0, 24], sizes = [128, 8], strides = [1, 1]} : vector<128x32xbf16> to vector<128x8xbf16>
    %c0_37 = arith.constant 0 : index
    %c24 = arith.constant 24 : index
    %72 = vector.load %arg17[%c0_37, %c24] : memref<128x32xbf16, #tpu.memory_space<vmem>>, vector<128x8xbf16>
    %c0_38 = arith.constant 0 : index
    %c24_39 = arith.constant 24 : index
    %73 = vector.load %arg18[%c0_38, %c24_39] : memref<128x32xbf16, #tpu.memory_space<vmem>>, vector<128x8xbf16>
    %cst_40 = arith.constant dense<0.000000e+00> : vector<128x128xf32>
    %74 = tpu.matmul %71, %72, %cst_40 {dimension_numbers = #tpu.dot_dimension_numbers<[1], [1], [0], [0], [0, 0, 1, 0], [], []>} : vector<128x8xbf16>, vector<128x8xbf16>, vector<128x128xf32> -> vector<128x128xf32>
    %75 = vector.broadcast %13 : vector<1x128xf32> to vector<128x128xf32>
    %76 = arith.addf %74, %75 : vector<128x128xf32>
    %cst_41 = arith.constant dense<0xFF800000> : vector<128xf32>
    %77 = vector.multi_reduction <maximumf>, %76, %cst_41 [1] : vector<128x128xf32> to vector<128xf32>
    %78 = vector.shape_cast %77 : vector<128xf32> to vector<128x1xf32>
    %79 = vector.broadcast %78 : vector<128x1xf32> to vector<128x128xf32>
    %80 = arith.subf %76, %79 : vector<128x128xf32>
    %81 = math.exp %80 : vector<128x128xf32>
    %cst_42 = arith.constant dense<0.000000e+00> : vector<128xf32>
    %82 = vector.multi_reduction <add>, %81, %cst_42 [1] : vector<128x128xf32> to vector<128xf32>
    %83 = vector.shape_cast %82 : vector<128xf32> to vector<128x1xf32>
    %84 = tpu.reciprocal %83 {approx = true} : vector<128x1xf32> -> vector<128x1xf32>
    %85 = vector.broadcast %84 : vector<128x1xf32> to vector<128x128xf32>
    %86 = arith.mulf %81, %85 : vector<128x128xf32>
    %87 = arith.truncf %86 : vector<128x128xf32> to vector<128x128xbf16>
    %cst_43 = arith.constant dense<0.000000e+00> : vector<128x8xf32>
    %88 = tpu.matmul %87, %73, %cst_43 {dimension_numbers = #tpu.dot_dimension_numbers<[1], [0], [0], [1], [0, 0, 1, 1], [], []>} : vector<128x128xbf16>, vector<128x8xbf16>, vector<128x8xf32> -> vector<128x8xf32>
    %c0_44 = arith.constant 0 : index
    %c24_45 = arith.constant 24 : index
    %89 = vector.load %arg19[%c0_44, %c24_45] : memref<128x32xf32, #tpu.memory_space<vmem>>, vector<128x8xf32>
    tpu.vector_store %arg19[%c0_44, %c24_45], %88 {strides = array<i32>} : memref<128x32xf32, #tpu.memory_space<vmem>>, vector<128x8xf32>,
    %c0_46 = arith.constant 0 : index
    %c0_47 = arith.constant 0 : index
    %90 = vector.load %arg19[%c0_46, %c0_47] : memref<128x32xf32, #tpu.memory_space<vmem>>, vector<128x32xf32>
    %91 = arith.truncf %90 : vector<128x32xf32> to vector<128x32xbf16>
    %c0_48 = arith.constant 0 : index
    %c0_49 = arith.constant 0 : index
    %92 = vector.load %arg8[%c0_48, %c0_49] : memref<32x32xbf16, #tpu.memory_space<vmem>>, vector<32x32xbf16>
    %cst_50 = arith.constant dense<0.000000e+00> : vector<128x32xf32>
    %93 = tpu.matmul %91, %92, %cst_50 {dimension_numbers = #tpu.dot_dimension_numbers<[1], [0], [0], [1], [0, 0, 1, 1], [], []>} : vector<128x32xbf16>, vector<32x32xbf16>, vector<128x32xf32> -> vector<128x32xf32>
    %c0_51 = arith.constant 0 : index
    %c0_52 = arith.constant 0 : index
    %94 = vector.load %arg9[%c0_51, %c0_52] : memref<1x32xf32, #tpu.memory_space<vmem>>, vector<1x32xf32>
    %95 = vector.shape_cast %94 : vector<1x32xf32> to vector<32xf32>
    %96 = vector.shape_cast %95 : vector<32xf32> to vector<1x32xf32>
    %97 = vector.broadcast %96 : vector<1x32xf32> to vector<128x32xf32>
    %98 = arith.addf %93, %97 : vector<128x32xf32>
    %c0_53 = arith.constant 0 : index
    %c0_54 = arith.constant 0 : index
    %99 = vector.load %arg14[%c0_53, %c0_54] : memref<1x32xf32, #tpu.memory_space<vmem>>, vector<1x32xf32>
    %100 = vector.shape_cast %99 : vector<1x32xf32> to vector<32xf32>
    %c0_55 = arith.constant 0 : index
    %c0_56 = arith.constant 0 : index
    %101 = vector.load %arg15[%c0_55, %c0_56] : memref<1x32xf32, #tpu.memory_space<vmem>>, vector<1x32xf32>
    %102 = vector.shape_cast %101 : vector<1x32xf32> to vector<32xf32>
    %103 = arith.addf %98, %5 : vector<128x32xf32>
    %cst_57 = arith.constant dense<0.000000e+00> : vector<128xf32>
    %104 = vector.multi_reduction <add>, %103, %cst_57 [1] : vector<128x32xf32> to vector<128xf32>
    %105 = vector.shape_cast %104 : vector<128xf32> to vector<128x1xf32>
    %cst_58 = arith.constant 3.200000e+01 : f32
    %106 = vector.broadcast %cst_58 : f32 to vector<128x1xf32>
    %107 = arith.divf %105, %106 : vector<128x1xf32>
    %108 = vector.broadcast %107 : vector<128x1xf32> to vector<128x32xf32>
    %109 = arith.subf %103, %108 : vector<128x32xf32>
    %110 = arith.mulf %109, %109 : vector<128x32xf32>
    %cst_59 = arith.constant dense<0.000000e+00> : vector<128xf32>
    %111 = vector.multi_reduction <add>, %110, %cst_59 [1] : vector<128x32xf32> to vector<128xf32>
    %112 = vector.shape_cast %111 : vector<128xf32> to vector<128x1xf32>
    %cst_60 = arith.constant 3.200000e+01 : f32
    %113 = vector.broadcast %cst_60 : f32 to vector<128x1xf32>
    %114 = arith.divf %112, %113 : vector<128x1xf32>
    %cst_61 = arith.constant 9.99999974E-6 : f32
    %115 = vector.broadcast %cst_61 : f32 to vector<128x1xf32>
    %116 = arith.addf %114, %115 : vector<128x1xf32>
    %117 = math.rsqrt %116 : vector<128x1xf32>
    %118 = vector.broadcast %117 : vector<128x1xf32> to vector<128x32xf32>
    %119 = arith.mulf %109, %118 : vector<128x32xf32>
    %120 = vector.shape_cast %100 : vector<32xf32> to vector<1x32xf32>
    %121 = vector.broadcast %120 : vector<1x32xf32> to vector<128x32xf32>
    %122 = arith.mulf %119, %121 : vector<128x32xf32>
    %123 = vector.shape_cast %102 : vector<32xf32> to vector<1x32xf32>
    %124 = vector.broadcast %123 : vector<1x32xf32> to vector<128x32xf32>
    %125 = arith.addf %122, %124 : vector<128x32xf32>
    %126 = arith.truncf %125 : vector<128x32xf32> to vector<128x32xbf16>
    %c0_62 = arith.constant 0 : index
    %c0_63 = arith.constant 0 : index
    %127 = vector.load %arg10[%c0_62, %c0_63] : memref<32x128xbf16, #tpu.memory_space<vmem>>, vector<32x128xbf16>
    %cst_64 = arith.constant dense<0.000000e+00> : vector<128x128xf32>
    %128 = tpu.matmul %126, %127, %cst_64 {dimension_numbers = #tpu.dot_dimension_numbers<[1], [0], [0], [1], [0, 0, 1, 1], [], []>} : vector<128x32xbf16>, vector<32x128xbf16>, vector<128x128xf32> -> vector<128x128xf32>
    %c0_65 = arith.constant 0 : index
    %c0_66 = arith.constant 0 : index
    %129 = vector.load %arg11[%c0_65, %c0_66] : memref<1x128xf32, #tpu.memory_space<vmem>>, vector<1x128xf32>
    %130 = vector.shape_cast %129 : vector<1x128xf32> to vector<128xf32>
    %131 = vector.shape_cast %130 : vector<128xf32> to vector<1x128xf32>
    %132 = vector.broadcast %131 : vector<1x128xf32> to vector<128x128xf32>
    %133 = arith.addf %128, %132 : vector<128x128xf32>
    %cst_67 = arith.constant 0.000000e+00 : f32
    %134 = vector.broadcast %cst_67 : f32 to vector<128x128xf32>
    %135 = arith.maximumf %133, %134 : vector<128x128xf32>
    %136 = arith.truncf %135 : vector<128x128xf32> to vector<128x128xbf16>
    %c0_68 = arith.constant 0 : index
    %c0_69 = arith.constant 0 : index
    %137 = vector.load %arg12[%c0_68, %c0_69] : memref<128x32xbf16, #tpu.memory_space<vmem>>, vector<128x32xbf16>
    %cst_70 = arith.constant dense<0.000000e+00> : vector<128x32xf32>
    %138 = tpu.matmul %136, %137, %cst_70 {dimension_numbers = #tpu.dot_dimension_numbers<[1], [0], [0], [1], [0, 0, 1, 1], [], []>} : vector<128x128xbf16>, vector<128x32xbf16>, vector<128x32xf32> -> vector<128x32xf32>
    %c0_71 = arith.constant 0 : index
    %c0_72 = arith.constant 0 : index
    %139 = vector.load %arg13[%c0_71, %c0_72] : memref<1x32xf32, #tpu.memory_space<vmem>>, vector<1x32xf32>
    %140 = vector.shape_cast %139 : vector<1x32xf32> to vector<32xf32>
    %141 = vector.shape_cast %140 : vector<32xf32> to vector<1x32xf32>
    %142 = vector.broadcast %141 : vector<1x32xf32> to vector<128x32xf32>
    %143 = arith.addf %138, %142 : vector<128x32xf32>
    %144 = arith.addf %125, %143 : vector<128x32xf32>
    %cst_73 = arith.constant dense<0.000000e+00> : vector<128xf32>
    %145 = vector.multi_reduction <add>, %144, %cst_73 [1] : vector<128x32xf32> to vector<128xf32>
    %146 = vector.shape_cast %145 : vector<128xf32> to vector<128x1xf32>
    %cst_74 = arith.constant 3.200000e+01 : f32
    %147 = vector.broadcast %cst_74 : f32 to vector<128x1xf32>
    %148 = arith.divf %146, %147 : vector<128x1xf32>
    %149 = vector.broadcast %148 : vector<128x1xf32> to vector<128x32xf32>
    %150 = arith.subf %144, %149 : vector<128x32xf32>
    %151 = arith.mulf %150, %150 : vector<128x32xf32>
    %cst_75 = arith.constant dense<0.000000e+00> : vector<128xf32>
    %152 = vector.multi_reduction <add>, %151, %cst_75 [1] : vector<128x32xf32> to vector<128xf32>
    %153 = vector.shape_cast %152 : vector<128xf32> to vector<128x1xf32>
    %cst_76 = arith.constant 3.200000e+01 : f32
    %154 = vector.broadcast %cst_76 : f32 to vector<128x1xf32>
    %155 = arith.divf %153, %154 : vector<128x1xf32>
    %cst_77 = arith.constant 9.99999974E-6 : f32
    %156 = vector.broadcast %cst_77 : f32 to vector<128x1xf32>
    %157 = arith.addf %155, %156 : vector<128x1xf32>
    %158 = math.rsqrt %157 : vector<128x1xf32>
    %159 = vector.broadcast %158 : vector<128x1xf32> to vector<128x32xf32>
    %160 = arith.mulf %150, %159 : vector<128x32xf32>
    %161 = vector.shape_cast %100 : vector<32xf32> to vector<1x32xf32>
    %162 = vector.broadcast %161 : vector<1x32xf32> to vector<128x32xf32>
    %163 = arith.mulf %160, %162 : vector<128x32xf32>
    %164 = vector.shape_cast %102 : vector<32xf32> to vector<1x32xf32>
    %165 = vector.broadcast %164 : vector<1x32xf32> to vector<128x32xf32>
    %166 = arith.addf %163, %165 : vector<128x32xf32>
    %167 = arith.truncf %166 : vector<128x32xf32> to vector<128x32xbf16>
    %c0_78 = arith.constant 0 : index
    %c0_79 = arith.constant 0 : index
    %c0_80 = arith.constant 0 : index
    %168 = vector.load %arg16[%c0_78, %c0_79, %c0_80] : memref<1x128x32xbf16, #tpu.memory_space<vmem>>, vector<1x128x32xbf16>
    %169 = vector.shape_cast %168 : vector<1x128x32xbf16> to vector<128x32xbf16>
    %170 = vector.shape_cast %167 : vector<128x32xbf16> to vector<1x128x32xbf16>
    tpu.vector_store %arg16[%c0_78, %c0_79, %c0_80], %170 {strides = array<i32>} : memref<1x128x32xbf16, #tpu.memory_space<vmem>>, vector<1x128x32xbf16>,
    return
  }
  func.func @transform_0(%arg0: i32, %arg1: i32) -> (i32, i32, i32) {
    %c0_i32 = arith.constant 0 : i32
    %c0_i32_0 = arith.constant 0 : i32
    return %arg0, %arg1, %c0_i32 : i32, i32, i32
  }
  func.func @transform_1(%arg0: i32, %arg1: i32) -> (i32, i32, i32) {
    %c0_i32 = arith.constant 0 : i32
    %c0_i32_0 = arith.constant 0 : i32
    %c0_i32_1 = arith.constant 0 : i32
    return %arg0, %c0_i32, %c0_i32_0 : i32, i32, i32
  }
  func.func @transform_2(%arg0: i32, %arg1: i32) -> (i32, i32, i32) {
    %c0_i32 = arith.constant 0 : i32
    %c0_i32_0 = arith.constant 0 : i32
    %c0_i32_1 = arith.constant 0 : i32
    return %arg0, %c0_i32, %c0_i32_0 : i32, i32, i32
  }
  func.func @transform_3(%arg0: i32, %arg1: i32) -> (i32, i32) {
    %c0_i32 = arith.constant 0 : i32
    %c0_i32_0 = arith.constant 0 : i32
    %c0_i32_1 = arith.constant 0 : i32
    return %c0_i32, %c0_i32_0 : i32, i32
  }
  func.func @transform_4(%arg0: i32, %arg1: i32) -> (i32, i32) {
    %c0_i32 = arith.constant 0 : i32
    %c0_i32_0 = arith.constant 0 : i32
    %c0_i32_1 = arith.constant 0 : i32
    return %c0_i32, %c0_i32_0 : i32, i32
  }
  func.func @transform_5(%arg0: i32, %arg1: i32) -> (i32, i32) {
    %c0_i32 = arith.constant 0 : i32
    %c0_i32_0 = arith.constant 0 : i32
    %c0_i32_1 = arith.constant 0 : i32
    return %c0_i32, %c0_i32_0 : i32, i32
  }
  func.func @transform_6(%arg0: i32, %arg1: i32) -> (i32, i32) {
    %c0_i32 = arith.constant 0 : i32
    %c0_i32_0 = arith.constant 0 : i32
    %c0_i32_1 = arith.constant 0 : i32
    return %c0_i32, %c0_i32_0 : i32, i32
  }
  func.func @transform_7(%arg0: i32, %arg1: i32) -> (i32, i32) {
    %c0_i32 = arith.constant 0 : i32
    %c0_i32_0 = arith.constant 0 : i32
    %c0_i32_1 = arith.constant 0 : i32
    return %c0_i32, %c0_i32_0 : i32, i32
  }
  func.func @transform_8(%arg0: i32, %arg1: i32) -> (i32, i32) {
    %c0_i32 = arith.constant 0 : i32
    %c0_i32_0 = arith.constant 0 : i32
    %c0_i32_1 = arith.constant 0 : i32
    return %c0_i32, %c0_i32_0 : i32, i32
  }
  func.func @transform_9(%arg0: i32, %arg1: i32) -> (i32, i32) {
    %c0_i32 = arith.constant 0 : i32
    %c0_i32_0 = arith.constant 0 : i32
    %c0_i32_1 = arith.constant 0 : i32
    return %c0_i32, %c0_i32_0 : i32, i32
  }
  func.func @transform_10(%arg0: i32, %arg1: i32) -> (i32, i32) {
    %c0_i32 = arith.constant 0 : i32
    %c0_i32_0 = arith.constant 0 : i32
    %c0_i32_1 = arith.constant 0 : i32
    return %c0_i32, %c0_i32_0 : i32, i32
  }
  func.func @transform_11(%arg0: i32, %arg1: i32) -> (i32, i32) {
    %c0_i32 = arith.constant 0 : i32
    %c0_i32_0 = arith.constant 0 : i32
    %c0_i32_1 = arith.constant 0 : i32
    return %c0_i32, %c0_i32_0 : i32, i32
  }
  func.func @transform_12(%arg0: i32, %arg1: i32) -> (i32, i32) {
    %c0_i32 = arith.constant 0 : i32
    %c0_i32_0 = arith.constant 0 : i32
    %c0_i32_1 = arith.constant 0 : i32
    return %c0_i32, %c0_i32_0 : i32, i32
  }
  func.func @transform_13(%arg0: i32, %arg1: i32) -> (i32, i32) {
    %c0_i32 = arith.constant 0 : i32
    %c0_i32_0 = arith.constant 0 : i32
    %c0_i32_1 = arith.constant 0 : i32
    return %c0_i32, %c0_i32_0 : i32, i32
  }
  func.func @transform_14(%arg0: i32, %arg1: i32) -> (i32, i32, i32) {
    %c0_i32 = arith.constant 0 : i32
    %c0_i32_0 = arith.constant 0 : i32
    return %arg0, %arg1, %c0_i32 : i32, i32, i32
  }
}

</mosaic_0001>

<bundles_post_ra>
// kernel: encoder_forward.2
= control target key start
LH: loop header
LB: loop body
LE: loop exit
PB: predicated region body
PF: predicated region fallthrough
CT: control target
= control target key end

     0   :  { %s5501_s29 = smov 0   ;;  %s5503_s30 = smov 0   ;;  %s7450_s0 = inlined_call_operand.vmem [shape: bf16[2,128,32], index: 0, kind: input, shape index: {}, may-alias: {0,1}]   ;;  %s7451_s1 = inlined_call_operand.vmem [shape: bf16[2,128,32], index: 1, kind: input, shape index: {}, may-alias: {0,1}]   ;;  %s7452_s2 = inlined_call_operand.vmem [shape: f32[2,1,128], index: 2, kind: input, shape index: {}]   ;;  %s7453_s3 = inlined_call_operand.vmem [shape: bf16[32,32], index: 3, kind: input, shape index: {}]   ;;  %s7454_s4 = inlined_call_operand.vmem [shape: bf16[32,32], index: 4, kind: input, shape index: {}]   ;;  %s7455_s5 = inlined_call_operand.vmem [shape: bf16[32,32], index: 5, kind: input, shape index: {}]   ;;  %s7456_s6 = inlined_call_operand.vmem [shape: bf16[32,32], index: 6, kind: input, shape index: {}]   ;;  %s7457_s7 = inlined_call_operand.vmem [shape: f32[1,32], index: 7, kind: input, shape index: {}]   ;;  %s7458_s8 = inlined_call_operand.vmem [shape: bf16[32,128], index: 8, kind: input, shape index: {}]   ;;  %s7459_s9 = inlined_call_operand.vmem [shape: f32[1,128], index: 9, kind: input, shape index: {}]   ;;  %s7460_s10 = inlined_call_operand.vmem [shape: bf16[128,32], index: 10, kind: input, shape index: {}]   ;;  %s7461_s11 = inlined_call_operand.vmem [shape: f32[1,32], index: 11, kind: input, shape index: {}]   ;;  %s7462_s12 = inlined_call_operand.vmem [shape: f32[1,32], index: 12, kind: input, shape index: {}]   ;;  %s7463_s13 = inlined_call_operand.vmem [shape: f32[1,32], index: 13, kind: input, shape index: {}]   ;;  %s7464_s14 = inlined_call_operand.vmem [shape: bf16[2,128,32], index: 14, kind: output, shape index: {}]  }
   0x1   :  { %s5505_s15 = smov 0  }
   0x2 LB: > { %s36_s16 = sadd.s32 1, %s5413_s30  ;;  %p4455_p0 = scmp.ge.s32.totalorder %s5417_s15, 1  ;;  %s5417_s15 = sphi %s5505_s15, %s24_s15   ;;  %s5413_s30 = sphi %s5503_s30, %s7466_s30   ;;  %s5409_s29 = sphi %s5501_s29, %s7465_s29  }
   0x3   : > { %p38_p1 = scmp.ge.s32.totalorder %s36_s16, 2  ;;  %p451_p2 = scmp.lt.s32.totalorder %s5417_s15, 3 }
   0x5   : > { %s7468_s16 = smov (%p38_p1, %s36_s16), 0  ;;  %p452_p3 = pnand %p4455_p0, %p451_p2 }
   0x6   : > { %p514_p4 = scmp.lt.s32.totalorder (!%p452_p3), %s5409_s29, 1  ;;  %s5419_s27 = smov (!%p452_p3), 120  }
   0x7   : > { %455 = sbr.rel (%p452_p3) target bundleno = 2525 (0x9dd), region = 76  ;;  %s5420_s17 = smov (!%p452_p3), 112  }
   0x8   : > { %s5421_s18 = smov (!%p452_p3), 104   ;;  %s5424_s21 = smov (!%p452_p3), 24  }
   0xc   : > { %v4940_v0 = vld [vmem:[%s7454_s4 + $0x8] sm:$0xff]  ;;  %v4939_v2 = vld [vmem:[%s7454_s4] sm:$0xff]  ;;  %s7470_s29 = smov (!%p514_p4, %s5409_s29), 1  ;;  %vm618_vm0 = vcmask 261120   ;;  %vm708_vm1 = vcmask 257024   ;;  %vm1132_vm2 = vcmask 64512  }
   0xd   : > { %v4942_v1 = vld [vmem:[%s7455_s5 + $0x8] sm:$0xff]  ;;  %649 = vmatpush.bf16.msra.mxu0 %v4940_v0  ;;  %5029 = vmatpush.bf16.msra.mxu3 %v4940_v0  ;;  %v4941_v3 = vld [vmem:[%s7455_s5] sm:$0xff]  ;;  %s5531_s25 = sshll.u32 %s7470_s29, 6  ;;  %s5536_s28 = scalar_lea.vmem %s7452_s2, %s7470_s29  ;;  %vm2025_vm3 = vcmask 130112   ;;  %vm2572_vm4 = vcmask 195712   ;;  %vm3119_vm5 = vcmask 261312  }
   0xe   : > { %747 = vmatpush.bf16.msra.mxu1 %v4942_v1  ;;  %5031 = vmatpush.bf16.msra.mxu2 %v4942_v1  ;;  %s5542_s19 = scalar_lea.vmem %s7451_s1, %s5531_s25  ;;  %v4952_v10 = vld [vmem:[%s7453_s3 + $0x8] sm:$0xff]  ;;  %v4951_v11 = vld [vmem:[%s7453_s3] sm:$0xff]  ;;  %s5572_s26 = scalar_lea.vmem %s7450_s0, %s5531_s25 }
   0xf   : > { %v4931_v4 = vld [vmem:[%s5542_s19] sm:$0xff]  ;;  %v4936_v5 = vld [vmem:[%s5542_s19 + $0x28] sm:$0xff]  ;;  %v4937_v7 = vld [vmem:[%s5542_s19 + $0x30] sm:$0xff]  ;;  %s7330_s24 = scalar_lea.vmem %s7464_s14, %s5531_s25 }
  0x10   : > { %v4932_v6 = vld [vmem:[%s5542_s19 + $0x8] sm:$0xff]  ;;  %v4933_v8 = vld [vmem:[%s5542_s19 + $0x10] sm:$0xff]  ;;  %v4938_v9 = vld [vmem:[%s5542_s19 + $0x38] sm:$0xff] }
  0x11   : > { %650 = vmatpush.bf16.msra.mxu0 %v4939_v2  ;;  %5030 = vmatpush.bf16.msra.mxu3 %v4939_v2  ;;  %v4934_v12 = vld [vmem:[%s5542_s19 + $0x18] sm:$0xff]  ;;  %v4943_v13 = vld [vmem:[%s5572_s26] sm:$0xff]  ;;  %v4944_v15 = vld [vmem:[%s5572_s26 + $0x8] sm:$0xff] }
  0x12   : > { %748 = vmatpush.bf16.msra.mxu1 %v4941_v3  ;;  %5032 = vmatpush.bf16.msra.mxu2 %v4941_v3  ;;  %v4935_v14 = vld [vmem:[%s5542_s19 + $0x20] sm:$0xff]  ;;  %v4945_v16 = vld [vmem:[%s5572_s26 + $0x10] sm:$0xff]  ;;  %v4946_v17 = vld [vmem:[%s5572_s26 + $0x18] sm:$0xff]  ;;  %s5423_s19 = smov 16  }
  0x13   : > { %v4947_v18 = vld [vmem:[%s5572_s26 + $0x20] sm:$0xff]  ;;  %v4948_v20 = vld [vmem:[%s5572_s26 + $0x28] sm:$0xff]  ;;  %v4949_v37 = vld [vmem:[%s5572_s26 + $0x30] sm:$0xff] }
  0x14   : > { %4502 = vmatmul.msk.bf16.vlgmr.msra.gmra.mxu0 %vm618_vm0, %v4931_v4  ;;  %4507 = vmatmul.msk.bf16.vlgmr.msra.gmra.mxu3 %vm618_vm0, %v4936_v5  ;;  %v4950_v59 = vld [vmem:[%s5572_s26 + $0x38] sm:$0xff] }
  0x15   : > { %4518 = vmatmul.msk.bf16.vlgmr.msra.gmra.mxu1 %vm618_vm0, %v4931_v4  ;;  %4523 = vmatmul.msk.bf16.vlgmr.msra.gmra.mxu2 %vm618_vm0, %v4936_v5 }
  0x16   : > { %941 = vmatpush.bf16.msrb.mxu2 %v4952_v10 }
  0x1a   : > { %942 = vmatpush.bf16.msrb.mxu2 %v4951_v11 }
  0x24   : > { %4503 = vmatmul.msk.bf16.gmra.mxu0 %vm618_vm0, %v4932_v6  ;;  %4508 = vmatmul.msk.bf16.gmra.mxu3 %vm618_vm0, %v4937_v7 }
  0x25   : > { %4519 = vmatmul.msk.bf16.gmra.mxu1 %vm618_vm0, %v4932_v6  ;;  %4524 = vmatmul.msk.bf16.gmra.mxu2 %vm618_vm0, %v4937_v7 }
  0x34   : > { %4504 = vmatmul.msk.bf16.gmra.mxu0 %vm618_vm0, %v4933_v8  ;;  %4509 = vmatmul.msk.bf16.gmra.mxu3 %vm618_vm0, %v4938_v9 }
  0x35   : > { %4520 = vmatmul.msk.bf16.gmra.mxu1 %vm618_vm0, %v4933_v8  ;;  %4525 = vmatmul.msk.bf16.gmra.mxu2 %vm618_vm0, %v4938_v9 }
  0x44   : > { %4505 = vmatmul.msk.bf16.gmra.mxu0 %vm618_vm0, %v4934_v12 }
  0x45   : > { %4521 = vmatmul.msk.bf16.gmra.mxu1 %vm618_vm0, %v4934_v12  ;;  %4566 = vmatmul.msk.bf16.vlgmr.msrb.gmra.mxu2 %vm618_vm0, %v4943_v13 }
  0x54   : > { %4506 = vmatmul.msk.bf16.gmra.mxu0 %vm618_vm0, %v4935_v14 }
  0x55   : > { %4522 = vmatmul.msk.bf16.gmra.mxu1 %vm618_vm0, %v4935_v14  ;;  %4567 = vmatmul.msk.bf16.gmra.mxu2 %vm618_vm0, %v4944_v15 }
  0x65   : > { %4568 = vmatmul.msk.bf16.gmra.mxu2 %vm618_vm0, %v4945_v16 }
  0x75   : > { %4569 = vmatmul.msk.bf16.gmra.mxu2 %vm618_vm0, %v4946_v17 }
  0x85   : > { %4570 = vmatmul.msk.bf16.gmra.mxu2 %vm618_vm0, %v4947_v18 }
  0x91   : > { %v652_v19 = vpop.f32.mrf.mxu0 }
  0x92   : > { %v692_v21 = vpack.c.bf16 %v652_v19, %v652_v19  ;;  %v750_v22 = vpop.f32.mrf.mxu1 }
  0x93   : > { %v790_v23 = vpack.c.bf16 %v750_v22, %v750_v22 }
  0x94   : > { %709 = vst.msk [vmem:[#allocation2] sm:$0xf] %vm708_vm1, %v692_v21 }
  0x95   : > { %806 = vst.msk [vmem:[#allocation3] sm:$0xf] %vm708_vm1, %v790_v23  ;;  %4571 = vmatmul.msk.bf16.gmra.mxu2 %vm618_vm0, %v4948_v20 }
  0x97   : > { %v677_v24 = vpop.f32.mrf.mxu3 }
  0x98   : > { %v702_v25 = vpack.c.bf16 %v677_v24, %v677_v24  ;;  %v775_v26 = vpop.f32.mrf.mxu2 }
  0x99   : > { %v800_v27 = vpack.c.bf16 %v775_v26, %v775_v26  ;;  %v654_v28 = vpop.f32.mrf.mxu0 }
  0x9a   : > { %719 = vst.msk [vmem:[#allocation2 + $0x28] sm:$0xf] %vm708_vm1, %v702_v25  ;;  %v693_v29 = vpack.c.bf16 %v654_v28, %v654_v28  ;;  %v752_v30 = vpop.f32.mrf.mxu1 }
  0x9b   : > { %816 = vst.msk [vmem:[#allocation3 + $0x28] sm:$0xf] %vm708_vm1, %v800_v27  ;;  %v791_v31 = vpack.c.bf16 %v752_v30, %v752_v30 }
  0x9c   : > { %710 = vst.msk [vmem:[#allocation2 + $0x4] sm:$0xf] %vm708_vm1, %v693_v29 }
  0x9d   : > { %807 = vst.msk [vmem:[#allocation3 + $0x4] sm:$0xf] %vm708_vm1, %v791_v31 }
  0x9f   : > { %v679_v32 = vpop.f32.mrf.mxu3 }
  0xa0   : > { %v703_v33 = vpack.c.bf16 %v679_v32, %v679_v32  ;;  %v777_v34 = vpop.f32.mrf.mxu2 }
  0xa1   : > { %v801_v35 = vpack.c.bf16 %v777_v34, %v777_v34  ;;  %v657_v36 = vpop.f32.mrf.mxu0 }
  0xa2   : > { %720 = vst.msk [vmem:[#allocation2 + $0x2c] sm:$0xf] %vm708_vm1, %v703_v33  ;;  %v694_v38 = vpack.c.bf16 %v657_v36, %v657_v36  ;;  %v755_v39 = vpop.f32.mrf.mxu1 }
  0xa3   : > { %817 = vst.msk [vmem:[#allocation3 + $0x2c] sm:$0xf] %vm708_vm1, %v801_v35  ;;  %v792_v40 = vpack.c.bf16 %v755_v39, %v755_v39  ;;  %v4969_v41 = vld [vmem:[#allocation2] sm:$0xff] }
  0xa4   : > { %711 = vst.msk [vmem:[#allocation2 + $0x8] sm:$0xf] %vm708_vm1, %v694_v38  ;;  %1583 = vrot.lane.b32.xlu1 %v4969_v41, %s5419_s27  ;;  %v5001_v29 = vld [vmem:[#allocation2] sm:$0xff] }
  0xa5   : > { %808 = vst.msk [vmem:[#allocation3 + $0x8] sm:$0xf] %vm708_vm1, %v792_v40  ;;  %4572 = vmatmul.msk.bf16.gmra.mxu2 %vm618_vm0, %v4949_v37 }
  0xa7   : > { %v682_v42 = vpop.f32.mrf.mxu3 }
  0xa8   : > { %v704_v43 = vpack.c.bf16 %v682_v42, %v682_v42  ;;  %v780_v44 = vpop.f32.mrf.mxu2  ;;  %v4977_v42 = vld [vmem:[#allocation3] sm:$0xff] }
  0xa9   : > { %v802_v45 = vpack.c.bf16 %v780_v44, %v780_v44  ;;  %v659_v46 = vpop.f32.mrf.mxu0  ;;  %v4990_v47 = vld [vmem:[#allocation2 + $0x28] sm:$0xff] }
  0xaa   : > { %721 = vst.msk [vmem:[#allocation2 + $0x30] sm:$0xf] %vm708_vm1, %v704_v43  ;;  %v695_v48 = vpack.c.bf16 %v659_v46, %v659_v46  ;;  %v757_v49 = vpop.f32.mrf.mxu1  ;;  %2140 = vrot.lane.b32.xlu2 %v4990_v47, %s5420_s17  ;;  %v4974_v51 = vld [vmem:[#allocation2 + $0x28] sm:$0xff] }
  0xab   : > { %818 = vst.msk [vmem:[#allocation3 + $0x30] sm:$0xf] %vm708_vm1, %v802_v45  ;;  %v793_v50 = vpack.c.bf16 %v757_v49, %v757_v49  ;;  %v5006_v61 = vld [vmem:[#allocation2 + $0x28] sm:$0xff] }
  0xac   : > { %712 = vst.msk [vmem:[#allocation2 + $0xc] sm:$0xf] %vm708_vm1, %v695_v48  ;;  %1593 = vrot.lane.b32.xlu1 %v4974_v51, %s5419_s27  ;;  %v4966_v38 = vld [vmem:[#allocation3 + $0x28] sm:$0xff] }
  0xad   : > { %809 = vst.msk [vmem:[#allocation3 + $0xc] sm:$0xf] %vm708_vm1, %v793_v50  ;;  %v4982_v43 = vld [vmem:[#allocation3 + $0x28] sm:$0xff] }
  0xae   : > { %v4958_v44 = vld [vmem:[#allocation2 + $0x28] sm:$0xff] }
  0xaf   : > { %v684_v52 = vpop.f32.mrf.mxu3  ;;  %v1173_v51 = vsel %vm1132_vm2, %v4958_v44, 0  ;;  %v4998_v44 = vld [vmem:[#allocation3 + $0x28] sm:$0xff] }
  0xb0   : > { %v705_v53 = vpack.c.bf16 %v684_v52, %v684_v52  ;;  %v782_v54 = vpop.f32.mrf.mxu2 }
  0xb1   : > { %v803_v55 = vpack.c.bf16 %v782_v54, %v782_v54  ;;  %v662_v56 = vpop.f32.mrf.mxu0 }
  0xb2   : > { %722 = vst.msk [vmem:[#allocation2 + $0x34] sm:$0xf] %vm708_vm1, %v705_v53  ;;  %v696_v57 = vpack.c.bf16 %v662_v56, %v662_v56  ;;  %v760_v58 = vpop.f32.mrf.mxu1  ;;  %v4985_v53 = vld [vmem:[#allocation2] sm:$0xff] }
  0xb3   : > { %819 = vst.msk [vmem:[#allocation3 + $0x34] sm:$0xf] %vm708_vm1, %v803_v55  ;;  %v794_v60 = vpack.c.bf16 %v760_v58, %v760_v58  ;;  %v5002_v62 = vld [vmem:[#allocation2 + $0x8] sm:$0xff] }
  0xb4   : > { %v4970_v63 = vld [vmem:[#allocation2 + $0x8] sm:$0xff]  ;;  %713 = vst.msk [vmem:[#allocation2 + $0x10] sm:$0xf] %vm708_vm1, %v696_v57  ;;  %2687 = vrot.lane.b32.xlu1 %v5006_v61, %s5421_s18  ;;  %2679 = vrot.lane.b32.xlu2 %v5002_v62, %s5421_s18 }
  0xb5   : > { %810 = vst.msk [vmem:[#allocation3 + $0x10] sm:$0xf] %vm708_vm1, %v794_v60  ;;  %1585 = vrot.lane.b32.xlu0 %v4970_v63, %s5419_s27  ;;  %4573 = vmatmul.msk.bf16.gmra.mxu2 %vm618_vm0, %v4950_v59  ;;  %v4986_v9 = vld [vmem:[#allocation2 + $0x8] sm:$0xff] }
  0xb7   : > { %v687_v0 = vpop.f32.mrf.mxu3 }
  0xb8   : > { %v706_v1 = vpack.c.bf16 %v687_v0, %v687_v0  ;;  %v785_v2 = vpop.f32.mrf.mxu2 }
  0xb9   : > { %v804_v3 = vpack.c.bf16 %v785_v2, %v785_v2  ;;  %v664_v4 = vpop.f32.mrf.mxu0  ;;  %v5007_v8 = vld [vmem:[#allocation2 + $0x30] sm:$0xff] }
  0xba   : > { %723 = vst.msk [vmem:[#allocation2 + $0x38] sm:$0xf] %vm708_vm1, %v706_v1  ;;  %v697_v5 = vpack.c.bf16 %v664_v4, %v664_v4  ;;  %v762_v6 = vpop.f32.mrf.mxu1  ;;  %v4975_v20 = vld [vmem:[#allocation2 + $0x30] sm:$0xff] }
  0xbb   : > { %820 = vst.msk [vmem:[#allocation3 + $0x38] sm:$0xf] %vm708_vm1, %v804_v3  ;;  %v795_v7 = vpack.c.bf16 %v762_v6, %v762_v6  ;;  %v4991_v31 = vld [vmem:[#allocation2 + $0x30] sm:$0xff] }
  0xbc   : > { %714 = vst.msk [vmem:[#allocation2 + $0x14] sm:$0xf] %vm708_vm1, %v697_v5  ;;  %2689 = vrot.lane.b32.xlu1 %v5007_v8, %s5421_s18  ;;  %v4967_v32 = vld [vmem:[#allocation3 + $0x30] sm:$0xff] }
  0xbd   : > { %811 = vst.msk [vmem:[#allocation3 + $0x14] sm:$0xf] %vm708_vm1, %v795_v7  ;;  %2132 = vrot.lane.b32.xlu0 %v4986_v9, %s5420_s17  ;;  %v4959_v33 = vld [vmem:[#allocation2 + $0x30] sm:$0xff]  ;;  %v4978_v7 = vld [vmem:[#allocation3 + $0x8] sm:$0xff] }
  0xbe   : > { %v1176_v41 = vsel %vm1132_vm2, %v4959_v33, 0  ;;  %v5015_v52 = vld [vmem:[#allocation3 + $0x30] sm:$0xff] }
  0xbf   : > { %v689_v10 = vpop.f32.mrf.mxu3  ;;  %v4983_v59 = vld [vmem:[#allocation3 + $0x30] sm:$0xff] }
  0xc0   : > { %v707_v11 = vpack.c.bf16 %v689_v10, %v689_v10  ;;  %v787_v12 = vpop.f32.mrf.mxu2 }
  0xc1   : > { %v805_v13 = vpack.c.bf16 %v787_v12, %v787_v12  ;;  %v667_v14 = vpop.f32.mrf.mxu0 }
  0xc2   : > { %724 = vst.msk [vmem:[#allocation2 + $0x3c] sm:$0xf] %vm708_vm1, %v707_v11  ;;  %v698_v15 = vpack.c.bf16 %v667_v14, %v667_v14  ;;  %v765_v16 = vpop.f32.mrf.mxu1  ;;  %v4962_v11 = vld [vmem:[#allocation3 + $0x8] sm:$0xff] }
  0xc3   : > { %821 = vst.msk [vmem:[#allocation3 + $0x3c] sm:$0xf] %vm708_vm1, %v805_v13  ;;  %v796_v17 = vpack.c.bf16 %v765_v16, %v765_v16  ;;  %v4987_v18 = vld [vmem:[#allocation2 + $0x10] sm:$0xff]  ;;  %v4961_v16 = vld [vmem:[#allocation3] sm:$0xff] }
  0xc4   : > { %v4971_v19 = vld [vmem:[#allocation2 + $0x10] sm:$0xff]  ;;  %715 = vst.msk [vmem:[#allocation2 + $0x18] sm:$0xf] %vm708_vm1, %v698_v15  ;;  %2134 = vrot.lane.b32.xlu1 %v4987_v18, %s5420_s17 }
  0xc5   : > { %812 = vst.msk [vmem:[#allocation3 + $0x18] sm:$0xf] %vm708_vm1, %v796_v17  ;;  %1587 = vrot.lane.b32.xlu2 %v4971_v19, %s5419_s27  ;;  %1595 = vrot.lane.b32.xlu0 %v4975_v20, %s5419_s27  ;;  %v5003_v30 = vld [vmem:[#allocation2 + $0x10] sm:$0xff]  ;;  %v4954_v20 = vld [vmem:[#allocation2 + $0x8] sm:$0xff] }
  0xc6   : > { %v4979_v47 = vld [vmem:[#allocation3 + $0x10] sm:$0xff] }
  0xc7   : > { %v4963_v6 = vld [vmem:[#allocation3 + $0x10] sm:$0xff] }
  0xc8   : > { %v944_v21 = vpop.f32.mrf.mxu2  ;;  %v4955_v14 = vld [vmem:[#allocation2 + $0x10] sm:$0xff] }
  0xc9   : > { %v669_v22 = vpop.f32.mrf.mxu0  ;;  %v4960_v23 = vld [vmem:[#allocation2 + $0x38] sm:$0xff]  ;;  %v984_v60 = vmul.f32 0.17677669, %v944_v21  ;;  %v1164_v18 = vsel %vm1132_vm2, %v4955_v14, 0 }
  0xca   : > { %v699_v24 = vpack.c.bf16 %v669_v22, %v669_v22  ;;  %v767_v25 = vpop.f32.mrf.mxu1  ;;  %v4968_v26 = vld [vmem:[#allocation3 + $0x38] sm:$0xff]  ;;  %v1179_v28 = vsel %vm1132_vm2, %v4960_v23, 0  ;;  %v1161_v23 = vsel %vm1132_vm2, %v4954_v20, 0 }
  0xcb   : > { %v797_v27 = vpack.c.bf16 %v767_v25, %v767_v25  ;;  %1430 = vmatpush.bf16.msrb.mxu0 %v4968_v26  ;;  %1181 = vmatpush.bf16.xpose.msrb.mxu3 %v1179_v28  ;;  %v4976_v39 = vld [vmem:[#allocation2 + $0x38] sm:$0xff]  ;;  %v1000_v1 = vpack.c.bf16 %v984_v60, %v984_v60  ;;  %v4953_v25 = vld [vmem:[#allocation2] sm:$0xff]  ;;  %v5014_v26 = vld [vmem:[#allocation3 + $0x28] sm:$0xff] }
  0xcc   : > { %716 = vst.msk [vmem:[#allocation2 + $0x1c] sm:$0xf] %vm708_vm1, %v699_v24  ;;  %2677 = vrot.lane.b32.xlu1 %v5001_v29, %s5421_s18  ;;  %v4984_v55 = vld [vmem:[#allocation3 + $0x38] sm:$0xff]  ;;  %v1158_v29 = vsel %vm1132_vm2, %v4953_v25, 0 }
  0xcd   : > { %813 = vst.msk [vmem:[#allocation3 + $0x1c] sm:$0xf] %vm708_vm1, %v797_v27  ;;  %2681 = vrot.lane.b32.xlu2 %v5003_v30, %s5421_s18  ;;  %2142 = vrot.lane.b32.xlu0 %v4991_v31, %s5420_s17  ;;  %v5008_v56 = vld [vmem:[#allocation2 + $0x38] sm:$0xff]  ;;  %v1068_v8 = vunpack.c.l.b16 %v1000_v1 }
  0xce   : > { %v4992_v17 = vld [vmem:[#allocation2 + $0x38] sm:$0xff] }
  0xcf   : > { %1431 = vmatpush.bf16.msrb.mxu0 %v4967_v32  ;;  %v5016_v22 = vld [vmem:[#allocation3 + $0x38] sm:$0xff] }
  0xd0   : > { %v946_v34 = vpop.f32.mrf.mxu2 }
  0xd1   : > { %v672_v35 = vpop.f32.mrf.mxu0  ;;  %v985_v62 = vmul.f32 0.17677669, %v946_v34 }
  0xd2   : > { %v700_v36 = vpack.c.bf16 %v672_v35, %v672_v35  ;;  %v770_v37 = vpop.f32.mrf.mxu1 }
  0xd3   : > { %v798_v40 = vpack.c.bf16 %v770_v37, %v770_v37  ;;  %1432 = vmatpush.bf16.msrb.mxu0 %v4966_v38  ;;  %1182 = vmatpush.bf16.xpose.msrb.mxu3 %v1176_v41  ;;  %v1001_v2 = vpack.c.bf16 %v985_v62, %v985_v62  ;;  %v4956_v3 = vld [vmem:[#allocation2 + $0x18] sm:$0xff] }
  0xd4   : > { %717 = vst.msk [vmem:[#allocation2 + $0x20] sm:$0xf] %vm708_vm1, %v700_v36  ;;  %1888 = vrot.lane.b32.xlu1 %v4977_v42, %s5419_s27  ;;  %v4964_v63 = vld [vmem:[#allocation3 + $0x18] sm:$0xff]  ;;  %v1167_v10 = vsel %vm1132_vm2, %v4956_v3, 0  ;;  %v4999_v36 = vld [vmem:[#allocation3 + $0x30] sm:$0xff] }
  0xd5   : > { %814 = vst.msk [vmem:[#allocation3 + $0x20] sm:$0xf] %vm708_vm1, %v798_v40  ;;  %1898 = vrot.lane.b32.xlu2 %v4982_v43, %s5419_s27  ;;  %1597 = vrot.lane.b32.xlu0 %v4976_v39, %s5419_s27  ;;  %v4988_v4 = vld [vmem:[#allocation2 + $0x18] sm:$0xff]  ;;  %v1069_v9 = vunpack.c.l.b16 %v1001_v2 }
  0xd6   : > { %v4972_v5 = vld [vmem:[#allocation2 + $0x18] sm:$0xff] }
  0xd7   : > { %v1084_v13 = vpack.c.b16 %v1069_v9, %v1068_v8  ;;  %v4980_v15 = vld [vmem:[#allocation3 + $0x18] sm:$0xff] }
  0xd8   : > { %v5645_v45 = vpop.f32.mrf.mxu2  ;;  %v5004_v28 = vld [vmem:[#allocation2 + $0x18] sm:$0xff] }
  0xd9   : > { %v674_v46 = vpop.f32.mrf.mxu0  ;;  %v986_v30 = vmul.f32 0.17677669, %v5645_v45  ;;  %v5012_v20 = vld [vmem:[#allocation3 + $0x18] sm:$0xff] }
  0xda   : > { %v701_v48 = vpack.c.bf16 %v674_v46, %v674_v46  ;;  %v772_v49 = vpop.f32.mrf.mxu1 }
  0xdb   : > { %v799_v50 = vpack.c.bf16 %v772_v49, %v772_v49  ;;  %1183 = vmatpush.bf16.xpose.msrb.mxu3 %v1173_v51  ;;  %v1002_v34 = vpack.c.bf16 %v986_v30, %v986_v30 }
  0xdc   : > { %718 = vst.msk [vmem:[#allocation2 + $0x24] sm:$0xf] %vm708_vm1, %v701_v48  ;;  %2994 = vrot.lane.b32.xlu1 %v5015_v52, %s5421_s18 }
  0xdd   : > { %815 = vst.msk [vmem:[#allocation3 + $0x24] sm:$0xf] %vm708_vm1, %v799_v50  ;;  %1892 = vrot.lane.b32.xlu2 %v4979_v47, %s5419_s27  ;;  %2130 = vrot.lane.b32.xlu0 %v4985_v53, %s5420_s17  ;;  %v1070_v37 = vunpack.c.l.b16 %v1002_v34 }
  0xe0   : > { %v5653_v54 = vpop.f32.mrf.mxu2 }
  0xe1   : > { %v987_v31 = vmul.f32 0.17677669, %v5653_v54 }
  0xe3   : > { %v4957_v57 = vld [vmem:[#allocation2 + $0x20] sm:$0xff]  ;;  %v1003_v35 = vpack.c.bf16 %v987_v31, %v987_v31 }
  0xe4   : > { %v4965_v58 = vld [vmem:[#allocation3 + $0x20] sm:$0xff]  ;;  %1902 = vrot.lane.b32.xlu1 %v4984_v55, %s5419_s27  ;;  %v1170_v61 = vsel %vm1132_vm2, %v4957_v57, 0 }
  0xe5   : > { %2691 = vrot.lane.b32.xlu2 %v5008_v56, %s5421_s18  ;;  %1433 = vmatpush.bf16.msrb.mxu0 %v4965_v58  ;;  %v4973_v21 = vld [vmem:[#allocation2 + $0x20] sm:$0xff]  ;;  %v1071_v38 = vunpack.c.l.b16 %v1003_v35 }
  0xe6   : > { %1900 = vrot.lane.b32.xlu0 %v4983_v59, %s5419_s27  ;;  %1184 = vmatpush.bf16.xpose.msrb.mxu3 %v1170_v61  ;;  %v4989_v27 = vld [vmem:[#allocation2 + $0x20] sm:$0xff] }
  0xe7   : > { %v5013_v33 = vld [vmem:[#allocation3 + $0x20] sm:$0xff]  ;;  %v1085_v42 = vpack.c.b16 %v1071_v38, %v1070_v37 }
  0xe8   : > { %v5659_v0 = vpop.f32.mrf.mxu2  ;;  %v5005_v46 = vld [vmem:[#allocation2 + $0x20] sm:$0xff] }
  0xe9   : > { %1434 = vmatpush.bf16.msrb.mxu0 %v4964_v63  ;;  %v988_v47 = vmul.f32 0.17677669, %v5659_v0  ;;  %v4981_v57 = vld [vmem:[#allocation3 + $0x20] sm:$0xff] }
  0xeb   : > { %v1004_v55 = vpack.c.bf16 %v988_v47, %v988_v47 }
  0xec   : > { %2136 = vrot.lane.b32.xlu1 %v4988_v4, %s5420_s17 }
  0xed   : > { %1589 = vrot.lane.b32.xlu2 %v4972_v5, %s5419_s27  ;;  %1435 = vmatpush.bf16.msrb.mxu0 %v4963_v6  ;;  %v1072_v61 = vunpack.c.l.b16 %v1004_v55 }
  0xee   : > { %1890 = vrot.lane.b32.xlu0 %v4978_v7, %s5419_s27  ;;  %1185 = vmatpush.bf16.xpose.msrb.mxu3 %v1167_v10 }
  0xf0   : > { %v956_v12 = vpop.f32.mrf.mxu2 }
  0xf1   : > { %1436 = vmatpush.bf16.msrb.mxu0 %v4962_v11  ;;  %v989_v48 = vmul.f32 0.17677669, %v956_v12  ;;  %v5000_v11 = vld [vmem:[#allocation3 + $0x38] sm:$0xff] }
  0xf3   : > { %v1005_v56 = vpack.c.bf16 %v989_v48, %v989_v48 }
  0xf4   : > { %1894 = vrot.lane.b32.xlu1 %v4980_v15, %s5419_s27 }
  0xf5   : > { %1527 = vrot.lane.b32.xlu2 %v1084_v13, %s5419_s27  ;;  %1437 = vmatpush.bf16.msrb.mxu0 %v4961_v16  ;;  %v1073_v62 = vunpack.c.l.b16 %v1005_v56 }
  0xf6   : > { %2144 = vrot.lane.b32.xlu0 %v4992_v17, %s5420_s17  ;;  %1186 = vmatpush.bf16.xpose.msrb.mxu3 %v1164_v18 }
  0xf7   : > { %v1086_v4 = vpack.c.b16 %v1073_v62, %v1072_v61 }
  0xf8   : > { %v959_v19 = vpop.f32.mrf.mxu2 }
  0xf9   : > { %v990_v39 = vmul.f32 0.17677669, %v959_v19 }
  0xfb   : > { %v1006_v43 = vpack.c.bf16 %v990_v39, %v990_v39 }
  0xfc   : > { %1591 = vrot.lane.b32.xlu1 %v4973_v21, %s5419_s27 }
  0xfd   : > { %2074 = vrot.lane.b32.xlu2 %v1084_v13, %s5420_s17  ;;  %v1074_v49 = vunpack.c.l.b16 %v1006_v43 }
  0xfe   : > { %2996 = vrot.lane.b32.xlu0 %v5016_v22, %s5421_s18  ;;  %1187 = vmatpush.bf16.xpose.msrb.mxu3 %v1161_v23 }
 0x100   : > { %v961_v24 = vpop.f32.mrf.mxu2 }
 0x101   : > { %v991_v40 = vmul.f32 0.17677669, %v961_v24 }
 0x103   : > { %v1007_v45 = vpack.c.bf16 %v991_v40, %v991_v40 }
 0x104   : > { %2992 = vrot.lane.b32.xlu1 %v5014_v26, %s5421_s18  ;;  %v5691_v63 = vpop.permute.xlu2 %2140 }
 0x105   : > { %2138 = vrot.lane.b32.xlu2 %v4989_v27, %s5420_s17  ;;  %v1075_v51 = vunpack.c.l.b16 %v1007_v45  ;;  %v4997_v27 = vld [vmem:[#allocation3 + $0x20] sm:$0xff] }
 0x106   : > { %2683 = vrot.lane.b32.xlu0 %v5004_v28, %s5421_s18  ;;  %1188 = vmatpush.bf16.xpose.msrb.mxu3 %v1158_v29 }
 0x107   : > { %v1087_v58 = vpack.c.b16 %v1075_v51, %v1074_v49 }
 0x108   : > { %v964_v32 = vpop.f32.mrf.mxu2 }
 0x109   : > { %v992_v52 = vmul.f32 0.17677669, %v964_v32 }
 0x10b   : > { %v1008_v59 = vpack.c.bf16 %v992_v52, %v992_v52 }
 0x10c   : > { %2990 = vrot.lane.b32.xlu1 %v5013_v33, %s5421_s18 }
 0x10d   : > { %2447 = vrot.lane.b32.xlu2 %v4999_v36, %s5420_s17  ;;  %4606 = vmatmul.msk.bf16.vlgmr.msrb.gmra.mxu3 %vm1132_vm2, %v1084_v13  ;;  %v1076_v1 = vunpack.c.l.b16 %v1008_v59 }
 0x10e   : > { %2621 = vrot.lane.b32.xlu0 %v1084_v13, %s5421_s18  ;;  %v5699_v6 = vpop.permute.xlu2 %2679 }
 0x110   : > { %v966_v41 = vpop.f32.mrf.mxu2 }
 0x111   : > { %v993_v53 = vmul.f32 0.17677669, %v966_v41 }
 0x113   : > { %v1009_v60 = vpack.c.bf16 %v993_v53, %v993_v53 }
 0x114   : > { %2445 = vrot.lane.b32.xlu1 %v4998_v44, %s5420_s17 }
 0x115   : > { %2623 = vrot.lane.b32.xlu2 %v1085_v42, %s5421_s18  ;;  %v1077_v2 = vunpack.c.l.b16 %v1009_v60 }
 0x116   : > { %2685 = vrot.lane.b32.xlu0 %v5005_v46, %s5421_s18  ;;  %v5687_v50 = vpop.permute.xlu1 %1583 }
 0x117   : > { %v1088_v5 = vpack.c.b16 %v1077_v2, %v1076_v1 }
 0x118   : > { %v969_v54 = vpop.f32.mrf.mxu2 }
 0x119   : > { %v994_v29 = vmul.f32 0.17677669, %v969_v54 }
 0x11b   : > { %v1010_v34 = vpack.c.bf16 %v994_v29, %v994_v29 }
 0x11c   : > { %2076 = vrot.lane.b32.xlu1 %v1085_v42, %s5420_s17 }
 0x11d   : > { %1533 = vrot.lane.b32.xlu2 %v1087_v58, %s5419_s27  ;;  %4607 = vmatmul.msk.bf16.gmra.mxu3 %vm1132_vm2, %v1085_v42  ;;  %v1078_v41 = vunpack.c.l.b16 %v1010_v34 }
 0x11e   : > { %1896 = vrot.lane.b32.xlu0 %v4981_v57, %s5419_s27  ;;  %v5695_v0 = vpop.permute.xlu1 %1593 }
 0x11f   : > { %v5707_v12 = vpop.permute.xlu2 %1587  ;;  %v1639_v57 = vsel %vm1132_vm2, %v5695_v0, 0 }
 0x120   : > { %v971_v3 = vpop.f32.mrf.mxu2 }
 0x121   : > { %v995_v30 = vmul.f32 0.17677669, %v971_v3 }
 0x123   : > { %v1011_v35 = vpack.c.bf16 %v995_v30, %v995_v30 }
 0x124   : > { %1531 = vrot.lane.b32.xlu1 %v1086_v4, %s5419_s27 }
 0x125   : > { %2082 = vrot.lane.b32.xlu2 %v1088_v5, %s5420_s17 }
 0x126   : > { %1529 = vrot.lane.b32.xlu0 %v1085_v42, %s5419_s27  ;;  %v5702_v7 = vpop.permute.xlu1 %2687  ;;  %v1079_v42 = vunpack.c.l.b16 %v1011_v35 }
 0x127   : > { %v5704_v8 = vpop.permute.xlu0 %1585  ;;  %v5721_v24 = vpop.permute.xlu2 %2681 }
 0x128   : > { %v974_v9 = vpop.f32.mrf.mxu2  ;;  %v1089_v47 = vpack.c.b16 %v1079_v42, %v1078_v41 }
 0x129   : > { %v996_v10 = vmul.f32 0.17677669, %v974_v9 }
 0x12b   : > { %v1012_v14 = vpack.c.bf16 %v996_v10, %v996_v10 }
 0x12c   : > { %2625 = vrot.lane.b32.xlu1 %v1086_v4, %s5421_s18 }
 0x12d   : > { %4608 = vmatmul.msk.bf16.gmra.mxu3 %vm1132_vm2, %v1086_v4  ;;  %v1080_v18 = vunpack.c.l.b16 %v1012_v14  ;;  %v2186_v14 = vsel %vm1132_vm2, %v5691_v63, 0 }
 0x12e   : > { %2449 = vrot.lane.b32.xlu0 %v5000_v11, %s5420_s17  ;;  %v5711_v13 = vpop.permute.xlu1 %2689 }
 0x12f   : > { %v5713_v15 = vpop.permute.xlu0 %2132  ;;  %v1899_v37 = vpop.permute.xlu2 %1898 }
 0x130   : > { %v976_v16 = vpop.f32.mrf.mxu2  ;;  %v2174_v34 = vsel %vm1132_vm2, %v5713_v15, 0 }
 0x131   : > { %v997_v17 = vmul.f32 0.17677669, %v976_v16 }
 0x133   : > { %v1013_v19 = vpack.c.bf16 %v997_v17, %v997_v17 }
 0x134   : > { %2080 = vrot.lane.b32.xlu1 %v1087_v58, %s5420_s17 }
 0x135   : > { %v1081_v21 = vunpack.c.l.b16 %v1013_v19 }
 0x136   : > { %2988 = vrot.lane.b32.xlu0 %v5012_v20, %s5421_s18  ;;  %v5717_v22 = vpop.permute.xlu1 %2134 }
 0x137   : > { %v5719_v23 = vpack.c.b16 %v1081_v21, %v1080_v18  ;;  %v1596_v25 = vpop.permute.xlu0 %1595  ;;  %v5736_v49 = vpop.permute.xlu2 %1892  ;;  %v1630_v18 = vsel %vm1132_vm2, %v5707_v12, 0  ;;  %v1624_v12 = vsel %vm1132_vm2, %v5687_v50, 0  ;;  %v2177_v30 = vsel %vm1132_vm2, %v5717_v22, 0 }
 0x138   : > { %v979_v26 = vpop.f32.mrf.mxu2  ;;  %v1642_v53 = vsel %vm1132_vm2, %v1596_v25, 0  ;;  %v2736_v22 = vsel %vm1132_vm2, %v5711_v13, 0  ;;  %v2733_v13 = vsel %vm1132_vm2, %v5702_v7, 0 }
 0x139   : > { %1539 = vrot.lane.b32.xlu2 %v5719_v23, %s5419_s27  ;;  %v998_v28 = vmul.f32 0.17677669, %v979_v26  ;;  %v5779_v26 = vld [vmem:[%s5536_s28] ss:$0 sm:$0xff] }
 0x13b   : > { %v1014_v33 = vpack.c.bf16 %v998_v28, %v998_v28 }
 0x13c   : > { %2627 = vrot.lane.b32.xlu1 %v1087_v58, %s5421_s18 }
 0x13d   : > { %4609 = vmatmul.msk.bf16.gmra.mxu3 %vm1132_vm2, %v1087_v58  ;;  %v1082_v39 = vunpack.c.l.b16 %v1014_v33 }
 0x13e   : > { %2443 = vrot.lane.b32.xlu0 %v4997_v27, %s5420_s17  ;;  %v5728_v31 = vpop.permute.xlu1 %2677 }
 0x13f   : > { %v2143_v32 = vpop.permute.xlu0 %2142  ;;  %v2692_v54 = vpop.permute.xlu2 %2691 }
 0x140   : > { %v981_v36 = vpop.f32.mrf.mxu2  ;;  %v2739_v28 = vsel %vm1132_vm2, %v2692_v54, 0 }
 0x141   : > { %v999_v38 = vmul.f32 0.17677669, %v981_v36 }
 0x143   : > { %v1015_v40 = vpack.c.bf16 %v999_v38, %v999_v38 }
 0x144   : > { %1535 = vrot.lane.b32.xlu1 %v1088_v5, %s5419_s27 }
 0x145   : > { %v1083_v43 = vunpack.c.l.b16 %v1015_v40 }
 0x146   : > { %2078 = vrot.lane.b32.xlu0 %v1086_v4, %s5420_s17  ;;  %v5732_v44 = vpop.permute.xlu1 %1888 }
 0x147   : > { %v1598_v45 = vpop.permute.xlu0 %1597  ;;  %v1091_v46 = vpack.c.b16 %v1083_v43, %v1082_v39  ;;  %v1590_v59 = vpop.permute.xlu2 %1589 }
 0x148   : > { %v1645_v48 = vsel %vm1132_vm2, %v1598_v45, 0  ;;  %v1633_v11 = vsel %vm1132_vm2, %v1590_v59, 0 }
 0x149   : > { %1647 = vmatpush.bf16.xpose.msrb.mxu1 %v1645_v48  ;;  %2088 = vrot.lane.b32.xlu2 %v1091_v46, %s5420_s17 }
 0x14c   : > { %2084 = vrot.lane.b32.xlu1 %v1089_v47, %s5420_s17 }
 0x14d   : > { %4610 = vmatmul.msk.bf16.gmra.mxu3 %vm1132_vm2, %v1088_v5 }
 0x14e   : > { %2629 = vrot.lane.b32.xlu0 %v1088_v5, %s5421_s18  ;;  %v5741_v51 = vpop.permute.xlu1 %2994  ;;  %v2189_v5 = vsel %vm1132_vm2, %v2143_v32, 0 }
 0x14f   : > { %v5743_v52 = vpop.permute.xlu0 %2130  ;;  %v1528_v1 = vpop.permute.xlu2 %1527 }
 0x150   : > { %v2171_v15 = vsel %vm1132_vm2, %v5743_v52, 0  ;;  %v2724_v52 = vsel %vm1132_vm2, %v5721_v24, 0 }
 0x151   : > { %1648 = vmatpush.bf16.xpose.msrb.mxu1 %v1642_v53 }
 0x154   : > { %2631 = vrot.lane.b32.xlu1 %v1089_v47, %s5421_s18 }
 0x156   : > { %1537 = vrot.lane.b32.xlu0 %v1089_v47, %s5419_s27  ;;  %v1903_v55 = vpop.permute.xlu1 %1902 }
 0x157   : > { %1912 = vmatpush.bf16.msra.mxu2 %v1903_v55  ;;  %v5762_v9 = vpop.permute.xlu2 %2074 }
 0x158   : > { %v1901_v56 = vpop.permute.xlu0 %1900 }
 0x159   : > { %1649 = vmatpush.bf16.xpose.msrb.mxu1 %v1639_v57 }
 0x15b   : > { %1913 = vmatpush.bf16.msra.mxu2 %v1901_v56 }
 0x15c   : > { %2633 = vrot.lane.b32.xlu1 %v5719_v23, %s5421_s18 }
 0x15d   : > { %4611 = vmatmul.msk.bf16.gmra.mxu3 %vm1132_vm2, %v1089_v47 }
 0x15e   : > { %2086 = vrot.lane.b32.xlu0 %v5719_v23, %s5420_s17  ;;  %v2137_v58 = vpop.permute.xlu1 %2136 }
 0x15f   : > { %1914 = vmatpush.bf16.msra.mxu2 %v1899_v37  ;;  %v2139_v16 = vpop.permute.xlu2 %2138  ;;  %v2180_v63 = vsel %vm1132_vm2, %v2137_v58, 0  ;;  %v2721_v58 = vsel %vm1132_vm2, %v5699_v6, 0 }
 0x160   : > { %v1891_v60 = vpop.permute.xlu0 %1890  ;;  %v2183_v19 = vsel %vm1132_vm2, %v2139_v16, 0 }
 0x164   : > { %1541 = vrot.lane.b32.xlu1 %v1091_v46, %s5419_s27 }
 0x166   : > { %v1895_v61 = vpop.permute.xlu1 %1894 }
 0x167   : > { %v2448_v40 = vpop.permute.xlu2 %2447 }
 0x168   : > { %v2145_v62 = vpop.permute.xlu0 %2144 }
 0x169   : > { %v2192_v0 = vsel %vm1132_vm2, %v2145_v62, 0  ;;  %v2718_v62 = vsel %vm1132_vm2, %v5728_v31, 0 }
 0x16a   : > { %2194 = vmatpush.bf16.xpose.msra.mxu3 %v2192_v0 }
 0x16c   : > { %2635 = vrot.lane.b32.xlu1 %v1091_v46, %s5421_s18 }
 0x16d   : > { %4612 = vmatmul.msk.bf16.gmra.mxu3 %vm1132_vm2, %v5719_v23  ;;  %v1627_v23 = vsel %vm1132_vm2, %v5704_v8, 0 }
 0x16e   : > { %v1592_v2 = vpop.permute.xlu1 %1591 }
 0x16f   : > { %v1636_v4 = vsel %vm1132_vm2, %v1592_v2, 0  ;;  %v5834_v55 = vpop.permute.xlu2 %2623 }
 0x170   : > { %v2997_v3 = vpop.permute.xlu0 %2996  ;;  %1650 = vmatpush.bf16.xpose.msrb.mxu1 %v1636_v4 }
 0x172   : > { %2195 = vmatpush.bf16.xpose.msra.mxu3 %v2189_v5 }
 0x176   : > { %v2993_v20 = vpop.permute.xlu1 %2992 }
 0x177   : > { %v1534_v24 = vpop.permute.xlu2 %1533 }
 0x178   : > { %v5764_v10 = vpop.permute.xlu0 %2683  ;;  %1651 = vmatpush.bf16.xpose.msrb.mxu1 %v1633_v11 }
 0x179   : > { %v2727_v48 = vsel %vm1132_vm2, %v5764_v10, 0 }
 0x17a   : > { %2196 = vmatpush.bf16.xpose.msra.mxu3 %v2186_v14 }
 0x17d   : > { %4613 = vmatmul.msk.bf16.gmra.mxu3 %vm1132_vm2, %v1091_v46 }
 0x17e   : > { %v2991_v25 = vpop.permute.xlu1 %2990 }
 0x17f   : > { %v2083_v16 = vpop.permute.xlu2 %2082 }
 0x180   : > { %v5770_v17 = vpop.permute.xlu0 %2621  ;;  %1652 = vmatpush.bf16.xpose.msrb.mxu1 %v1630_v18 }
 0x182   : > { %2197 = vmatpush.bf16.xpose.msra.mxu3 %v2183_v19 }
 0x186   : > { %v2446_v32 = vpop.permute.xlu1 %2445 }
 0x188   : > { %v2686_v21 = vpop.permute.xlu0 %2685  ;;  %1653 = vmatpush.bf16.xpose.msrb.mxu1 %v1627_v23 }
 0x189   : > { %v2730_v43 = vsel %vm1132_vm2, %v2686_v21, 0 }
 0x18a   : > { %2198 = vmatpush.bf16.xpose.msra.mxu3 %v2180_v63 }
 0x18e   : > { %v2077_v37 = vpop.permute.xlu1 %2076 }
 0x190   : > { %v1897_v27 = vpop.permute.xlu0 %1896  ;;  %v1190_v29 = vpop.f32.mrf.mxu3  ;;  %1654 = vmatpush.bf16.xpose.msrb.mxu1 %v1624_v12 }
 0x191   : > { %1915 = vmatpush.bf16.msra.mxu2 %v1897_v27  ;;  %v5787_v8 = vadd.f32 %v5779_v26, %v1190_v29 }
 0x192   : > { %2199 = vmatpush.bf16.xpose.msra.mxu3 %v2177_v30 }
 0x195   : > { %1916 = vmatpush.bf16.msra.mxu2 %v1895_v61 }
 0x196   : > { %1230 = vmax.xlane.f32.xlu1 %v5787_v8 }
 0x197   : > { %4678 = vmatmul.msk.bf16.vlgmr.msrb.gmra.mxu1 %vm1132_vm2, %v1528_v1 }
 0x198   : > { %2741 = vmatpush.bf16.xpose.msra.mxu1 %v2739_v28  ;;  %v1530_v33 = vpop.permute.xlu0 %1529  ;;  %v1192_v50 = vpop.f32.mrf.mxu3 }
 0x199   : > { %1917 = vmatpush.bf16.msra.mxu2 %v5736_v49  ;;  %v5797_v35 = vadd.f32 %v5779_v26, %v1192_v50 }
 0x19a   : > { %2200 = vmatpush.bf16.xpose.msra.mxu3 %v2174_v34 }
 0x19b   : > { %1232 = vmax.xlane.f32.xlu2 %v5797_v35 }
 0x19d   : > { %1918 = vmatpush.bf16.msra.mxu2 %v1891_v60 }
 0x1a0   : > { %2742 = vmatpush.bf16.xpose.msra.mxu1 %v2736_v22  ;;  %v2450_v36 = vpop.permute.xlu0 %2449  ;;  %v1195_v38 = vpop.f32.mrf.mxu3 }
 0x1a1   : > { %1919 = vmatpush.bf16.msra.mxu2 %v5732_v44  ;;  %2459 = vmatpush.bf16.msra.mxu0 %v2450_v36  ;;  %v5804_v39 = vadd.f32 %v5779_v26, %v1195_v38  ;;  %v1532_v44 = vpop.permute.xlu1 %1531 }
 0x1a2   : > { %2201 = vmatpush.bf16.xpose.msra.mxu3 %v2171_v15 }
 0x1a3   : > { %1234 = vmax.xlane.f32.xlu1 %v5804_v39 }
 0x1a5   : > { %3006 = vmatpush.bf16.msrb.mxu2 %v2997_v3  ;;  %2460 = vmatpush.bf16.msra.mxu0 %v2448_v40 }
 0x1a7   : > { %4679 = vmatmul.msk.bf16.gmra.mxu1 %vm1132_vm2, %v1530_v33 }
 0x1a8   : > { %2743 = vmatpush.bf16.xpose.msra.mxu1 %v2733_v13  ;;  %v2989_v41 = vpop.permute.xlu0 %2988  ;;  %v1197_v42 = vpop.f32.mrf.mxu3 }
 0x1a9   : > { %3007 = vmatpush.bf16.msrb.mxu2 %v5741_v51  ;;  %4750 = vmatmul.msk.bf16.vlgmr.msra.gmra.mxu3 %vm1132_vm2, %v5762_v9  ;;  %v5815_v7 = vadd.f32 %v5779_v26, %v1197_v42  ;;  %v5824_v49 = vpop.permute.xlu1 %2625 }
 0x1aa   : > { %2461 = vmatpush.bf16.msra.mxu0 %v2446_v32 }
 0x1ab   : > { %1236 = vmax.xlane.f32.xlu1 %v5815_v7 }
 0x1ad   : > { %3008 = vmatpush.bf16.msrb.mxu2 %v2993_v20 }
 0x1b0   : > { %2744 = vmatpush.bf16.xpose.msra.mxu1 %v2730_v43  ;;  %v2444_v45 = vpop.permute.xlu0 %2443  ;;  %v1200_v46 = vpop.f32.mrf.mxu3 }
 0x1b1   : > { %3009 = vmatpush.bf16.msrb.mxu2 %v2991_v25  ;;  %2462 = vmatpush.bf16.msra.mxu0 %v2444_v45  ;;  %v5819_v47 = vadd.f32 %v5779_v26, %v1200_v46  ;;  %v2081_v54 = vpop.permute.xlu1 %2080  ;;  %v1540_v25 = vpop.permute.xlu2 %1539 }
 0x1b3   : > { %1238 = vmax.xlane.f32.xlu2 %v5819_v47 }
 0x1b5   : > { %3010 = vmatpush.bf16.msrb.mxu2 %v2989_v41 }
 0x1b7   : > { %4680 = vmatmul.msk.bf16.gmra.mxu1 %vm1132_vm2, %v1532_v44 }
 0x1b8   : > { %2745 = vmatpush.bf16.xpose.msra.mxu1 %v2727_v48  ;;  %v1202_v51 = vpop.f32.mrf.mxu3  ;;  %v2079_v59 = vpop.permute.xlu0 %2078 }
 0x1b9   : > { %4751 = vmatmul.msk.bf16.gmra.mxu3 %vm1132_vm2, %v2077_v37  ;;  %v5831_v53 = vadd.f32 %v5779_v26, %v1202_v51  ;;  %v5843_v60 = vpop.permute.xlu1 %2627  ;;  %v2089_v36 = vpop.permute.xlu2 %2088 }
 0x1bb   : > { %1240 = vmax.xlane.f32.xlu1 %v5831_v53 }
 0x1c0   : > { %2746 = vmatpush.bf16.xpose.msra.mxu1 %v2724_v52  ;;  %v1205_v56 = vpop.f32.mrf.mxu3  ;;  %v5862_v5 = vpop.permute.xlu0 %2629 }
 0x1c1   : > { %v5837_v57 = vadd.f32 %v5779_v26, %v1205_v56  ;;  %v1536_v6 = vpop.permute.xlu1 %1535 }
 0x1c3   : > { %1242 = vmax.xlane.f32.xlu0 %v5837_v57 }
 0x1c7   : > { %4681 = vmatmul.msk.bf16.gmra.mxu1 %vm1132_vm2, %v1534_v24 }
 0x1c8   : > { %2747 = vmatpush.bf16.xpose.msra.mxu1 %v2721_v58  ;;  %v1207_v61 = vpop.f32.mrf.mxu3  ;;  %v1538_v14 = vpop.permute.xlu0 %1537 }
 0x1c9   : > { %4752 = vmatmul.msk.bf16.gmra.mxu3 %vm1132_vm2, %v2079_v59  ;;  %v5849_v0 = vadd.f32 %v5779_v26, %v1207_v61  ;;  %v2085_v4 = vpop.permute.xlu1 %2084 }
 0x1cb   : > { %1244 = vmax.xlane.f32.xlu2 %v5849_v0 }
 0x1d0   : > { %2748 = vmatpush.bf16.xpose.msra.mxu1 %v2718_v62  ;;  %v1210_v1 = vpop.f32.mrf.mxu3  ;;  %v2087_v29 = vpop.permute.xlu0 %2086 }
 0x1d1   : > { %v5853_v2 = vadd.f32 %v5779_v26, %v1210_v1  ;;  %v5868_v11 = vpop.permute.xlu1 %2631 }
 0x1d3   : > { %1246 = vmax.xlane.f32.xlu0 %v5853_v2 }
 0x1d7   : > { %4682 = vmatmul.msk.bf16.gmra.mxu1 %vm1132_vm2, %v1536_v6 }
 0x1d8   : > { %v1212_v3 = vpop.f32.mrf.mxu3 }
 0x1d9   : > { %4753 = vmatmul.msk.bf16.gmra.mxu3 %vm1132_vm2, %v2081_v54  ;;  %v5859_v31 = vadd.f32 %v5779_v26, %v1212_v3  ;;  %v5876_v20 = vpop.permute.xlu1 %2633 }
 0x1db   : > { %1248 = vmax.xlane.f32.xlu0 %v5859_v31 }
 0x1e0   : > { %v1215_v9 = vpop.f32.mrf.mxu3 }
 0x1e1   : > { %v5865_v10 = vadd.f32 %v5779_v26, %v1215_v9  ;;  %v1542_v63 = vpop.permute.xlu1 %1541 }
 0x1e3   : > { %1250 = vmax.xlane.f32.xlu1 %v5865_v10 }
 0x1e7   : > { %4683 = vmatmul.msk.bf16.gmra.mxu1 %vm1132_vm2, %v1538_v14 }
 0x1e8   : > { %v1217_v18 = vpop.f32.mrf.mxu3 }
 0x1e9   : > { %4754 = vmatmul.msk.bf16.gmra.mxu3 %vm1132_vm2, %v2083_v16  ;;  %v5873_v19 = vadd.f32 %v5779_v26, %v1217_v18  ;;  %v5888_v28 = vpop.permute.xlu1 %2635 }
 0x1eb   : > { %1252 = vmax.xlane.f32.xlu2 %v5873_v19 }
 0x1f0   : > { %v1220_v21 = vpop.f32.mrf.mxu3 }
 0x1f1   : > { %v5879_v23 = vadd.f32 %v5779_v26, %v1220_v21 }
 0x1f3   : > { %1254 = vmax.xlane.f32.xlu0 %v5879_v23 }
 0x1f7   : > { %4684 = vmatmul.msk.bf16.gmra.mxu1 %vm1132_vm2, %v1540_v25 }
 0x1f8   : > { %v1222_v27 = vpop.f32.mrf.mxu3 }
 0x1f9   : > { %4755 = vmatmul.msk.bf16.gmra.mxu3 %vm1132_vm2, %v2085_v4  ;;  %v5885_v12 = vadd.f32 %v5779_v26, %v1222_v27 }
 0x1fb   : > { %1256 = vmax.xlane.f32.xlu1 %v5885_v12 }
 0x200   : > { %v1225_v37 = vpop.f32.mrf.mxu3 }
 0x201   : > { %v5904_v38 = vadd.f32 %v5779_v26, %v1225_v37 }
 0x207   : > { %4685 = vmatmul.msk.bf16.gmra.mxu1 %vm1132_vm2, %v1542_v63 }
 0x208   : > { %v1227_v40 = vpop.f32.mrf.mxu3 }
 0x209   : > { %4756 = vmatmul.msk.bf16.gmra.mxu3 %vm1132_vm2, %v2087_v29  ;;  %v1231_v30 = vpop.xlane.xlu1 %1230  ;;  %v5915_v43 = vadd.f32 %v5779_v26, %v1227_v40 }
 0x20a   : > { %v1262_v32 = vsub.f32 %v5787_v8, %v1231_v30 }
 0x20c   : > { %v1278_v33 = vmul.f32 1.442695, %v1262_v32 }
 0x20e   : > { %5070 = vpow2.f32 %v1278_v33  ;;  %v1233_v41 = vpop.xlane.xlu2 %1232 }
 0x20f   : > { %v1263_v44 = vsub.f32 %v5797_v35, %v1233_v41 }
 0x211   : > { %v1280_v45 = vmul.f32 1.442695, %v1263_v44 }
 0x213   : > { %5072 = vpow2.f32 %v1280_v45 }
 0x214   : > { %v5893_v50 = vpop.eup %5070  ;;  %v1656_v34 = vpop.f32.mrf.mxu1 }
 0x215   : > { %v5896_v22 = vadd.f32 %v5779_v26, %v1656_v34  ;;  %1310 = vadd.xlane.f32.xlu1 %v5893_v50 }
 0x216   : > { %v1235_v13 = vpop.xlane.xlu1 %1234 }
 0x217   : > { %1696 = vmax.xlane.f32.xlu2 %v5896_v22  ;;  %4822 = vmatmul.msk.bf16.vlgmr.msra.gmra.mxu1 %vm1132_vm2, %v5770_v17 }
 0x219   : > { %4757 = vmatmul.msk.bf16.gmra.mxu3 %vm1132_vm2, %v2089_v36  ;;  %v5935_v62 = vpop.eup %5072 }
 0x21c   : > { %v1658_v8 = vpop.f32.mrf.mxu1 }
 0x21d   : > { %v5907_v15 = vadd.f32 %v5779_v26, %v1658_v8 }
 0x21e   : > { %v1237_v48 = vpop.xlane.xlu1 %1236 }
 0x21f   : > { %1698 = vmax.xlane.f32.xlu0 %v5907_v15  ;;  %1258 = vmax.xlane.f32.xlu2 %v5904_v38  ;;  %v1265_v35 = vsub.f32 %v5815_v7, %v1237_v48 }
 0x221   : > { %v1284_v56 = vmul.f32 1.442695, %v1265_v35 }
 0x223   : > { %5074 = vpow2.f32 %v1284_v56 }
 0x224   : > { %v1661_v42 = vpop.f32.mrf.mxu1 }
 0x225   : > { %v5912_v17 = vadd.f32 %v5779_v26, %v1661_v42 }
 0x226   : > { %v1239_v25 = vpop.xlane.xlu2 %1238 }
 0x227   : > { %4823 = vmatmul.msk.bf16.gmra.mxu1 %vm1132_vm2, %v5834_v55  ;;  %1260 = vmax.xlane.f32.xlu0 %v5915_v43  ;;  %v1264_v55 = vsub.f32 %v5804_v39, %v1235_v13  ;;  %v1266_v30 = vsub.f32 %v5819_v47, %v1239_v25 }
 0x228   : > { %1700 = vmax.xlane.f32.xlu2 %v5912_v17 }
 0x229   : > { %v1282_v24 = vmul.f32 1.442695, %v1264_v55  ;;  %v5945_v3 = vpop.eup %5074  ;;  %v1286_v34 = vmul.f32 1.442695, %v1266_v30 }
 0x22b   : > { %5076 = vpow2.f32 %v1282_v24 }
 0x22c   : > { %v2203_v46 = vpop.f32.mrf.mxu3  ;;  %v1663_v52 = vpop.f32.mrf.mxu1 }
 0x22d   : > { %v5923_v51 = vadd.f32 %v5779_v26, %v2203_v46  ;;  %v5926_v54 = vadd.f32 %v5779_v26, %v1663_v52 }
 0x22e   : > { %v1241_v7 = vpop.xlane.xlu1 %1240 }
 0x22f   : > { %2243 = vmax.xlane.f32.xlu1 %v5923_v51  ;;  %1702 = vmax.xlane.f32.xlu0 %v5926_v54  ;;  %v1267_v16 = vsub.f32 %v5831_v53, %v1241_v7 }
 0x231   : > { %v5950_v9 = vpop.eup %5076 }
 0x234   : > { %v2205_v58 = vpop.f32.mrf.mxu3  ;;  %v1666_v59 = vpop.f32.mrf.mxu1 }
 0x235   : > { %v5933_v61 = vadd.f32 %v5779_v26, %v2205_v58  ;;  %v5938_v6 = vadd.f32 %v5779_v26, %v1666_v59 }
 0x236   : > { %v1243_v14 = vpop.xlane.xlu0 %1242 }
 0x237   : > { %1312 = vadd.xlane.f32.xlu1 %v5935_v62  ;;  %2245 = vmax.xlane.f32.xlu2 %v5933_v61  ;;  %v1268_v35 = vsub.f32 %v5837_v57, %v1243_v14 }
 0x238   : > { %4824 = vmatmul.msk.bf16.gmra.mxu1 %vm1132_vm2, %v5824_v49  ;;  %1704 = vmax.xlane.f32.xlu0 %v5938_v6  ;;  %v1288_v49 = vmul.f32 1.442695, %v1267_v16 }
 0x23a   : > { %5078 = vpow2.f32 %v1288_v49 }
 0x23c   : > { %v2208_v39 = vpop.f32.mrf.mxu3  ;;  %v1668_v1 = vpop.f32.mrf.mxu1 }
 0x23d   : > { %v5948_v4 = vadd.f32 %v5779_v26, %v1668_v1  ;;  %v5960_v27 = vadd.f32 %v5779_v26, %v2208_v39 }
 0x23e   : > { %v1245_v40 = vpop.xlane.xlu2 %1244 }
 0x23f   : > { %1316 = vadd.xlane.f32.xlu1 %v5945_v3  ;;  %1706 = vmax.xlane.f32.xlu2 %v5948_v4  ;;  %v1269_v42 = vsub.f32 %v5849_v0, %v1245_v40 }
 0x240   : > { %1314 = vadd.xlane.f32.xlu0 %v5950_v9  ;;  %v5971_v8 = vpop.eup %5078 }
 0x241   : > { %v1292_v45 = vmul.f32 1.442695, %v1269_v42 }
 0x244   : > { %v2210_v18 = vpop.f32.mrf.mxu3  ;;  %v1671_v21 = vpop.f32.mrf.mxu1 }
 0x245   : > { %v5957_v63 = vadd.f32 %v5779_v26, %v2210_v18  ;;  %v5974_v13 = vadd.f32 %v5779_v26, %v1671_v21 }
 0x246   : > { %v1247_v29 = vpop.xlane.xlu0 %1246 }
 0x247   : > { %2249 = vmax.xlane.f32.xlu1 %v5957_v63  ;;  %v1270_v53 = vsub.f32 %v5853_v2, %v1247_v29 }
 0x248   : > { %4825 = vmatmul.msk.bf16.gmra.mxu1 %vm1132_vm2, %v5843_v60  ;;  %2247 = vmax.xlane.f32.xlu0 %v5960_v27 }
 0x249   : > { %v1294_v32 = vmul.f32 1.442695, %v1270_v53 }
 0x24b   : > { %5080 = vpow2.f32 %v1294_v32 }
 0x24c   : > { %v2213_v33 = vpop.f32.mrf.mxu3  ;;  %v1673_v37 = vpop.f32.mrf.mxu1  ;;  %5082 = vpow2.f32 %v1286_v34 }
 0x24d   : > { %v5969_v36 = vadd.f32 %v5779_v26, %v2213_v33  ;;  %v5980_v60 = vadd.f32 %v5779_v26, %v1673_v37  ;;  %5084 = vpow2.f32 %v1292_v45 }
 0x24e   : > { %v1249_v55 = vpop.xlane.xlu0 %1248 }
 0x24f   : > { %1320 = vadd.xlane.f32.xlu1 %v5971_v8  ;;  %2251 = vmax.xlane.f32.xlu2 %v5969_v36  ;;  %v1271_v39 = vsub.f32 %v5859_v31, %v1249_v55 }
 0x250   : > { %1708 = vmax.xlane.f32.xlu0 %v5974_v13 }
 0x251   : > { %v5982_v2 = vpop.eup %5080  ;;  %v1296_v1 = vmul.f32 1.442695, %v1271_v39 }
 0x252   : > { %v5984_v41 = vpop.eup %5082 }
 0x253   : > { %v6004_v24 = vpop.eup %5084 }
 0x254   : > { %v1676_v47 = vpop.f32.mrf.mxu1  ;;  %v2215_v44 = vpop.f32.mrf.mxu3 }
 0x255   : > { %v5993_v48 = vadd.f32 %v5779_v26, %v2215_v44  ;;  %v6002_v0 = vadd.f32 %v5779_v26, %v1676_v47 }
 0x256   : > { %v1251_v59 = vpop.xlane.xlu1 %1250 }
 0x257   : > { %1326 = vadd.xlane.f32.xlu1 %v5982_v2  ;;  %1710 = vmax.xlane.f32.xlu2 %v5980_v60  ;;  %v1272_v7 = vsub.f32 %v5865_v10, %v1251_v59 }
 0x258   : > { %4826 = vmatmul.msk.bf16.gmra.mxu1 %vm1132_vm2, %v5862_v5  ;;  %1318 = vadd.xlane.f32.xlu0 %v5984_v41  ;;  %v1290_v5 = vmul.f32 1.442695, %v1268_v35 }
 0x259   : > { %v1298_v18 = vmul.f32 1.442695, %v1272_v7 }
 0x25a   : > { %5086 = vpow2.f32 %v1290_v5 }
 0x25b   : > { %5088 = vpow2.f32 %v1296_v1 }
 0x25c   : > { %v1678_v46 = vpop.f32.mrf.mxu1 }
 0x25d   : > { %v5996_v52 = vadd.f32 %v5779_v26, %v1678_v46 }
 0x25e   : > { %v1253_v58 = vpop.xlane.xlu2 %1252 }
 0x25f   : > { %2253 = vmax.xlane.f32.xlu2 %v5993_v48  ;;  %v1273_v57 = vsub.f32 %v5873_v19, %v1253_v58 }
 0x260   : > { %1714 = vmax.xlane.f32.xlu0 %v5996_v52  ;;  %v6013_v49 = vpop.eup %5086 }
 0x261   : > { %v1300_v14 = vmul.f32 1.442695, %v1273_v57  ;;  %v6024_v19 = vpop.eup %5088 }
 0x263   : > { %5090 = vpow2.f32 %v1300_v14 }
 0x264   : > { %v1681_v56 = vpop.f32.mrf.mxu1  ;;  %5092 = vpow2.f32 %v1298_v18 }
 0x265   : > { %v6016_v21 = vadd.f32 %v5779_v26, %v1681_v56 }
 0x266   : > { %v1255_v10 = vpop.xlane.xlu0 %1254 }
 0x267   : > { %1712 = vmax.xlane.f32.xlu2 %v6002_v0  ;;  %v1274_v30 = vsub.f32 %v5879_v23, %v1255_v10 }
 0x268   : > { %4827 = vmatmul.msk.bf16.gmra.mxu1 %vm1132_vm2, %v5868_v11  ;;  %1324 = vadd.xlane.f32.xlu0 %v6004_v24 }
 0x269   : > { %v6026_v25 = vpop.eup %5090  ;;  %v1302_v33 = vmul.f32 1.442695, %v1274_v30 }
 0x26a   : > { %v6029_v53 = vpop.eup %5092 }
 0x26b   : > { %5094 = vpow2.f32 %v1302_v33 }
 0x26c   : > { %v1683_v16 = vpop.f32.mrf.mxu1 }
 0x26d   : > { %v6019_v31 = vadd.f32 %v5779_v26, %v1683_v16 }
 0x26e   : > { %v1257_v29 = vpop.xlane.xlu1 %1256 }
 0x26f   : > { %1322 = vadd.xlane.f32.xlu2 %v6013_v49  ;;  %1718 = vmax.xlane.f32.xlu1 %v6019_v31  ;;  %v1275_v32 = vsub.f32 %v5885_v12, %v1257_v29 }
 0x270   : > { %1716 = vmax.xlane.f32.xlu0 %v6016_v21 }
 0x271   : > { %v1304_v47 = vmul.f32 1.442695, %v1275_v32  ;;  %v6045_v23 = vpop.eup %5094 }
 0x273   : > { %5096 = vpow2.f32 %v1304_v47 }
 0x274   : > { %v1686_v11 = vpop.f32.mrf.mxu1 }
 0x275   : > { %v6038_v34 = vadd.f32 %v5779_v26, %v1686_v11 }
 0x277   : > { %1328 = vadd.xlane.f32.xlu2 %v6024_v19  ;;  %1332 = vadd.xlane.f32.xlu1 %v6026_v25 }
 0x278   : > { %4828 = vmatmul.msk.bf16.gmra.mxu1 %vm1132_vm2, %v5876_v20  ;;  %1330 = vadd.xlane.f32.xlu0 %v6029_v53 }
 0x279   : > { %v6051_v42 = vpop.eup %5096 }
 0x27c   : > { %v1688_v37 = vpop.f32.mrf.mxu1 }
 0x27d   : > { %v6041_v40 = vadd.f32 %v5779_v26, %v1688_v37 }
 0x27f   : > { %1720 = vmax.xlane.f32.xlu2 %v6038_v34 }
 0x280   : > { %1722 = vmax.xlane.f32.xlu0 %v6041_v40 }
 0x284   : > { %v1691_v20 = vpop.f32.mrf.mxu1 }
 0x285   : > { %v6048_v12 = vadd.f32 %v5779_v26, %v1691_v20 }
 0x287   : > { %1334 = vadd.xlane.f32.xlu2 %v6045_v23  ;;  %1724 = vmax.xlane.f32.xlu1 %v6048_v12 }
 0x288   : > { %4829 = vmatmul.msk.bf16.gmra.mxu1 %vm1132_vm2, %v5888_v28  ;;  %1336 = vadd.xlane.f32.xlu0 %v6051_v42  ;;  %v1311_v1 = vpop.xlane.xlu1 %1310 }
 0x28a   : > { %v1697_v44 = vpop.xlane.xlu2 %1696 }
 0x28b   : > { %v1728_v45 = vsub.f32 %v5896_v22, %v1697_v44 }
 0x28c   : > { %v1693_v46 = vpop.f32.mrf.mxu1 }
 0x28d   : > { %v1744_v35 = vmul.f32 1.442695, %v1728_v45  ;;  %v6059_v5 = vadd.f32 %v5779_v26, %v1693_v46 }
 0x28f   : > { %5098 = vpow2.f32 %v1744_v35  ;;  %1726 = vmax.xlane.f32.xlu2 %v6059_v5 }
 0x292   : > { %v1699_v55 = vpop.xlane.xlu0 %1698  ;;  %v1259_v56 = vpop.xlane.xlu2 %1258 }
 0x293   : > { %v1729_v58 = vsub.f32 %v5907_v15, %v1699_v55  ;;  %v1276_v28 = vsub.f32 %v5904_v38, %v1259_v56 }
 0x294   : > { %v2750_v59 = vpop.f32.mrf.mxu1 }
 0x295   : > { %v6064_v39 = vpop.eup %5098  ;;  %v1746_v57 = vmul.f32 1.442695, %v1729_v58  ;;  %v1306_v7 = vmul.f32 1.442695, %v1276_v28  ;;  %v6067_v22 = vadd.f32 %v5779_v26, %v2750_v59  ;;  %v2218_v59 = vpop.f32.mrf.mxu3 }
 0x297   : > { %5100 = vpow2.f32 %v1746_v57  ;;  %2790 = vmax.xlane.f32.xlu0 %v6067_v22  ;;  %1776 = vadd.xlane.f32.xlu2 %v6064_v39 }
 0x298   : > { %5102 = vpow2.f32 %v1306_v7 }
 0x29a   : > { %v1261_v14 = vpop.xlane.xlu0 %1260 }
 0x29b   : > { %v1277_v15 = vsub.f32 %v5915_v43, %v1261_v14  ;;  %v1701_v16 = vpop.xlane.xlu2 %1700 }
 0x29c   : > { %v2752_v38 = vpop.f32.mrf.mxu1  ;;  %v1730_v29 = vsub.f32 %v5912_v17, %v1701_v16 }
 0x29d   : > { %v6072_v18 = vpop.eup %5100  ;;  %v1308_v10 = vmul.f32 1.442695, %v1277_v15  ;;  %v6083_v47 = vadd.f32 %v5779_v26, %v2752_v38 }
 0x29e   : > { %v6074_v11 = vpop.eup %5102  ;;  %1778 = vadd.xlane.f32.xlu1 %v6072_v18  ;;  %v1748_v32 = vmul.f32 1.442695, %v1730_v29  ;;  %v6109_v29 = vadd.f32 %v5779_v26, %v2218_v59 }
 0x29f   : > { %5104 = vpow2.f32 %v1308_v10  ;;  %1338 = vadd.xlane.f32.xlu2 %v6074_v11 }
 0x2a0   : > { %5106 = vpow2.f32 %v1748_v32 }
 0x2a2   : > { %v6079_v30 = vpop.xlane.xlu1 %2243  ;;  %v1703_v33 = vpop.xlane.xlu0 %1702 }
 0x2a3   : > { %v1731_v43 = vsub.f32 %v5926_v54, %v1703_v33 }
 0x2a4   : > { %v2755_v37 = vpop.f32.mrf.mxu1 }
 0x2a5   : > { %v6085_v20 = vpop.eup %5104  ;;  %v1750_v44 = vmul.f32 1.442695, %v1731_v43  ;;  %v6088_v17 = vadd.f32 %v5779_v26, %v2755_v37 }
 0x2a6   : > { %2792 = vmax.xlane.f32.xlu1 %v6083_v47  ;;  %1340 = vadd.xlane.f32.xlu0 %v6085_v20  ;;  %v6095_v35 = vpop.eup %5106 }
 0x2a7   : > { %5108 = vpow2.f32 %v1750_v44  ;;  %2794 = vmax.xlane.f32.xlu2 %v6088_v17 }
 0x2a8   : > { %5110 = vrcp.f32 %v1311_v1 }
 0x2aa   : > { %v1313_v54 = vpop.xlane.xlu1 %1312  ;;  %v2246_v45 = vpop.xlane.xlu2 %2245 }
 0x2ab   : > { %5112 = vrcp.f32 %v1313_v54  ;;  %v6093_v46 = vpop.xlane.xlu0 %1704  ;;  %v2276_v33 = vsub.f32 %v5933_v61, %v2246_v45 }
 0x2ac   : > { %v2757_v55 = vpop.f32.mrf.mxu1 }
 0x2ad   : > { %v6097_v56 = vpop.eup %5108  ;;  %v6100_v58 = vadd.f32 %v5779_v26, %v2757_v55 }
 0x2ae   : > { %v5111_v28 = vpop.eup %5110  ;;  %1780 = vadd.xlane.f32.xlu1 %v6095_v35 }
 0x2af   : > { %2796 = vmax.xlane.f32.xlu0 %v6100_v58  ;;  %1782 = vadd.xlane.f32.xlu2 %v6097_v56  ;;  %v1358_v1 = vmul.f32 %v5111_v28, %v5893_v50  ;;  %v2220_v50 = vpop.f32.mrf.mxu3 }
 0x2b1   : > { %v5113_v57 = vpop.eup %5112 }
 0x2b2   : > { %v1317_v7 = vpop.xlane.xlu1 %1316  ;;  %v1359_v14 = vmul.f32 %v5113_v57, %v5935_v62  ;;  %v1707_v16 = vpop.xlane.xlu2 %1706  ;;  %v2293_v62 = vmul.f32 1.442695, %v2276_v33 }
 0x2b3   : > { %v1315_v15 = vpop.xlane.xlu0 %1314  ;;  %v1733_v38 = vsub.f32 %v5948_v4, %v1707_v16  ;;  %v6118_v4 = vadd.f32 %v5779_v26, %v2220_v50 }
 0x2b4   : > { %v1374_v10 = vpack.c.bf16 %v1359_v14, %v1358_v1  ;;  %5114 = vrcp.f32 %v1315_v15  ;;  %v5011_v1 = vld [vmem:[#allocation3 + $0x10] sm:$0xff] }
 0x2b5   : > { %v1754_v32 = vmul.f32 1.442695, %v1733_v38 }
 0x2b6   : > { %1438 = vmatmul.bf16.vlgmr.msrb.gmra.mxu0 %v1374_v10  ;;  %2255 = vmax.xlane.f32.xlu1 %v6109_v29 }
 0x2b7   : > { %5116 = vpow2.f32 %v1754_v32 }
 0x2b8   : > { %5118 = vrcp.f32 %v1317_v7 }
 0x2b9   : > { %5120 = vpow2.f32 %v2293_v62  ;;  %v4996_v62 = vld [vmem:[#allocation3 + $0x18] sm:$0xff] }
 0x2ba   : > { %v5115_v37 = vpop.eup %5114  ;;  %v6115_v44 = vpop.xlane.xlu1 %2249 }
 0x2bb   : > { %v6113_v43 = vpop.xlane.xlu0 %2247  ;;  %v1360_v61 = vmul.f32 %v5115_v37, %v5950_v9 }
 0x2bd   : > { %v6120_v54 = vpop.eup %5116 }
 0x2be   : > { %v5119_v55 = vpop.eup %5118  ;;  %2257 = vmax.xlane.f32.xlu1 %v6118_v4  ;;  %1786 = vadd.xlane.f32.xlu0 %v6120_v54 }
 0x2bf   : > { %v1361_v28 = vmul.f32 %v5119_v55, %v5945_v3  ;;  %v6130_v7 = vpop.eup %5120 }
 0x2c1   : > { %v1375_v57 = vpack.c.bf16 %v1361_v28, %v1360_v61 }
 0x2c2   : > { %v6125_v45 = vpop.xlane.xlu2 %2251  ;;  %v1321_v14 = vpop.xlane.xlu1 %1320 }
 0x2c3   : > { %v6128_v59 = vpop.xlane.xlu0 %1708  ;;  %5122 = vrcp.f32 %v1321_v14 }
 0x2c6   : > { %1443 = vmatmul.bf16.gmra.mxu0 %v1375_v57  ;;  %2325 = vadd.xlane.f32.xlu0 %v6130_v7 }
 0x2c7   : > { %2986 = vrot.lane.b32.xlu2 %v5011_v1, %s5421_s18 }
 0x2c9   : > { %v5123_v9 = vpop.eup %5122 }
 0x2ca   : > { %v1711_v15 = vpop.xlane.xlu2 %1710  ;;  %v1363_v32 = vmul.f32 %v5123_v9, %v5971_v8  ;;  %v1327_v55 = vpop.xlane.xlu1 %1326 }
 0x2cb   : > { %v1319_v16 = vpop.xlane.xlu0 %1318 }
 0x2cc   : > { %5124 = vrcp.f32 %v1319_v16 }
 0x2d2   : > { %v5125_v38 = vpop.eup %5124  ;;  %v6134_v10 = vpop.xlane.xlu2 %2253 }
 0x2d3   : > { %v1362_v3 = vmul.f32 %v5125_v38, %v5984_v41  ;;  %v6138_v33 = vpop.xlane.xlu0 %1714  ;;  %v1732_v41 = vsub.f32 %v5938_v6, %v6093_v46 }
 0x2d5   : > { %v1376_v50 = vpack.c.bf16 %v1363_v32, %v1362_v3  ;;  %v1752_v9 = vmul.f32 1.442695, %v1732_v41  ;;  %v2760_v32 = vpop.f32.mrf.mxu1 }
 0x2d7   : > { %1448 = vmatmul.bf16.gmra.mxu0 %v1376_v50  ;;  %2441 = vrot.lane.b32.xlu1 %v4996_v62, %s5420_s17 }
 0x2da   : > { %v1713_v37 = vpop.xlane.xlu2 %1712 }
 0x2db   : > { %v1736_v61 = vsub.f32 %v6002_v0, %v1713_v37  ;;  %v1325_v57 = vpop.xlane.xlu0 %1324 }
 0x2dd   : > { %v1760_v28 = vmul.f32 1.442695, %v1736_v61 }
 0x2df   : > { %5126 = vpow2.f32 %v1760_v28  ;;  %v1735_v28 = vsub.f32 %v5980_v60, %v1711_v15  ;;  %v1734_v15 = vsub.f32 %v5974_v13, %v6128_v59 }
 0x2e0   : > { %5128 = vrcp.f32 %v1325_v57 }
 0x2e2   : > { %v1323_v1 = vpop.xlane.xlu2 %1322  ;;  %v1719_v8 = vpop.xlane.xlu1 %1718 }
 0x2e3   : > { %5130 = vrcp.f32 %v1323_v1  ;;  %v1739_v14 = vsub.f32 %v6019_v31, %v1719_v8  ;;  %v1717_v31 = vpop.xlane.xlu0 %1716 }
 0x2e5   : > { %v6145_v16 = vpop.eup %5126  ;;  %v1766_v38 = vmul.f32 1.442695, %v1739_v14 }
 0x2e6   : > { %1792 = vadd.xlane.f32.xlu0 %v6145_v16  ;;  %v5129_v3 = vpop.eup %5128 }
 0x2e7   : > { %5132 = vpow2.f32 %v1766_v38  ;;  %v1365_v6 = vmul.f32 %v5129_v3, %v6004_v24  ;;  %v1758_v24 = vmul.f32 1.442695, %v1735_v28  ;;  %v1737_v28 = vsub.f32 %v5996_v52, %v6138_v33 }
 0x2e8   : > { %5134 = vpow2.f32 %v1752_v9 }
 0x2e9   : > { %v5131_v0 = vpop.eup %5130 }
 0x2ea   : > { %v1329_v50 = vpop.xlane.xlu2 %1328  ;;  %v1364_v62 = vmul.f32 %v5131_v0, %v6013_v49  ;;  %v2762_v49 = vpop.f32.mrf.mxu1 }
 0x2eb   : > { %5136 = vrcp.f32 %v1329_v50  ;;  %v6160_v8 = vadd.f32 %v5779_v26, %v2762_v49  ;;  %v1331_v14 = vpop.xlane.xlu0 %1330  ;;  %v1333_v38 = vpop.xlane.xlu1 %1332 }
 0x2ec   : > { %v1377_v46 = vpack.c.bf16 %v1365_v6, %v1364_v62  ;;  %5138 = vrcp.f32 %v1327_v55  ;;  %v2275_v55 = vsub.f32 %v5923_v51, %v6079_v30  ;;  %v1756_v62 = vmul.f32 1.442695, %v1734_v15  ;;  %v5010_v51 = vld [vmem:[#allocation3 + $0x8] sm:$0xff] }
 0x2ed   : > { %v6150_v37 = vpop.eup %5132  ;;  %5140 = vpow2.f32 %v1758_v24  ;;  %v6172_v6 = vadd.f32 %v5779_v26, %v2760_v32 }
 0x2ee   : > { %1453 = vmatmul.bf16.gmra.mxu0 %v1377_v46  ;;  %1798 = vadd.xlane.f32.xlu0 %v6150_v37  ;;  %v6153_v61 = vpop.eup %5134  ;;  %v2291_v50 = vmul.f32 1.442695, %v2275_v55  ;;  %5142 = vrcp.f32 %v1333_v38 }
 0x2ef   : > { %5144 = vrcp.f32 %v1331_v14  ;;  %v1738_v14 = vsub.f32 %v6016_v21, %v1717_v31 }
 0x2f0   : > { %1784 = vadd.xlane.f32.xlu2 %v6153_v61  ;;  %5146 = vpow2.f32 %v2291_v50 }
 0x2f1   : > { %v5137_v41 = vpop.eup %5136  ;;  %5148 = vpow2.f32 %v1756_v62  ;;  %v1764_v15 = vmul.f32 1.442695, %v1738_v14 }
 0x2f2   : > { %v6157_v57 = vpop.xlane.xlu2 %1720  ;;  %v5139_v1 = vpop.eup %5138  ;;  %v1367_v9 = vmul.f32 %v5137_v41, %v6024_v19 }
 0x2f3   : > { %v1366_v60 = vmul.f32 %v5139_v1, %v5982_v2  ;;  %v6169_v19 = vpop.eup %5140  ;;  %v2765_v2 = vpop.f32.mrf.mxu1  ;;  %v1762_v1 = vmul.f32 1.442695, %v1737_v28 }
 0x2f4   : > { %v1723_v30 = vpop.xlane.xlu0 %1722  ;;  %v5143_v59 = vpop.eup %5142 }
 0x2f5   : > { %v1378_v0 = vpack.c.bf16 %v1367_v9, %v1366_v60  ;;  %v5145_v46 = vpop.eup %5144  ;;  %v1369_v41 = vmul.f32 %v5143_v59, %v6026_v25  ;;  %5150 = vpow2.f32 %v1762_v1 }
 0x2f6   : > { %v6181_v32 = vpop.eup %5146  ;;  %v1368_v49 = vmul.f32 %v5145_v46, %v6029_v53  ;;  %v6196_v53 = vadd.f32 %v5779_v26, %v2765_v2  ;;  %v1741_v2 = vsub.f32 %v6041_v40, %v1723_v30  ;;  %v6216_v40 = vld [vmem:[%s5536_s28] ss:$0 sm:$0xff]  ;;  %s5422_s28 = smov 8  }
 0x2f7   : > { %v6185_v24 = vpop.eup %5148 }
 0x2f8   : > { %2800 = vmax.xlane.f32.xlu2 %v6160_v8  ;;  %v1379_v33 = vpack.c.bf16 %v1369_v41, %v1368_v49 }
 0x2fa   : > { %v1335_v3 = vpop.xlane.xlu2 %1334  ;;  %v6189_v9 = vpop.xlane.xlu1 %1724 }
 0x2fb   : > { %v2767_v60 = vpop.f32.mrf.mxu1  ;;  %v6200_v38 = vpop.eup %5150 }
 0x2fc   : > { %v1337_v52 = vpop.xlane.xlu0 %1336  ;;  %v6193_v25 = vadd.f32 %v5779_v26, %v2767_v60 }
 0x2fd   : > { %5152 = vrcp.f32 %v1337_v52  ;;  %v1770_v52 = vmul.f32 1.442695, %v1741_v2 }
 0x2fe   : > { %1458 = vmatmul.bf16.gmra.mxu0 %v1378_v0  ;;  %5154 = vrcp.f32 %v1335_v3 }
 0x300   : > { %1790 = vadd.xlane.f32.xlu2 %v6169_v19 }
 0x301   : > { %2798 = vmax.xlane.f32.xlu1 %v6172_v6 }
 0x302   : > { %2984 = vrot.lane.b32.xlu0 %v5010_v51, %s5421_s18  ;;  %v6177_v13 = vpop.xlane.xlu2 %1726 }
 0x303   : > { %v5153_v50 = vpop.eup %5152  ;;  %v2770_v14 = vpop.f32.mrf.mxu1 }
 0x304   : > { %v5155_v62 = vpop.eup %5154  ;;  %v1371_v26 = vmul.f32 %v5153_v50, %v6051_v42 }
 0x305   : > { %v1370_v41 = vmul.f32 %v5155_v62, %v6045_v23  ;;  %v1743_v23 = vsub.f32 %v6059_v5, %v6177_v13 }
 0x308   : > { %2323 = vadd.xlane.f32.xlu2 %v6181_v32 }
 0x309   : > { %1788 = vadd.xlane.f32.xlu1 %v6185_v24 }
 0x30a   : > { %v1777_v55 = vpop.xlane.xlu2 %1776  ;;  %v2791_v0 = vpop.xlane.xlu0 %2790 }
 0x30b   : > { %5156 = vrcp.f32 %v1777_v55  ;;  %v1380_v55 = vpack.c.bf16 %v1371_v26, %v1370_v41  ;;  %v2822_v50 = vsub.f32 %v6067_v22, %v2791_v0  ;;  %v2772_v26 = vpop.f32.mrf.mxu1 }
 0x30c   : > { %5158 = vpow2.f32 %v1764_v15 }
 0x30d   : > { %v2838_v5 = vmul.f32 1.442695, %v2822_v50 }
 0x30e   : > { %1463 = vmatmul.bf16.gmra.mxu0 %v1379_v33 }
 0x310   : > { %2804 = vmax.xlane.f32.xlu2 %v6193_v25 }
 0x311   : > { %v1779_v21 = vpop.xlane.xlu1 %1778  ;;  %2802 = vmax.xlane.f32.xlu1 %v6196_v53  ;;  %v5157_v51 = vpop.eup %5156 }
 0x312   : > { %5160 = vrcp.f32 %v1779_v21  ;;  %v1339_v31 = vpop.xlane.xlu2 %1338  ;;  %v6202_v59 = vpop.eup %5158  ;;  %v1824_v46 = vmul.f32 %v5157_v51, %v6064_v39  ;;  %v6219_v39 = vadd.f32 %v6216_v40, %v2770_v14  ;;  %v1774_v21 = vmul.f32 1.442695, %v1743_v23 }
 0x318   : > { %v5161_v3 = vpop.eup %5160  ;;  %1796 = vadd.xlane.f32.xlu2 %v6202_v59 }
 0x319   : > { %v1825_v28 = vmul.f32 %v5161_v3, %v6072_v18  ;;  %v6209_v49 = vpop.xlane.xlu1 %2792  ;;  %1794 = vadd.xlane.f32.xlu1 %v6200_v38  ;;  %v1341_v42 = vpop.xlane.xlu0 %1340 }
 0x31a   : > { %v6213_v1 = vpop.xlane.xlu2 %2794  ;;  %5162 = vrcp.f32 %v1341_v42  ;;  %v2223_v18 = vpop.f32.mrf.mxu3 }
 0x31b   : > { %v1840_v60 = vpack.c.bf16 %v1825_v28, %v1824_v46  ;;  %5164 = vrcp.f32 %v1339_v31  ;;  %v6232_v28 = vadd.f32 %v6216_v40, %v2772_v26 }
 0x31c   : > { %5166 = vpow2.f32 %v1770_v52  ;;  %v6247_v52 = vadd.f32 %v6216_v40, %v2223_v18 }
 0x31d   : > { %1920 = vmatmul.bf16.vlgmr.msra.gmra.mxu2 %v1840_v60 }
 0x31e   : > { %1468 = vmatmul.bf16.gmra.mxu0 %v1380_v55 }
 0x320   : > { %2806 = vmax.xlane.f32.xlu2 %v6219_v39  ;;  %v5163_v15 = vpop.eup %5162 }
 0x321   : > { %v1781_v30 = vpop.xlane.xlu1 %1780  ;;  %v5165_v62 = vpop.eup %5164  ;;  %v1373_v31 = vmul.f32 %v5163_v15, %v6085_v20 }
 0x322   : > { %5168 = vrcp.f32 %v1781_v30  ;;  %v1783_v33 = vpop.xlane.xlu2 %1782  ;;  %v6225_v51 = vpop.eup %5166  ;;  %v1372_v13 = vmul.f32 %v5165_v62, %v6074_v11  ;;  %v4995_v11 = vld [vmem:[#allocation3 + $0x10] sm:$0xff]  ;;  %v5009_v30 = vld [vmem:[#allocation3] sm:$0xff] }
 0x323   : > { %5170 = vrcp.f32 %v1783_v33  ;;  %v2225_v41 = vpop.f32.mrf.mxu3  ;;  %v2277_v33 = vsub.f32 %v5960_v27, %v6113_v43  ;;  %v2278_v27 = vsub.f32 %v5957_v63, %v6115_v44 }
 0x324   : > { %5172 = vpow2.f32 %v1774_v21  ;;  %v1381_v14 = vpack.c.bf16 %v1373_v31, %v1372_v13  ;;  %v6261_v62 = vadd.f32 %v6216_v40, %v2225_v41  ;;  %v4994_v31 = vld [vmem:[#allocation3 + $0x8] sm:$0xff] }
 0x325   : > { %5174 = vpow2.f32 %v2838_v5  ;;  %v2295_v18 = vmul.f32 1.442695, %v2277_v33  ;;  %v2297_v5 = vmul.f32 1.442695, %v2278_v27 }
 0x327   : > { %5176 = vpow2.f32 %v2295_v18 }
 0x328   : > { %v5169_v3 = vpop.eup %5168  ;;  %1802 = vadd.xlane.f32.xlu2 %v6225_v51  ;;  %5178 = vpow2.f32 %v2297_v5 }
 0x329   : > { %v5171_v2 = vpop.eup %5170  ;;  %v1826_v46 = vmul.f32 %v5169_v3, %v6095_v35  ;;  %v6249_v23 = vpop.xlane.xlu1 %2255 }
 0x32a   : > { %v2987_v22 = vpop.permute.xlu2 %2986  ;;  %v1827_v0 = vmul.f32 %v5171_v2, %v6097_v56  ;;  %v6236_v42 = vpop.eup %5172 }
 0x32b   : > { %3011 = vmatpush.bf16.msrb.mxu2 %v2987_v22  ;;  %v6240_v55 = vpop.eup %5174  ;;  %v2775_v56 = vpop.f32.mrf.mxu1 }
 0x32c   : > { %2808 = vmax.xlane.f32.xlu0 %v6232_v28  ;;  %v1841_v20 = vpack.c.bf16 %v1827_v0, %v1826_v46  ;;  %v6244_v60 = vpop.f32.mrf.mxu3  ;;  %v6255_v15 = vadd.f32 %v6216_v40, %v2775_v56  ;;  %v6280_v22 = vpop.xlane.xlu0 %2796 }
 0x32d   : > { %v6274_v13 = vpop.eup %5176 }
 0x32e   : > { %1473 = vmatmul.bf16.gmra.mxu0 %v1381_v14  ;;  %1925 = vmatmul.bf16.gmra.mxu2 %v1841_v20  ;;  %v6284_v41 = vpop.eup %5178  ;;  %v2824_v14 = vsub.f32 %v6088_v17, %v6213_v1  ;;  %v1740_v1 = vsub.f32 %v6038_v34, %v6157_v57 }
 0x330   : > { %1806 = vadd.xlane.f32.xlu2 %v6236_v42 }
 0x331   : > { %v6266_v43 = vpop.xlane.xlu1 %2257 }
 0x332   : > { %2439 = vrot.lane.b32.xlu1 %v4995_v11, %s5420_s17 }
 0x333   : > { %v1439_v35 = vpop.f32.mrf.mxu0  ;;  %v2777_v50 = vpop.f32.mrf.mxu1 }
 0x334   : > { %1479 = vst.msk [vmem:[#allocation4] sm:$0xff] %vm1132_vm2, %v1439_v35  ;;  %2870 = vadd.xlane.f32.xlu0 %v6240_v55  ;;  %v2230_v26 = vpop.f32.mrf.mxu3  ;;  %v1787_v20 = vpop.xlane.xlu0 %1786  ;;  %v2842_v35 = vmul.f32 1.442695, %v2824_v14  ;;  %v6291_v56 = vadd.f32 %v6216_v40, %v2777_v50  ;;  %v1768_v50 = vmul.f32 1.442695, %v1740_v1  ;;  %v2281_v1 = vsub.f32 %v6109_v29, %v6249_v23 }
 0x335   : > { %v6269_v3 = vadd.f32 %v6216_v40, %v2230_v26  ;;  %v2282_v29 = vsub.f32 %v6118_v4, %v6266_v43 }
 0x336   : > { %5180 = vpow2.f32 %v2842_v35 }
 0x338   : > { %2259 = vmax.xlane.f32.xlu2 %v6247_v52 }
 0x33a   : > { %2982 = vrot.lane.b32.xlu1 %v5009_v30, %s5421_s18  ;;  %v2279_v30 = vsub.f32 %v5969_v36, %v6125_v45  ;;  %v1742_v36 = vsub.f32 %v6048_v12, %v6189_v9  ;;  %v2823_v9 = vsub.f32 %v6083_v47, %v6209_v49 }
 0x33b   : > { %v1441_v21 = vpop.f32.mrf.mxu0  ;;  %v2780_v46 = vpop.f32.mrf.mxu1 }
 0x33c   : > { %1480 = vst.msk [vmem:[#allocation4 + $0x8] sm:$0xff] %vm1132_vm2, %v1441_v21  ;;  %2810 = vmax.xlane.f32.xlu0 %v6255_v15  ;;  %v6278_v44 = vadd.f32 %v6216_v40, %v2780_v46  ;;  %v6296_v21 = vpop.xlane.xlu0 %2325  ;;  %v2299_v17 = vmul.f32 1.442695, %v2279_v30  ;;  %v6301_v18 = vpop.eup %5180  ;;  %v1772_v34 = vmul.f32 1.442695, %v1742_v36 }
 0x33d   : > { %v2840_v35 = vmul.f32 1.442695, %v2823_v9 }
 0x33e   : > { %5182 = vpow2.f32 %v2299_v17 }
 0x33f   : > { %5184 = vrcp.f32 %v1787_v20 }
 0x340   : > { %2261 = vmax.xlane.f32.xlu2 %v6261_v62 }
 0x342   : > { %2437 = vrot.lane.b32.xlu1 %v4994_v31, %s5420_s17 }
 0x343   : > { %v1444_v2 = vpop.f32.mrf.mxu0 }
 0x344   : > { %1481 = vst.msk [vmem:[#allocation4 + $0x10] sm:$0xff] %vm1132_vm2, %v1444_v2  ;;  %2265 = vmax.xlane.f32.xlu0 %v6269_v3  ;;  %v6308_v45 = vpop.eup %5182 }
 0x345   : > { %v5185_v27 = vpop.eup %5184 }
 0x348   : > { %2327 = vadd.xlane.f32.xlu2 %v6274_v13 }
 0x349   : > { %v2442_v63 = vpop.permute.xlu1 %2441 }
 0x34a   : > { %2463 = vmatpush.bf16.msra.mxu0 %v2442_v63 }
 0x34b   : > { %v1446_v0 = vpop.f32.mrf.mxu0 }
 0x34c   : > { %1482 = vst.msk [vmem:[#allocation4 + $0x18] sm:$0xff] %vm1132_vm2, %v1446_v0  ;;  %2814 = vmax.xlane.f32.xlu0 %v6278_v44  ;;  %v1829_v0 = vmul.f32 %v5185_v27, %v6120_v54 }
 0x350   : > { %2329 = vadd.xlane.f32.xlu2 %v6284_v41 }
 0x354   : > { %v1449_v11 = vpop.f32.mrf.mxu0 }
 0x355   : > { %1483 = vst.msk [vmem:[#allocation4 + $0x20] sm:$0xff] %vm1132_vm2, %v1449_v11 }
 0x358   : > { %2812 = vmax.xlane.f32.xlu2 %v6291_v56 }
 0x359   : > { %v6304_v31 = vpop.xlane.xlu0 %1792 }
 0x35c   : > { %v1451_v33 = vpop.f32.mrf.mxu0 }
 0x35d   : > { %1484 = vst.msk [vmem:[#allocation4 + $0x28] sm:$0xff] %vm1132_vm2, %v1451_v33 }
 0x360   : > { %2874 = vadd.xlane.f32.xlu2 %v6301_v18 }
 0x361   : > { %v6316_v14 = vpop.xlane.xlu0 %1798 }
 0x363   : > { %v1785_v26 = vpop.xlane.xlu2 %1784 }
 0x364   : > { %5186 = vrcp.f32 %v1785_v26 }
 0x365   : > { %5188 = vpow2.f32 %v1768_v50  ;;  %v2782_v50 = vpop.f32.mrf.mxu1 }
 0x366   : > { %5190 = vpow2.f32 %v1772_v34  ;;  %v6339_v34 = vadd.f32 %v6216_v40, %v2782_v50 }
 0x368   : > { %2331 = vadd.xlane.f32.xlu2 %v6308_v45 }
 0x36a   : > { %v5187_v57 = vpop.eup %5186 }
 0x36b   : > { %v1454_v2 = vpop.f32.mrf.mxu0  ;;  %v6311_v5 = vpop.eup %5188  ;;  %v1828_v63 = vmul.f32 %v5187_v57, %v6153_v61  ;;  %v2303_v57 = vmul.f32 1.442695, %v2281_v1 }
 0x36c   : > { %1485 = vst.msk [vmem:[#allocation4 + $0x30] sm:$0xff] %vm1132_vm2, %v1454_v2  ;;  %v2801_v46 = vpop.xlane.xlu2 %2800  ;;  %1800 = vadd.xlane.f32.xlu1 %v6311_v5  ;;  %v6322_v33 = vpop.eup %5190 }
 0x36d   : > { %v2827_v12 = vsub.f32 %v6160_v8, %v2801_v46  ;;  %v1842_v20 = vpack.c.bf16 %v1829_v0, %v1828_v63  ;;  %v2233_v46 = vpop.f32.mrf.mxu3 }
 0x36e   : > { %v6354_v43 = vadd.f32 %v6216_v40, %v2233_v46 }
 0x36f   : > { %v2848_v11 = vmul.f32 1.442695, %v2827_v12  ;;  %1930 = vmatmul.bf16.gmra.mxu2 %v1842_v20  ;;  %v2305_v12 = vmul.f32 1.442695, %v2282_v29  ;;  %v4993_v29 = vld [vmem:[#allocation3] sm:$0xff] }
 0x371   : > { %5192 = vpow2.f32 %v2848_v11 }
 0x372   : > { %5194 = vpow2.f32 %v2840_v35 }
 0x373   : > { %v1456_v30 = vpop.f32.mrf.mxu0 }
 0x374   : > { %1486 = vst.msk [vmem:[#allocation4 + $0x38] sm:$0xff] %vm1132_vm2, %v1456_v30  ;;  %v1791_v54 = vpop.xlane.xlu2 %1790  ;;  %v2799_v61 = vpop.xlane.xlu1 %2798  ;;  %1804 = vadd.xlane.f32.xlu1 %v6322_v33 }
 0x375   : > { %v2985_v17 = vpop.permute.xlu0 %2984  ;;  %v2826_v8 = vsub.f32 %v6172_v6, %v2799_v61  ;;  %v6368_v1 = vpop.f32.mrf.mxu3 }
 0x376   : > { %3012 = vmatpush.bf16.msrb.mxu2 %v2985_v17 }
 0x377   : > { %v6327_v47 = vpop.eup %5192  ;;  %v2846_v49 = vmul.f32 1.442695, %v2826_v8 }
 0x378   : > { %2880 = vadd.xlane.f32.xlu2 %v6327_v47  ;;  %v6332_v36 = vpop.eup %5194 }
 0x379   : > { %5196 = vpow2.f32 %v2846_v49 }
 0x37a   : > { %5198 = vrcp.f32 %v1791_v54 }
 0x37b   : > { %v1459_v26 = vpop.f32.mrf.mxu0 }
 0x37c   : > { %1487 = vst.msk [vmem:[#allocation4 + $0x40] sm:$0xff] %vm1132_vm2, %v1459_v26  ;;  %v6335_v27 = vpop.xlane.xlu2 %2323  ;;  %v1789_v6 = vpop.xlane.xlu1 %1788  ;;  %2872 = vadd.xlane.f32.xlu1 %v6332_v36 }
 0x37d   : > { %5200 = vrcp.f32 %v1789_v6 }
 0x37e   : > { %5202 = vpow2.f32 %v2303_v57 }
 0x37f   : > { %v6341_v2 = vpop.eup %5196  ;;  %5204 = vpow2.f32 %v2305_v12 }
 0x380   : > { %2816 = vmax.xlane.f32.xlu2 %v6339_v34  ;;  %2878 = vadd.xlane.f32.xlu0 %v6341_v2  ;;  %v5199_v23 = vpop.eup %5198 }
 0x381   : > { %v1831_v4 = vmul.f32 %v5199_v23, %v6169_v19 }
 0x383   : > { %v1461_v63 = vpop.f32.mrf.mxu0  ;;  %v5201_v0 = vpop.eup %5200 }
 0x384   : > { %1488 = vst.msk [vmem:[#allocation4 + $0x48] sm:$0xff] %vm1132_vm2, %v1461_v63  ;;  %v2805_v9 = vpop.xlane.xlu2 %2804  ;;  %v6349_v11 = vpop.xlane.xlu1 %2802  ;;  %v1830_v35 = vmul.f32 %v5201_v0, %v6185_v24 }
 0x385   : > { %v2829_v20 = vsub.f32 %v6193_v25, %v2805_v9  ;;  %v6356_v61 = vpop.eup %5202  ;;  %v6360_v25 = vpop.f32.mrf.mxu1 }
 0x386   : > { %v1843_v54 = vpack.c.bf16 %v1831_v4, %v1830_v35  ;;  %v6364_v8 = vpop.eup %5204 }
 0x387   : > { %v2852_v30 = vmul.f32 1.442695, %v2829_v20  ;;  %v2238_v20 = vpop.f32.mrf.mxu3 }
 0x388   : > { %2267 = vmax.xlane.f32.xlu2 %v6354_v43  ;;  %2335 = vadd.xlane.f32.xlu0 %v6356_v61 }
 0x389   : > { %5206 = vpow2.f32 %v2852_v30  ;;  %1935 = vmatmul.bf16.gmra.mxu2 %v1843_v54 }
 0x38a   : > { %5208 = vrcp.f32 %v6304_v31 }
 0x38b   : > { %v1464_v17 = vpop.f32.mrf.mxu0 }
 0x38c   : > { %1489 = vst.msk [vmem:[#allocation4 + $0x50] sm:$0xff] %vm1132_vm2, %v1464_v17  ;;  %v1797_v19 = vpop.xlane.xlu2 %1796  ;;  %v1795_v24 = vpop.xlane.xlu1 %1794 }
 0x38d   : > { %5210 = vrcp.f32 %v1795_v24  ;;  %v2787_v57 = vpop.f32.mrf.mxu1 }
 0x38e   : > { %v6378_v0 = vadd.f32 %v6216_v40, %v2787_v57 }
 0x38f   : > { %v6366_v49 = vpop.eup %5206  ;;  %v2240_v17 = vpop.f32.mrf.mxu3 }
 0x390   : > { %2337 = vadd.xlane.f32.xlu2 %v6364_v8  ;;  %2884 = vadd.xlane.f32.xlu0 %v6366_v49  ;;  %v5209_v50 = vpop.eup %5208 }
 0x391   : > { %v1832_v46 = vmul.f32 %v5209_v50, %v6145_v16 }
 0x393   : > { %v1466_v26 = vpop.f32.mrf.mxu0  ;;  %v5211_v6 = vpop.eup %5210 }
 0x394   : > { %1490 = vst.msk [vmem:[#allocation4 + $0x58] sm:$0xff] %vm1132_vm2, %v1466_v26  ;;  %v2807_v31 = vpop.xlane.xlu2 %2806  ;;  %v1833_v63 = vmul.f32 %v5211_v6, %v6200_v38  ;;  %v6400_v6 = vadd.f32 %v6216_v40, %v2240_v17 }
 0x395   : > { %v2830_v23 = vsub.f32 %v6219_v39, %v2807_v31  ;;  %2435 = vrot.lane.b32.xlu1 %v4993_v29, %s5420_s17  ;;  %v6388_v39 = vadd.f32 %v6216_v40, %v2238_v20 }
 0x396   : > { %v1844_v9 = vpack.c.bf16 %v1833_v63, %v1832_v46 }
 0x397   : > { %v2854_v12 = vmul.f32 1.442695, %v2830_v23 }
 0x398   : > { %2820 = vmax.xlane.f32.xlu0 %v6378_v0 }
 0x399   : > { %5212 = vpow2.f32 %v2854_v12  ;;  %1940 = vmatmul.bf16.gmra.mxu2 %v1844_v9 }
 0x39a   : > { %5214 = vrcp.f32 %v1797_v19 }
 0x39b   : > { %v1469_v35 = vpop.f32.mrf.mxu0  ;;  %5216 = vrcp.f32 %v6316_v14 }
 0x39c   : > { %1491 = vst.msk [vmem:[#allocation4 + $0x60] sm:$0xff] %vm1132_vm2, %v1469_v35  ;;  %v6383_v16 = vpop.xlane.xlu2 %1802 }
 0x39f   : > { %v6385_v38 = vpop.eup %5212  ;;  %v6390_v30 = vpop.xlane.xlu0 %2808 }
 0x3a0   : > { %v5215_v4 = vpop.eup %5214  ;;  %2886 = vadd.xlane.f32.xlu2 %v6385_v38  ;;  %2271 = vmax.xlane.f32.xlu0 %v6388_v39 }
 0x3a1   : > { %v5217_v54 = vpop.eup %5216  ;;  %v1834_v14 = vmul.f32 %v5215_v4, %v6202_v59 }
 0x3a2   : > { %v1835_v26 = vmul.f32 %v5217_v54, %v6150_v37  ;;  %v2825_v37 = vsub.f32 %v6100_v58, %v6280_v22 }
 0x3a3   : > { %v1471_v19 = vpop.f32.mrf.mxu0 }
 0x3a4   : > { %1492 = vst.msk [vmem:[#allocation4 + $0x68] sm:$0xff] %vm1132_vm2, %v1471_v19  ;;  %v6396_v24 = vpop.xlane.xlu2 %1806  ;;  %v2440_v50 = vpop.permute.xlu1 %2439  ;;  %v1845_v57 = vpack.c.bf16 %v1835_v26, %v1834_v14  ;;  %v2844_v20 = vmul.f32 1.442695, %v2825_v37 }
 0x3a5   : > { %2464 = vmatpush.bf16.msra.mxu0 %v2440_v50 }
 0x3a7   : > { %v6402_v31 = vpop.xlane.xlu0 %2870 }
 0x3a8   : > { %2273 = vmax.xlane.f32.xlu2 %v6400_v6 }
 0x3a9   : > { %1945 = vmatmul.bf16.gmra.mxu2 %v1845_v57 }
 0x3ab   : > { %v1474_v29 = vpop.f32.mrf.mxu0 }
 0x3ac   : > { %1493 = vst.msk [vmem:[#allocation4 + $0x70] sm:$0xff] %vm1132_vm2, %v1474_v29  ;;  %v6406_v59 = vpop.xlane.xlu2 %2259  ;;  %v2983_v23 = vpop.permute.xlu1 %2982 }
 0x3ad   : > { %3013 = vmatpush.bf16.msrb.mxu2 %v2983_v23  ;;  %v6434_v23 = vadd.f32 %v6216_v40, %v6244_v60 }
 0x3af   : > { %v2811_v46 = vpop.xlane.xlu0 %2810 }
 0x3b0   : > { %v2832_v63 = vsub.f32 %v6255_v15, %v2811_v46 }
 0x3b2   : > { %v2858_v12 = vmul.f32 1.442695, %v2832_v63  ;;  %v6444_v63 = vadd.f32 %v6216_v40, %v6368_v1 }
 0x3b3   : > { %v1476_v9 = vpop.f32.mrf.mxu0 }
 0x3b4   : > { %1494 = vst.msk [vmem:[#allocation4 + $0x78] sm:$0xff] %vm1132_vm2, %v1476_v9  ;;  %v2262_v35 = vpop.xlane.xlu2 %2261  ;;  %5218 = vpow2.f32 %v2858_v12  ;;  %v2438_v54 = vpop.permute.xlu1 %2437 }
 0x3b5   : > { %v2284_v4 = vsub.f32 %v6261_v62, %v2262_v35  ;;  %2465 = vmatpush.bf16.msra.mxu0 %v2438_v54  ;;  %5220 = vpow2.f32 %v2844_v20  ;;  %v2280_v62 = vsub.f32 %v5993_v48, %v6134_v10  ;;  %v2828_v48 = vsub.f32 %v6196_v53, %v6349_v11 }
 0x3b6   : > { %v2831_v53 = vsub.f32 %v6232_v28, %v6390_v30  ;;  %v6459_v35 = vadd.f32 %v6216_v40, %v6360_v25  ;;  %v2283_v28 = vsub.f32 %v6247_v52, %v6406_v59 }
 0x3b7   : > { %v2309_v17 = vmul.f32 1.442695, %v2284_v4  ;;  %v2266_v19 = vpop.xlane.xlu0 %2265  ;;  %v2301_v57 = vmul.f32 1.442695, %v2280_v62  ;;  %v2850_v10 = vmul.f32 1.442695, %v2828_v48 }
 0x3b8   : > { %v2286_v58 = vsub.f32 %v6269_v3, %v2266_v19  ;;  %v2856_v20 = vmul.f32 1.442695, %v2831_v53 }
 0x3b9   : > { %5222 = vpow2.f32 %v2309_v17 }
 0x3ba   : > { %v6414_v22 = vpop.eup %5218  ;;  %v2313_v15 = vmul.f32 1.442695, %v2286_v58 }
 0x3bb   : > { %2890 = vadd.xlane.f32.xlu2 %v6414_v22  ;;  %v6419_v50 = vpop.eup %5220 }
 0x3bc   : > { %v6417_v14 = vpop.xlane.xlu2 %2327  ;;  %5224 = vpow2.f32 %v2313_v15  ;;  %v2307_v15 = vmul.f32 1.442695, %v2283_v28 }
 0x3bd   : > { %5226 = vpow2.f32 %v2301_v57 }
 0x3be   : > { %5228 = vpow2.f32 %v2850_v10 }
 0x3bf   : > { %v6421_v26 = vpop.eup %5222  ;;  %2876 = vadd.xlane.f32.xlu1 %v6419_v50  ;;  %5230 = vrcp.f32 %v6383_v16  ;;  %v2815_v58 = vpop.xlane.xlu0 %2814 }
 0x3c0   : > { %2341 = vadd.xlane.f32.xlu0 %v6421_v26 }
 0x3c2   : > { %v6427_v3 = vpop.eup %5224 }
 0x3c3   : > { %2345 = vadd.xlane.f32.xlu2 %v6427_v3  ;;  %v6437_v37 = vpop.eup %5226 }
 0x3c4   : > { %v6430_v29 = vpop.xlane.xlu2 %2329  ;;  %v6449_v12 = vpop.eup %5228 }
 0x3c5   : > { %v5231_v1 = vpop.eup %5230 }
 0x3c6   : > { %v1837_v54 = vmul.f32 %v5231_v1, %v6225_v51 }
 0x3c7   : > { %2263 = vmax.xlane.f32.xlu1 %v6434_v23 }
 0x3cc   : > { %v2813_v46 = vpop.xlane.xlu2 %2812 }
 0x3cd   : > { %v2833_v51 = vsub.f32 %v6291_v56, %v2813_v46 }
 0x3cf   : > { %2333 = vadd.xlane.f32.xlu1 %v6437_v37  ;;  %v2860_v62 = vmul.f32 1.442695, %v2833_v51 }
 0x3d4   : > { %v6447_v60 = vpop.xlane.xlu2 %2874 }
 0x3d7   : > { %2269 = vmax.xlane.f32.xlu1 %v6444_v63 }
 0x3dc   : > { %v6455_v11 = vpop.xlane.xlu2 %2331 }
 0x3df   : > { %2882 = vadd.xlane.f32.xlu1 %v6449_v12  ;;  %v1801_v9 = vpop.xlane.xlu1 %1800 }
 0x3e0   : > { %5232 = vrcp.f32 %v1801_v9  ;;  %v2834_v9 = vsub.f32 %v6278_v44, %v2815_v58 }
 0x3e1   : > { %5234 = vpow2.f32 %v2856_v20 }
 0x3e2   : > { %v2862_v44 = vmul.f32 1.442695, %v2834_v9 }
 0x3e6   : > { %v5233_v4 = vpop.eup %5232 }
 0x3e7   : > { %2818 = vmax.xlane.f32.xlu1 %v6459_v35  ;;  %v1836_v16 = vmul.f32 %v5233_v4, %v6311_v5  ;;  %v1805_v30 = vpop.xlane.xlu1 %1804  ;;  %v6466_v40 = vpop.eup %5234 }
 0x3e8   : > { %5236 = vrcp.f32 %v1805_v30 }
 0x3e9   : > { %v1846_v17 = vpack.c.bf16 %v1837_v54, %v1836_v16  ;;  %5238 = vrcp.f32 %v6396_v24  ;;  %v1921_v16 = vpop.f32.mrf.mxu2 }
 0x3ea   : > { %5240 = vpow2.f32 %v2307_v15 }
 0x3eb   : > { %v2881_v19 = vpop.xlane.xlu2 %2880  ;;  %1950 = vmatmul.bf16.gmra.mxu2 %v1846_v17 }
 0x3ec   : > { %5242 = vrcp.f32 %v2881_v19 }
 0x3ee   : > { %v5237_v5 = vpop.eup %5236 }
 0x3ef   : > { %2888 = vadd.xlane.f32.xlu1 %v6466_v40  ;;  %v5239_v59 = vpop.eup %5238  ;;  %v1838_v57 = vmul.f32 %v5237_v5, %v6322_v33  ;;  %v2873_v56 = vpop.xlane.xlu1 %2872 }
 0x3f0   : > { %v6474_v48 = vpop.eup %5240  ;;  %v1839_v24 = vmul.f32 %v5239_v59, %v6236_v42 }
 0x3f1   : > { %v6504_v51 = vpop.f32.mrf.mxu2 }
 0x3f2   : > { %v5243_v10 = vpop.eup %5242  ;;  %v1847_v46 = vpack.c.bf16 %v1839_v24, %v1838_v57 }
 0x3f3   : > { %v6471_v25 = vpop.xlane.xlu2 %2816  ;;  %v2879_v52 = vpop.xlane.xlu0 %2878  ;;  %v6487_v42 = vmul.f32 %v5243_v10, %v6327_v47 }
 0x3f4   : > { %5244 = vrcp.f32 %v2879_v52 }
 0x3f5   : > { %5246 = vpow2.f32 %v2860_v62 }
 0x3f6   : > { %5248 = vrcp.f32 %v6335_v27 }
 0x3f7   : > { %2339 = vadd.xlane.f32.xlu1 %v6474_v48  ;;  %5250 = vrcp.f32 %v2873_v56 }
 0x3f8   : > { %5252 = vrcp.f32 %v6296_v21 }
 0x3f9   : > { %5254 = vrcp.f32 %v6402_v31  ;;  %v6513_v24 = vpop.f32.mrf.mxu2 }
 0x3fa   : > { %v5245_v53 = vpop.eup %5244 }
 0x3fb   : > { %v2268_v1 = vpop.xlane.xlu2 %2267  ;;  %v6481_v4 = vpop.xlane.xlu0 %2335  ;;  %1955 = vmatmul.bf16.gmra.mxu2 %v1847_v46  ;;  %v6484_v33 = vmul.f32 %v5245_v53, %v6341_v2 }
 0x3fc   : > { %v2287_v20 = vsub.f32 %v6354_v43, %v2268_v1  ;;  %v6492_v28 = vpop.eup %5246 }
 0x3fd   : > { %v2936_v27 = vpack.c.bf16 %v6487_v42, %v6484_v33  ;;  %v5249_v2 = vpop.eup %5248 }
 0x3fe   : > { %v2315_v54 = vmul.f32 1.442695, %v2287_v20  ;;  %v5251_v47 = vpop.eup %5250  ;;  %v2371_v21 = vmul.f32 %v5249_v2, %v6181_v32 }
 0x3ff   : > { %2892 = vadd.xlane.f32.xlu1 %v6492_v28  ;;  %v5253_v43 = vpop.eup %5252  ;;  %v2919_v58 = vmul.f32 %v5251_v47, %v6332_v36 }
 0x400   : > { %5256 = vpow2.f32 %v2315_v54  ;;  %v5255_v17 = vpop.eup %5254  ;;  %v2372_v31 = vmul.f32 %v5253_v43, %v6130_v7 }
 0x401   : > { %5258 = vpow2.f32 %v2862_v44  ;;  %v2918_v5 = vmul.f32 %v5255_v17, %v6240_v55 }
 0x402   : > { %v2387_v59 = vpack.c.bf16 %v2372_v31, %v2371_v21  ;;  %5260 = vrcp.f32 %v6430_v29  ;;  %v6520_v29 = vpop.f32.mrf.mxu2 }
 0x403   : > { %v6496_v30 = vpop.xlane.xlu0 %2884  ;;  %v2934_v62 = vpack.c.bf16 %v2919_v58, %v2918_v5  ;;  %5262 = vrcp.f32 %v6417_v14  ;;  %v2338_v31 = vpop.xlane.xlu2 %2337 }
 0x406   : > { %v6498_v19 = vpop.eup %5256 }
 0x407   : > { %v6502_v15 = vpop.eup %5258  ;;  %2347 = vadd.xlane.f32.xlu2 %v6498_v19  ;;  %v2436_v52 = vpop.permute.xlu1 %2435 }
 0x408   : > { %2894 = vadd.xlane.f32.xlu1 %v6502_v15  ;;  %2466 = vmatpush.bf16.msra.mxu0 %v2436_v52  ;;  %v5261_v7 = vpop.eup %5260 }
 0x409   : > { %v5263_v55 = vpop.eup %5262  ;;  %v2374_v10 = vmul.f32 %v5261_v7, %v6284_v41 }
 0x40a   : > { %v2373_v56 = vmul.f32 %v5263_v55, %v6274_v13 }
 0x40b   : > { %2467 = vmatmul.bf16.vlgmr.msra.gmra.mxu0 %v2387_v59  ;;  %v2821_v32 = vpop.xlane.xlu0 %2820  ;;  %3014 = vmatmul.bf16.vlgmr.msrb.gmra.mxu2 %v2934_v62 }
 0x40c   : > { %v2837_v36 = vsub.f32 %v6378_v0, %v2821_v32  ;;  %v2388_v46 = vpack.c.bf16 %v2374_v10, %v2373_v56  ;;  %v6522_v0 = vpop.f32.mrf.mxu2 }
 0x40e   : > { %v2868_v57 = vmul.f32 1.442695, %v2837_v36 }
 0x410   : > { %5264 = vpow2.f32 %v2868_v57 }
 0x411   : > { %5266 = vrcp.f32 %v6447_v60  ;;  %v2835_v60 = vsub.f32 %v6339_v34, %v6471_v25 }
 0x413   : > { %v2864_v21 = vmul.f32 1.442695, %v2835_v60  ;;  %v2272_v25 = vpop.xlane.xlu0 %2271 }
 0x414   : > { %v6524_v14 = vpop.f32.mrf.mxu2  ;;  %v2289_v36 = vsub.f32 %v6388_v39, %v2272_v25 }
 0x416   : > { %v6516_v9 = vpop.eup %5264  ;;  %v2319_v57 = vmul.f32 1.442695, %v2289_v36 }
 0x417   : > { %2900 = vadd.xlane.f32.xlu2 %v6516_v9  ;;  %v5267_v1 = vpop.eup %5266 }
 0x418   : > { %v2920_v44 = vmul.f32 %v5267_v1, %v6301_v18 }
 0x41b   : > { %2472 = vmatmul.bf16.gmra.mxu0 %v2388_v46 }
 0x41c   : > { %v6528_v53 = vpop.f32.mrf.mxu2 }
 0x424   : > { %v6533_v17 = vpop.f32.mrf.mxu2 }
 0x42f   : > { %1977 = vrot.lane.b32.xlu2 %v1921_v16, %s5422_s28 }
 0x432   : > { %v2877_v41 = vpop.xlane.xlu1 %2876 }
 0x433   : > { %5268 = vrcp.f32 %v2877_v41 }
 0x439   : > { %v5269_v20 = vpop.eup %5268 }
 0x43a   : > { %v2264_v13 = vpop.xlane.xlu1 %2263  ;;  %v2921_v54 = vmul.f32 %v5269_v20, %v6419_v50  ;;  %v6541_v50 = vpop.f32.mrf.mxu2 }
 0x43b   : > { %v2285_v2 = vsub.f32 %v6434_v23, %v2264_v13 }
 0x43c   : > { %v2935_v47 = vpack.c.bf16 %v2921_v54, %v2920_v44 }
 0x43d   : > { %v2311_v43 = vmul.f32 1.442695, %v2285_v2 }
 0x43e   : > { %3019 = vmatmul.bf16.gmra.mxu2 %v2935_v47 }
 0x43f   : > { %5270 = vpow2.f32 %v2311_v43 }
 0x440   : > { %5272 = vrcp.f32 %v6455_v11 }
 0x442   : > { %v2334_v16 = vpop.xlane.xlu1 %2333 }
 0x443   : > { %5274 = vrcp.f32 %v2334_v16 }
 0x444   : > { %5276 = vpow2.f32 %v2864_v21 }
 0x445   : > { %v6538_v58 = vpop.eup %5270  ;;  %5278 = vrcp.f32 %v2338_v31 }
 0x446   : > { %2343 = vadd.xlane.f32.xlu0 %v6538_v58  ;;  %v5273_v18 = vpop.eup %5272 }
 0x447   : > { %v2375_v52 = vmul.f32 %v5273_v18, %v6308_v45  ;;  %v2887_v45 = vpop.xlane.xlu2 %2886 }
 0x449   : > { %v5275_v23 = vpop.eup %5274 }
 0x44a   : > { %v2270_v5 = vpop.xlane.xlu1 %2269  ;;  %v2376_v34 = vmul.f32 %v5275_v23, %v6437_v37  ;;  %v6546_v32 = vpop.eup %5276 }
 0x44b   : > { %v2288_v11 = vsub.f32 %v6444_v63, %v2270_v5  ;;  %v6555_v37 = vpop.f32.mrf.mxu2  ;;  %v5279_v7 = vpop.eup %5278 }
 0x44c   : > { %v2389_v59 = vpack.c.bf16 %v2376_v34, %v2375_v52  ;;  %v2378_v42 = vmul.f32 %v5279_v7, %v6364_v8 }
 0x44d   : > { %v2317_v62 = vmul.f32 1.442695, %v2288_v11 }
 0x44e   : > { %2477 = vmatmul.bf16.gmra.mxu0 %v2389_v59  ;;  %3024 = vmatmul.bf16.gmra.mxu2 %v2936_v27 }
 0x44f   : > { %5280 = vpow2.f32 %v2317_v62  ;;  %2896 = vadd.xlane.f32.xlu0 %v6546_v32  ;;  %v2274_v41 = vpop.xlane.xlu2 %2273 }
 0x450   : > { %5282 = vrcp.f32 %v6481_v4  ;;  %v2290_v8 = vsub.f32 %v6400_v6, %v2274_v41 }
 0x451   : > { %5284 = vrcp.f32 %v6496_v30 }
 0x452   : > { %v2883_v63 = vpop.xlane.xlu1 %2882 }
 0x453   : > { %5286 = vrcp.f32 %v2883_v63  ;;  %v6565_v1 = vpop.f32.mrf.mxu2 }
 0x454   : > { %5288 = vpow2.f32 %v2319_v57 }
 0x455   : > { %v6557_v55 = vpop.eup %5280 }
 0x456   : > { %v5283_v33 = vpop.eup %5282  ;;  %2349 = vadd.xlane.f32.xlu1 %v6557_v55 }
 0x457   : > { %v5285_v39 = vpop.eup %5284  ;;  %v2377_v30 = vmul.f32 %v5283_v33, %v6356_v61  ;;  %v2891_v23 = vpop.xlane.xlu2 %2890 }
 0x458   : > { %v2925_v56 = vmul.f32 %v5285_v39, %v6366_v49  ;;  %v2321_v49 = vmul.f32 1.442695, %v2290_v8 }
 0x459   : > { %v5287_v27 = vpop.eup %5286  ;;  %v2390_v20 = vpack.c.bf16 %v2378_v42, %v2377_v30 }
 0x45a   : > { %v2819_v4 = vpop.xlane.xlu1 %2818  ;;  %v2924_v10 = vmul.f32 %v5287_v27, %v6449_v12  ;;  %v6567_v44 = vpop.eup %5288 }
 0x45b   : > { %v2836_v46 = vsub.f32 %v6459_v35, %v2819_v4  ;;  %v2342_v35 = vpop.xlane.xlu0 %2341  ;;  %v6573_v2 = vpop.f32.mrf.mxu2 }
 0x45c   : > { %v2937_v13 = vpack.c.bf16 %v2925_v56, %v2924_v10 }
 0x45d   : > { %v2866_v54 = vmul.f32 1.442695, %v2836_v46 }
 0x45e   : > { %2351 = vadd.xlane.f32.xlu1 %v6567_v44  ;;  %2482 = vmatmul.bf16.gmra.mxu0 %v2390_v20 }
 0x45f   : > { %5290 = vpow2.f32 %v2866_v54  ;;  %3029 = vmatmul.bf16.gmra.mxu2 %v2937_v13  ;;  %v2346_v36 = vpop.xlane.xlu2 %2345 }
 0x460   : > { %5292 = vrcp.f32 %v2887_v45 }
 0x462   : > { %v2889_v61 = vpop.xlane.xlu1 %2888 }
 0x463   : > { %5294 = vrcp.f32 %v2889_v61 }
 0x464   : > { %5296 = vpow2.f32 %v2321_v49 }
 0x465   : > { %v6571_v12 = vpop.eup %5290  ;;  %5298 = vrcp.f32 %v2342_v35 }
 0x466   : > { %2898 = vadd.xlane.f32.xlu0 %v6571_v12  ;;  %v5293_v47 = vpop.eup %5292 }
 0x467   : > { %v2926_v6 = vmul.f32 %v5293_v47, %v6385_v38 }
 0x469   : > { %v5295_v43 = vpop.eup %5294 }
 0x46a   : > { %v2340_v60 = vpop.xlane.xlu1 %2339  ;;  %v2927_v16 = vmul.f32 %v5295_v43, %v6466_v40  ;;  %v6578_v18 = vpop.eup %5296  ;;  %v5017_v43 = vld [vmem:[%s7456_s6] sm:$0xff] }
 0x46b   : > { %5300 = vrcp.f32 %v2340_v60  ;;  %v5299_v5 = vpop.eup %5298 }
 0x46c   : > { %v2938_v21 = vpack.c.bf16 %v2927_v16, %v2926_v6  ;;  %5302 = vrcp.f32 %v2891_v23  ;;  %v2380_v38 = vmul.f32 %v5299_v5, %v6421_v26 }
 0x46e   : > { %v6580_v31 = vpop.f32.mrf.mxu2  ;;  %2353 = vadd.xlane.f32.xlu0 %v6578_v18 }
 0x46f   : > { %3034 = vmatmul.bf16.gmra.mxu2 %v2938_v21 }
 0x471   : > { %v5301_v52 = vpop.eup %5300 }
 0x472   : > { %v2893_v34 = vpop.xlane.xlu1 %2892  ;;  %v2379_v11 = vmul.f32 %v5301_v52, %v6474_v48  ;;  %v5303_v59 = vpop.eup %5302 }
 0x473   : > { %5304 = vrcp.f32 %v2893_v34  ;;  %v2928_v45 = vmul.f32 %v5303_v59, %v6414_v22 }
 0x474   : > { %v2391_v40 = vpack.c.bf16 %v2380_v38, %v2379_v11  ;;  %5306 = vrcp.f32 %v2346_v36 }
 0x476   : > { %v6585_v25 = vpop.f32.mrf.mxu2  ;;  %2487 = vmatmul.bf16.gmra.mxu0 %v2391_v40 }
 0x477   : > { %1979 = vrot.lane.b32.xlu1 %v6504_v51, %s5422_s28  ;;  %v5018_v51 = vld [vmem:[%s7456_s6 + $0x8] sm:$0xff] }
 0x478   : > { %3210 = vmatpush.bf16.msrb.mxu3 %v5018_v51 }
 0x479   : > { %v5305_v62 = vpop.eup %5304 }
 0x47a   : > { %v2929_v63 = vmul.f32 %v5305_v62, %v6492_v28  ;;  %v2348_v26 = vpop.xlane.xlu2 %2347  ;;  %v5307_v56 = vpop.eup %5306 }
 0x47b   : > { %v2895_v46 = vpop.xlane.xlu1 %2894 }
 0x47c   : > { %v2939_v57 = vpack.c.bf16 %v2929_v63, %v2928_v45  ;;  %3211 = vmatpush.bf16.msrb.mxu3 %v5017_v43 }
 0x47e   : > { %v6591_v7 = vpop.f32.mrf.mxu2 }
 0x47f   : > { %3039 = vmatmul.bf16.gmra.mxu2 %v2939_v57 }
 0x486   : > { %v6593_v48 = vpop.f32.mrf.mxu2 }
 0x488   : > { %v2468_v33 = vpop.f32.mrf.mxu0 }
 0x489   : > { %2524 = vrot.lane.b32.xlu0 %v2468_v33, %s5423_s19 }
 0x48a   : > { %v2901_v39 = vpop.xlane.xlu2 %2900 }
 0x48e   : > { %v3015_v22 = vpop.f32.mrf.mxu2 }
 0x490   : > { %v2470_v42 = vpop.f32.mrf.mxu0 }
 0x491   : > { %2526 = vrot.lane.b32.xlu2 %v2470_v42, %s5423_s19  ;;  %3071 = vrot.lane.b32.xlu0 %v3015_v22, %s5424_s21 }
 0x492   : > { %v1978_v28 = vpop.permute.xlu2 %1977 }
 0x493   : > { %2026 = vst.msk [vmem:[#allocation4] sm:$0xff] %vm2025_vm3, %v1978_v28 }
 0x496   : > { %v3017_v27 = vpop.f32.mrf.mxu2 }
 0x497   : > { %3073 = vrot.lane.b32.xlu1 %v3017_v27, %s5424_s21 }
 0x498   : > { %v2473_v4 = vpop.f32.mrf.mxu0 }
 0x499   : > { %1981 = vrot.lane.b32.xlu2 %v6513_v24, %s5422_s28  ;;  %1983 = vrot.lane.b32.xlu0 %v6520_v29, %s5422_s28  ;;  %v2382_v29 = vmul.f32 %v5307_v56, %v6427_v3 }
 0x49f   : > { %2528 = vrot.lane.b32.xlu1 %v2473_v4, %s5423_s19 }
 0x4a0   : > { %v2475_v30 = vpop.f32.mrf.mxu0 }
 0x4a1   : > { %2530 = vrot.lane.b32.xlu2 %v2475_v30, %s5423_s19 }
 0x4a9   : > { %1985 = vrot.lane.b32.xlu2 %v6522_v0, %s5422_s28 }
 0x4b9   : > { %v2344_v10 = vpop.xlane.xlu0 %2343 }
 0x4ba   : > { %5308 = vrcp.f32 %v2344_v10 }
 0x4bb   : > { %5310 = vrcp.f32 %v2895_v46 }
 0x4c0   : > { %v5309_v41 = vpop.eup %5308 }
 0x4c1   : > { %v3020_v20 = vpop.f32.mrf.mxu2  ;;  %v2381_v24 = vmul.f32 %v5309_v41, %v6538_v58  ;;  %v5311_v8 = vpop.eup %5310 }
 0x4c2   : > { %v2897_v13 = vpop.xlane.xlu0 %2896  ;;  %3075 = vrot.lane.b32.xlu0 %v3020_v20, %s5424_s21  ;;  %v2930_v58 = vmul.f32 %v5311_v8, %v6502_v15 }
 0x4c3   : > { %5312 = vrcp.f32 %v2897_v13  ;;  %v2392_v54 = vpack.c.bf16 %v2382_v29, %v2381_v24 }
 0x4c4   : > { %5314 = vrcp.f32 %v2348_v26 }
 0x4c5   : > { %2492 = vmatmul.bf16.gmra.mxu0 %v2392_v54 }
 0x4c9   : > { %v5313_v0 = vpop.eup %5312  ;;  %v2350_v61 = vpop.xlane.xlu1 %2349 }
 0x4ca   : > { %v3022_v49 = vpop.f32.mrf.mxu2  ;;  %5316 = vrcp.f32 %v2350_v61  ;;  %1987 = vrot.lane.b32.xlu0 %v6524_v14, %s5422_s28  ;;  %v2931_v3 = vmul.f32 %v5313_v0, %v6546_v32  ;;  %v5315_v60 = vpop.eup %5314 }
 0x4cb   : > { %3077 = vrot.lane.b32.xlu1 %v3022_v49, %s5424_s21  ;;  %v2478_v35 = vpop.f32.mrf.mxu0  ;;  %v2383_v21 = vmul.f32 %v5315_v60, %v6498_v19  ;;  %5318 = vrcp.f32 %v2901_v39 }
 0x4cc   : > { %v2940_v47 = vpack.c.bf16 %v2931_v3, %v2930_v58 }
 0x4ce   : > { %3044 = vmatmul.bf16.gmra.mxu2 %v2940_v47 }
 0x4d0   : > { %v5317_v6 = vpop.eup %5316 }
 0x4d1   : > { %v2384_v23 = vmul.f32 %v5317_v6, %v6557_v55  ;;  %v2352_v55 = vpop.xlane.xlu1 %2351  ;;  %v5319_v52 = vpop.eup %5318 }
 0x4d2   : > { %v3025_v16 = vpop.f32.mrf.mxu2  ;;  %v2933_v40 = vmul.f32 %v5319_v52, %v6516_v9 }
 0x4d3   : > { %2532 = vrot.lane.b32.xlu1 %v2478_v35, %s5423_s19  ;;  %3079 = vrot.lane.b32.xlu0 %v3025_v16, %s5424_s21  ;;  %v2480_v15 = vpop.f32.mrf.mxu0  ;;  %v2393_v14 = vpack.c.bf16 %v2384_v23, %v2383_v21 }
 0x4d4   : > { %2534 = vrot.lane.b32.xlu2 %v2480_v15, %s5423_s19 }
 0x4d5   : > { %2497 = vmatmul.bf16.gmra.mxu0 %v2393_v14 }
 0x4d9   : > { %v2899_v5 = vpop.xlane.xlu0 %2898 }
 0x4da   : > { %v3027_v32 = vpop.f32.mrf.mxu2  ;;  %5320 = vrcp.f32 %v2899_v5 }
 0x4db   : > { %3081 = vrot.lane.b32.xlu1 %v3027_v32, %s5424_s21  ;;  %1991 = vrot.lane.b32.xlu0 %v6533_v17, %s5422_s28  ;;  %v2483_v19 = vpop.f32.mrf.mxu0  ;;  %5322 = vrcp.f32 %v2352_v55 }
 0x4dc   : > { %1989 = vrot.lane.b32.xlu2 %v6528_v53, %s5422_s28 }
 0x4e0   : > { %v5321_v34 = vpop.eup %5320 }
 0x4e1   : > { %v2354_v11 = vpop.xlane.xlu0 %2353  ;;  %v2932_v38 = vmul.f32 %v5321_v34, %v6571_v12  ;;  %v5323_v53 = vpop.eup %5322 }
 0x4e2   : > { %v3030_v59 = vpop.f32.mrf.mxu2  ;;  %5324 = vrcp.f32 %v2354_v11  ;;  %v2385_v63 = vmul.f32 %v5323_v53, %v6567_v44 }
 0x4e3   : > { %2536 = vrot.lane.b32.xlu1 %v2483_v19, %s5423_s19  ;;  %3083 = vrot.lane.b32.xlu0 %v3030_v59, %s5424_s21  ;;  %v2485_v17 = vpop.f32.mrf.mxu0  ;;  %v2941_v62 = vpack.c.bf16 %v2933_v40, %v2932_v38 }
 0x4e4   : > { %2538 = vrot.lane.b32.xlu2 %v2485_v17, %s5423_s19 }
 0x4e5   : > { %3049 = vmatmul.bf16.gmra.mxu2 %v2941_v62 }
 0x4e8   : > { %v5325_v36 = vpop.eup %5324 }
 0x4e9   : > { %v1980_v45 = vpop.permute.xlu1 %1979  ;;  %v2386_v12 = vmul.f32 %v5325_v36, %v6578_v18 }
 0x4ea   : > { %2027 = vst.msk [vmem:[#allocation4 + $0x8] sm:$0xff] %vm2025_vm3, %v1980_v45  ;;  %v3032_v9 = vpop.f32.mrf.mxu2 }
 0x4eb   : > { %3085 = vrot.lane.b32.xlu1 %v3032_v9, %s5424_s21  ;;  %1995 = vrot.lane.b32.xlu0 %v6555_v37, %s5422_s28  ;;  %v2527_v57 = vpop.permute.xlu2 %2526  ;;  %v2394_v26 = vpack.c.bf16 %v2386_v12, %v2385_v63 }
 0x4ec   : > { %2574 = vst.msk [vmem:[#allocation4 + $0x8] sm:$0xff] %vm2572_vm4, %v2527_v57  ;;  %1993 = vrot.lane.b32.xlu2 %v6541_v50, %s5422_s28  ;;  %v822_v57 = vld [vmem:[%s5572_s26] sm:$0xff]  }
 0x4ed   : > { %2502 = vmatmul.bf16.gmra.mxu0 %v2394_v26  ;;  %v6713_v26 = vld [vmem:[%s7457_s7] ss:$0 sm:$0xff] }
 0x4f2   : > { %v3035_v33 = vpop.f32.mrf.mxu2 }
 0x4f3   : > { %3087 = vrot.lane.b32.xlu0 %v3035_v33, %s5424_s21  ;;  %v2488_v44 = vpop.f32.mrf.mxu0  ;;  %v1982_v18 = vpop.permute.xlu2 %1981  ;;  %v838_v33 = vunpack.c.l.bf16 %v822_v57 }
 0x4f4   : > { %2028 = vst.msk [vmem:[#allocation4 + $0x10] sm:$0xff] %vm2025_vm3, %v1982_v18  ;;  %2540 = vrot.lane.b32.xlu1 %v2488_v44, %s5423_s19 }
 0x4fa   : > { %v3037_v51 = vpop.f32.mrf.mxu2 }
 0x4fb   : > { %1999 = vrot.lane.b32.xlu0 %v6573_v2, %s5422_s28  ;;  %v2490_v37 = vpop.f32.mrf.mxu0  ;;  %v2525_v39 = vpop.permute.xlu0 %2524 }
 0x4fc   : > { %2573 = vst.msk [vmem:[#allocation4] sm:$0xff] %vm2572_vm4, %v2525_v39  ;;  %v2531_v22 = vpop.permute.xlu2 %2530  ;;  %2542 = vrot.lane.b32.xlu2 %v2490_v37, %s5423_s19  ;;  %3089 = vrot.lane.b32.xlu1 %v3037_v51, %s5424_s21  ;;  %v839_v39 = vunpack.c.h.bf16 %v822_v57 }
 0x502   : > { %v3040_v50 = vpop.f32.mrf.mxu2 }
 0x503   : > { %3091 = vrot.lane.b32.xlu0 %v3040_v50, %s5424_s21  ;;  %v3072_v42 = vpop.permute.xlu0 %3071 }
 0x504   : > { %3120 = vst.msk [vmem:[#allocation4] sm:$0xff] %vm3119_vm5, %v3072_v42  ;;  %v1986_v28 = vpop.permute.xlu2 %1985  ;;  %1997 = vrot.lane.b32.xlu2 %v6565_v1, %s5422_s28 }
 0x505   : > { %2030 = vst.msk [vmem:[#allocation4 + $0x20] sm:$0xff] %vm2025_vm3, %v1986_v28 }
 0x509   : > { %v3074_v2 = vpop.permute.xlu1 %3073 }
 0x50a   : > { %3121 = vst.msk [vmem:[#allocation4 + $0x8] sm:$0xff] %vm3119_vm5, %v3074_v2  ;;  %v3042_v58 = vpop.f32.mrf.mxu2 }
 0x50b   : > { %2003 = vrot.lane.b32.xlu0 %v6585_v25, %s5422_s28  ;;  %v1984_v27 = vpop.permute.xlu0 %1983  ;;  %v3136_v30 = vld [vmem:[#allocation4] sm:$0xff] }
 0x50c   : > { %2029 = vst.msk [vmem:[#allocation4 + $0x18] sm:$0xff] %vm2025_vm3, %v1984_v27 }
 0x50d   : > { %2576 = vst.msk [vmem:[#allocation4 + $0x18] sm:$0xff] %vm2572_vm4, %v2531_v22 }
 0x511   : > { %v2529_v4 = vpop.permute.xlu1 %2528  ;;  %v3137_v10 = vld [vmem:[#allocation4 + $0x8] sm:$0xff] }
 0x512   : > { %2575 = vst.msk [vmem:[#allocation4 + $0x10] sm:$0xff] %vm2572_vm4, %v2529_v4  ;;  %v3152_v56 = vpack.c.bf16 %v3137_v10, %v3136_v30 }
 0x514   : > { %4870 = vmatmul.msk.bf16.vlgmr.msrb.gmra.mxu3 %vm618_vm0, %v3152_v56 }
 0x52e   : > { %v2535_v1 = vpop.permute.xlu2 %2534 }
 0x534   : > { %v3076_v46 = vpop.permute.xlu0 %3075 }
 0x535   : > { %3122 = vst.msk [vmem:[#allocation4 + $0x10] sm:$0xff] %vm3119_vm5, %v3076_v46 }
 0x536   : > { %v1990_v41 = vpop.permute.xlu2 %1989 }
 0x537   : > { %2032 = vst.msk [vmem:[#allocation4 + $0x30] sm:$0xff] %vm2025_vm3, %v1990_v41 }
 0x53c   : > { %v1988_v20 = vpop.permute.xlu0 %1987  ;;  %v3138_v8 = vld [vmem:[#allocation4 + $0x10] sm:$0xff] }
 0x53d   : > { %v3078_v25 = vpop.permute.xlu1 %3077  ;;  %2031 = vst.msk [vmem:[#allocation4 + $0x28] sm:$0xff] %vm2025_vm3, %v1988_v20 }
 0x53e   : > { %3123 = vst.msk [vmem:[#allocation4 + $0x18] sm:$0xff] %vm3119_vm5, %v3078_v25  ;;  %v2539_v24 = vpop.permute.xlu2 %2538 }
 0x53f   : > { %2578 = vst.msk [vmem:[#allocation4 + $0x28] sm:$0xff] %vm2572_vm4, %v2535_v1 }
 0x542   : > { %v2493_v29 = vpop.f32.mrf.mxu0 }
 0x543   : > { %2544 = vrot.lane.b32.xlu1 %v2493_v29, %s5423_s19 }
 0x545   : > { %v2533_v13 = vpop.permute.xlu1 %2532  ;;  %v3080_v54 = vpop.permute.xlu0 %3079  ;;  %v3139_v0 = vld [vmem:[#allocation4 + $0x18] sm:$0xff] }
 0x546   : > { %2577 = vst.msk [vmem:[#allocation4 + $0x20] sm:$0xff] %vm2572_vm4, %v2533_v13  ;;  %v3153_v61 = vpack.c.bf16 %v3139_v0, %v3138_v8  ;;  %v1994_v49 = vpop.permute.xlu2 %1993 }
 0x547   : > { %3124 = vst.msk [vmem:[#allocation4 + $0x20] sm:$0xff] %vm3119_vm5, %v3080_v54 }
 0x548   : > { %2034 = vst.msk [vmem:[#allocation4 + $0x40] sm:$0xff] %vm2025_vm3, %v1994_v49  ;;  %4871 = vmatmul.msk.bf16.gmra.mxu3 %vm618_vm0, %v3153_v61 }
 0x54a   : > { %v2495_v3 = vpop.f32.mrf.mxu0 }
 0x54b   : > { %3093 = vrot.lane.b32.xlu1 %v3042_v58, %s5424_s21  ;;  %2546 = vrot.lane.b32.xlu2 %v2495_v3, %s5423_s19 }
 0x54d   : > { %v3082_v35 = vpop.permute.xlu1 %3081  ;;  %v1992_v47 = vpop.permute.xlu0 %1991 }
 0x54e   : > { %3125 = vst.msk [vmem:[#allocation4 + $0x28] sm:$0xff] %vm3119_vm5, %v3082_v35  ;;  %v3140_v16 = vld [vmem:[#allocation4 + $0x20] sm:$0xff] }
 0x54f   : > { %2033 = vst.msk [vmem:[#allocation4 + $0x38] sm:$0xff] %vm2025_vm3, %v1992_v47 }
 0x550   : > { %2580 = vst.msk [vmem:[#allocation4 + $0x38] sm:$0xff] %vm2572_vm4, %v2539_v24  ;;  %v824_v24 = vld [vmem:[%s5572_s26 + $0x8] sm:$0xff]  }
 0x551   : > { %v3045_v43 = vpop.f32.mrf.mxu2  ;;  %v840_v29 = vunpack.c.l.bf16 %v824_v24  ;;  %v841_v3 = vunpack.c.h.bf16 %v824_v24 }
 0x552   : > { %3095 = vrot.lane.b32.xlu0 %v3045_v43, %s5424_s21  ;;  %v2498_v60 = vpop.f32.mrf.mxu0 }
 0x553   : > { %2001 = vrot.lane.b32.xlu2 %v6580_v31, %s5422_s28  ;;  %2548 = vrot.lane.b32.xlu1 %v2498_v60, %s5423_s19 }
 0x555   : > { %v2537_v6 = vpop.permute.xlu1 %2536  ;;  %v3141_v21 = vld [vmem:[#allocation4 + $0x28] sm:$0xff]  ;;  %v3084_v23 = vpop.permute.xlu0 %3083 }
 0x556   : > { %2579 = vst.msk [vmem:[#allocation4 + $0x30] sm:$0xff] %vm2572_vm4, %v2537_v6  ;;  %v3154_v15 = vpack.c.bf16 %v3141_v21, %v3140_v16  ;;  %v2543_v14 = vpop.permute.xlu2 %2542  ;;  %v826_v21 = vld [vmem:[%s5572_s26 + $0x10] sm:$0xff]  }
 0x557   : > { %3126 = vst.msk [vmem:[#allocation4 + $0x30] sm:$0xff] %vm3119_vm5, %v3084_v23 }
 0x558   : > { %4872 = vmatmul.msk.bf16.gmra.mxu3 %vm618_vm0, %v3154_v15  ;;  %v842_v15 = vunpack.c.l.bf16 %v826_v21 }
 0x559   : > { %v3047_v32 = vpop.f32.mrf.mxu2 }
 0x55a   : > { %2007 = vrot.lane.b32.xlu0 %v6593_v48, %s5422_s28  ;;  %v2500_v5 = vpop.f32.mrf.mxu0 }
 0x55b   : > { %3097 = vrot.lane.b32.xlu1 %v3047_v32, %s5424_s21  ;;  %2550 = vrot.lane.b32.xlu2 %v2500_v5, %s5423_s19 }
 0x55d   : > { %v3086_v31 = vpop.permute.xlu1 %3085  ;;  %v1996_v19 = vpop.permute.xlu0 %1995 }
 0x55e   : > { %3127 = vst.msk [vmem:[#allocation4 + $0x38] sm:$0xff] %vm3119_vm5, %v3086_v31  ;;  %v1998_v55 = vpop.permute.xlu2 %1997  ;;  %v3142_v52 = vld [vmem:[#allocation4 + $0x30] sm:$0xff] }
 0x55f   : > { %2035 = vst.msk [vmem:[#allocation4 + $0x48] sm:$0xff] %vm2025_vm3, %v1996_v19 }
 0x560   : > { %2582 = vst.msk [vmem:[#allocation4 + $0x48] sm:$0xff] %vm2572_vm4, %v2543_v14 }
 0x561   : > { %2036 = vst.msk [vmem:[#allocation4 + $0x50] sm:$0xff] %vm2025_vm3, %v1998_v55 }
 0x563   : > { %2005 = vrot.lane.b32.xlu2 %v6591_v7, %s5422_s28 }
 0x565   : > { %v3088_v48 = vpop.permute.xlu0 %3087  ;;  %v3143_v34 = vld [vmem:[#allocation4 + $0x38] sm:$0xff] }
 0x566   : > { %v2541_v11 = vpop.permute.xlu1 %2540  ;;  %v3155_v38 = vpack.c.bf16 %v3143_v34, %v3142_v52 }
 0x567   : > { %2581 = vst.msk [vmem:[#allocation4 + $0x40] sm:$0xff] %vm2572_vm4, %v2541_v11 }
 0x568   : > { %3128 = vst.msk [vmem:[#allocation4 + $0x40] sm:$0xff] %vm3119_vm5, %v3088_v48  ;;  %4873 = vmatmul.msk.bf16.gmra.mxu3 %vm618_vm0, %v3155_v38  ;;  %v3050_v40 = vpop.f32.mrf.mxu2  ;;  %v843_v48 = vunpack.c.h.bf16 %v826_v21 }
 0x569   : > { %3099 = vrot.lane.b32.xlu0 %v3050_v40, %s5424_s21 }
 0x56a   : > { %v2503_v59 = vpop.f32.mrf.mxu0 }
 0x56b   : > { %2552 = vrot.lane.b32.xlu1 %v2503_v59, %s5423_s19  ;;  %v828_v59 = vld [vmem:[%s5572_s26 + $0x18] sm:$0xff]  }
 0x56d   : > { %v2000_v17 = vpop.permute.xlu0 %1999 }
 0x56e   : > { %2037 = vst.msk [vmem:[#allocation4 + $0x58] sm:$0xff] %vm2025_vm3, %v2000_v17  ;;  %v3090_v7 = vpop.permute.xlu1 %3089  ;;  %v844_v17 = vunpack.c.l.bf16 %v828_v59 }
 0x56f   : > { %3129 = vst.msk [vmem:[#allocation4 + $0x48] sm:$0xff] %vm3119_vm5, %v3090_v7  ;;  %v3144_v45 = vld [vmem:[#allocation4 + $0x40] sm:$0xff] }
 0x570   : > { %v3052_v62 = vpop.f32.mrf.mxu2 }
 0x572   : > { %v2505_v53 = vpop.f32.mrf.mxu0 }
 0x573   : > { %2554 = vrot.lane.b32.xlu2 %v2505_v53, %s5423_s19  ;;  %3101 = vrot.lane.b32.xlu1 %v3052_v62, %s5424_s21 }
 0x575   : > { %v3092_v36 = vpop.permute.xlu0 %3091 }
 0x576   : > { %v3145_v63 = vld [vmem:[#allocation4 + $0x48] sm:$0xff] }
 0x577   : > { %v3156_v12 = vpack.c.bf16 %v3145_v63, %v3144_v45 }
 0x579   : > { %4874 = vmatmul.msk.bf16.gmra.mxu3 %vm618_vm0, %v3156_v12 }
 0x57d   : > { %v2004_v9 = vpop.permute.xlu0 %2003 }
 0x57e   : > { %2039 = vst.msk [vmem:[#allocation4 + $0x68] sm:$0xff] %vm2025_vm3, %v2004_v9  ;;  %v5425_v9 = vmov 32.0  }
 0x57f   : > { %5326 = vrcp.f32 %v5425_v9 }
 0x585   : > { %v5327_v57 = vpop.eup %5326 }
 0x586   : > { %vm3324_vm6 = vweird.f32 %v5327_v57 }
 0x597   : > { %v3213_v44 = vpop.f32.mrf.mxu3 }
 0x598   : > { %v3214_v18 = vadd.f32 %v6713_v26, %v3213_v44 }
 0x59a   : > { %v6716_v51 = vadd.f32 %v3214_v18, %v838_v33  ;;  %v3320_v33 = vmul.f32 32.0, %v5327_v57 }
 0x59c   : > { %v3271_v37 = vsel %vm618_vm0, %v6716_v51, 0.0  ;;  %v3321_v44 = vsub.f32 1.0, %v3320_v33 }
 0x59d   : > { %3272 = vadd.xlane.f32.xlu2 %v3271_v37 }
 0x59e   : > { %v3322_v18 = vmul.f32 %v5327_v57, %v3321_v44 }
 0x59f   : > { %v3215_v22 = vpop.f32.mrf.mxu3 }
 0x5a0   : > { %v3216_v50 = vadd.f32 %v6713_v26, %v3215_v22  ;;  %v3323_v37 = vadd.f32 %v5327_v57, %v3322_v18 }
 0x5a2   : > { %v6721_v42 = vadd.f32 %v3216_v50, %v839_v39  ;;  %v6771_v39 = vsel %vm3324_vm6, %v5327_v57, %v3323_v37  ;;  %v834_v57 = vld [vmem:[%s5572_s26 + $0x30] sm:$0xff]  }
 0x5a3   : > { %v850_v44 = vunpack.c.l.bf16 %v834_v57 }
 0x5a4   : > { %v3274_v28 = vsel %vm618_vm0, %v6721_v42, 0.0 }
 0x5a5   : > { %3275 = vadd.xlane.f32.xlu0 %v3274_v28  ;;  %v2547_v2 = vpop.permute.xlu2 %2546 }
 0x5a6   : > { %2584 = vst.msk [vmem:[#allocation4 + $0x58] sm:$0xff] %vm2572_vm4, %v2547_v2 }
 0x5ad   : > { %v2002_v27 = vpop.permute.xlu2 %2001 }
 0x5ae   : > { %2038 = vst.msk [vmem:[#allocation4 + $0x60] sm:$0xff] %vm2025_vm3, %v2002_v27 }
 0x5b5   : > { %v2545_v4 = vpop.permute.xlu1 %2544  ;;  %v2551_v30 = vpop.permute.xlu2 %2550 }
 0x5b6   : > { %2583 = vst.msk [vmem:[#allocation4 + $0x50] sm:$0xff] %vm2572_vm4, %v2545_v4  ;;  %v845_v4 = vunpack.c.h.bf16 %v828_v59 }
 0x5b7   : > { %3130 = vst.msk [vmem:[#allocation4 + $0x50] sm:$0xff] %vm3119_vm5, %v3092_v36 }
 0x5b8   : > { %2586 = vst.msk [vmem:[#allocation4 + $0x68] sm:$0xff] %vm2572_vm4, %v2551_v30 }
 0x5bd   : > { %v3094_v10 = vpop.permute.xlu1 %3093  ;;  %v2006_v56 = vpop.permute.xlu2 %2005 }
 0x5be   : > { %3131 = vst.msk [vmem:[#allocation4 + $0x58] sm:$0xff] %vm3119_vm5, %v3094_v10  ;;  %v3146_v41 = vld [vmem:[#allocation4 + $0x50] sm:$0xff] }
 0x5bf   : > { %2040 = vst.msk [vmem:[#allocation4 + $0x70] sm:$0xff] %vm2025_vm3, %v2006_v56 }
 0x5c4   : > { %v3096_v1 = vpop.permute.xlu0 %3095 }
 0x5c5   : > { %v2549_v46 = vpop.permute.xlu1 %2548  ;;  %v3147_v25 = vld [vmem:[#allocation4 + $0x58] sm:$0xff] }
 0x5c6   : > { %2585 = vst.msk [vmem:[#allocation4 + $0x60] sm:$0xff] %vm2572_vm4, %v2549_v46  ;;  %v3157_v20 = vpack.c.bf16 %v3147_v25, %v3146_v41 }
 0x5c7   : > { %3132 = vst.msk [vmem:[#allocation4 + $0x60] sm:$0xff] %vm3119_vm5, %v3096_v1 }
 0x5c8   : > { %4875 = vmatmul.msk.bf16.gmra.mxu3 %vm618_vm0, %v3157_v20 }
 0x5cb   : > { %v3218_v13 = vpop.f32.mrf.mxu3 }
 0x5cc   : > { %v3219_v54 = vadd.f32 %v6713_v26, %v3218_v13  ;;  %v2008_v8 = vpop.permute.xlu0 %2007 }
 0x5cd   : > { %2041 = vst.msk [vmem:[#allocation4 + $0x78] sm:$0xff] %vm2025_vm3, %v2008_v8  ;;  %v3098_v61 = vpop.permute.xlu1 %3097  ;;  %v2555_v49 = vpop.permute.xlu2 %2554 }
 0x5ce   : > { %v6737_v0 = vadd.f32 %v3219_v54, %v840_v29  ;;  %3133 = vst.msk [vmem:[#allocation4 + $0x68] sm:$0xff] %vm3119_vm5, %v3098_v61  ;;  %v3148_v60 = vld [vmem:[#allocation4 + $0x60] sm:$0xff] }
 0x5cf   : > { %2588 = vst.msk [vmem:[#allocation4 + $0x78] sm:$0xff] %vm2572_vm4, %v2555_v49 }
 0x5d0   : > { %v3277_v58 = vsel %vm618_vm0, %v6737_v0, 0.0 }
 0x5d1   : > { %3278 = vadd.xlane.f32.xlu1 %v3277_v58 }
 0x5d3   : > { %v3220_v35 = vpop.f32.mrf.mxu3 }
 0x5d4   : > { %v3221_v47 = vadd.f32 %v6713_v26, %v3220_v35 }
 0x5d5   : > { %v3149_v6 = vld [vmem:[#allocation4 + $0x68] sm:$0xff] }
 0x5d6   : > { %v6745_v43 = vadd.f32 %v3221_v47, %v841_v3  ;;  %v3158_v16 = vpack.c.bf16 %v3149_v6, %v3148_v60 }
 0x5d8   : > { %v3280_v23 = vsel %vm618_vm0, %v6745_v43, 0.0  ;;  %4876 = vmatmul.msk.bf16.gmra.mxu3 %vm618_vm0, %v3158_v16 }
 0x5d9   : > { %3281 = vadd.xlane.f32.xlu2 %v3280_v23 }
 0x5db   : > { %v3223_v14 = vpop.f32.mrf.mxu3  ;;  %v3100_v19 = vpop.permute.xlu0 %3099 }
 0x5dc   : > { %v3224_v32 = vadd.f32 %v6713_v26, %v3223_v14 }
 0x5dd   : > { %v2553_v31 = vpop.permute.xlu1 %2552 }
 0x5de   : > { %v6752_v5 = vadd.f32 %v3224_v32, %v842_v15  ;;  %2587 = vst.msk [vmem:[#allocation4 + $0x70] sm:$0xff] %vm2572_vm4, %v2553_v31 }
 0x5df   : > { %3134 = vst.msk [vmem:[#allocation4 + $0x70] sm:$0xff] %vm3119_vm5, %v3100_v19 }
 0x5e0   : > { %v3283_v55 = vsel %vm618_vm0, %v6752_v5, 0.0 }
 0x5e1   : > { %3284 = vadd.xlane.f32.xlu0 %v3283_v55 }
 0x5e3   : > { %v3225_v52 = vpop.f32.mrf.mxu3 }
 0x5e4   : > { %v3226_v34 = vadd.f32 %v6713_v26, %v3225_v52 }
 0x5e5   : > { %v3102_v38 = vpop.permute.xlu1 %3101 }
 0x5e6   : > { %v6759_v11 = vadd.f32 %v3226_v34, %v843_v48  ;;  %3135 = vst.msk [vmem:[#allocation4 + $0x78] sm:$0xff] %vm3119_vm5, %v3102_v38  ;;  %v3150_v53 = vld [vmem:[#allocation4 + $0x70] sm:$0xff] }
 0x5e8   : > { %v3286_v40 = vsel %vm618_vm0, %v6759_v11, 0.0 }
 0x5e9   : > { %3287 = vadd.xlane.f32.xlu1 %v3286_v40 }
 0x5eb   : > { %v3228_v7 = vpop.f32.mrf.mxu3 }
 0x5ec   : > { %v3229_v62 = vadd.f32 %v6713_v26, %v3228_v7 }
 0x5ed   : > { %v3151_v36 = vld [vmem:[#allocation4 + $0x78] sm:$0xff] }
 0x5ee   : > { %v6766_v45 = vadd.f32 %v3229_v62, %v844_v17  ;;  %v3159_v63 = vpack.c.bf16 %v3151_v36, %v3150_v53 }
 0x5f0   : > { %v3289_v12 = vsel %vm618_vm0, %v6766_v45, 0.0  ;;  %4877 = vmatmul.msk.bf16.gmra.mxu3 %vm618_vm0, %v3159_v63 }
 0x5f1   : > { %3290 = vadd.xlane.f32.xlu1 %v3289_v12 }
 0x5f3   : > { %v3230_v2 = vpop.f32.mrf.mxu3 }
 0x5f4   : > { %v3231_v30 = vadd.f32 %v6713_v26, %v3230_v2 }
 0x5f6   : > { %v6782_v46 = vadd.f32 %v3231_v30, %v845_v4 }
 0x5f8   : > { %v3292_v54 = vsel %vm618_vm0, %v6782_v46, 0.0 }
 0x5fc   : > { %v3233_v25 = vpop.f32.mrf.mxu3 }
 0x5fd   : > { %v3234_v29 = vadd.f32 %v6713_v26, %v3233_v25 }
 0x604   : > { %v3235_v61 = vpop.f32.mrf.mxu3 }
 0x605   : > { %v3236_v60 = vadd.f32 %v6713_v26, %v3235_v61 }
 0x610   : > { %v3273_v22 = vpop.xlane.xlu2 %3272 }
 0x611   : > { %v3326_v50 = vmul.f32 %v6771_v39, %v3273_v22 }
 0x613   : > { %v6775_v28 = vsub.f32 %v6716_v51, %v3326_v50  ;;  %v830_v51 = vld [vmem:[%s5572_s26 + $0x20] sm:$0xff]  }
 0x614   : > { %v846_v24 = vunpack.c.l.bf16 %v830_v51  ;;  %v847_v47 = vunpack.c.h.bf16 %v830_v51 }
 0x615   : > { %v3358_v27 = vmul.f32 %v6775_v28, %v6775_v28 }
 0x616   : > { %v6794_v8 = vadd.f32 %v3234_v29, %v846_v24  ;;  %v6807_v15 = vadd.f32 %v3236_v60, %v847_v47  ;;  %v5019_v47 = vld [vmem:[%s7458_s8] sm:$0xff] }
 0x617   : > { %v3374_v10 = vsel %vm618_vm0, %v3358_v27, 0.0 }
 0x618   : > { %v3276_v56 = vpop.xlane.xlu0 %3275  ;;  %3375 = vadd.xlane.f32.xlu2 %v3374_v10  ;;  %v3298_v55 = vsel %vm618_vm0, %v6807_v15, 0.0 }
 0x619   : > { %v3327_v1 = vmul.f32 %v6771_v39, %v3276_v56  ;;  %v851_v56 = vunpack.c.h.bf16 %v834_v57 }
 0x61b   : > { %v6785_v41 = vsub.f32 %v6721_v42, %v3327_v1  ;;  %v3295_v42 = vsel %vm618_vm0, %v6794_v8, 0.0 }
 0x61d   : > { %v3359_v20 = vmul.f32 %v6785_v41, %v6785_v41 }
 0x61f   : > { %v3377_v13 = vsel %vm618_vm0, %v3359_v20, 0.0  ;;  %v836_v20 = vld [vmem:[%s5572_s26 + $0x38] sm:$0xff]  }
 0x620   : > { %3378 = vadd.xlane.f32.xlu0 %v3377_v13  ;;  %3293 = vadd.xlane.f32.xlu2 %v3292_v54  ;;  %v852_v24 = vunpack.c.l.bf16 %v836_v20 }
 0x628   : > { %3296 = vadd.xlane.f32.xlu2 %v3295_v42 }
 0x644   : > { %v3279_v49 = vpop.xlane.xlu1 %3278 }
 0x645   : > { %v3328_v58 = vmul.f32 %v6771_v39, %v3279_v49  ;;  %v5020_v49 = vld [vmem:[%s7458_s8 + $0x8] sm:$0xff] }
 0x646   : > { %3726 = vmatpush.bf16.msrb.mxu0 %v5020_v49 }
 0x647   : > { %v6800_v3 = vsub.f32 %v6737_v0, %v3328_v58  ;;  %v832_v0 = vld [vmem:[%s5572_s26 + $0x28] sm:$0xff]  }
 0x648   : > { %v848_v31 = vunpack.c.l.bf16 %v832_v0  ;;  %v849_v17 = vunpack.c.h.bf16 %v832_v0 }
 0x649   : > { %v3360_v35 = vmul.f32 %v6800_v3, %v6800_v3 }
 0x64a   : > { %3727 = vmatpush.bf16.msrb.mxu0 %v5019_v47 }
 0x64b   : > { %v3380_v6 = vsel %vm618_vm0, %v3360_v35, 0.0  ;;  %v3238_v16 = vpop.f32.mrf.mxu3 }
 0x64c   : > { %3381 = vadd.xlane.f32.xlu0 %v3380_v6  ;;  %v3282_v21 = vpop.xlane.xlu2 %3281  ;;  %v3239_v19 = vadd.f32 %v6713_v26, %v3238_v16 }
 0x64d   : > { %v3329_v23 = vmul.f32 %v6771_v39, %v3282_v21 }
 0x64e   : > { %v6820_v38 = vadd.f32 %v3239_v19, %v848_v31 }
 0x64f   : > { %v6810_v14 = vsub.f32 %v6745_v43, %v3329_v23 }
 0x650   : > { %v3301_v62 = vsel %vm618_vm0, %v6820_v38, 0.0 }
 0x651   : > { %v3361_v32 = vmul.f32 %v6810_v14, %v6810_v14 }
 0x653   : > { %v3383_v48 = vsel %vm618_vm0, %v3361_v32, 0.0  ;;  %v3240_v43 = vpop.f32.mrf.mxu3 }
 0x654   : > { %v3285_v52 = vpop.xlane.xlu0 %3284  ;;  %3299 = vadd.xlane.f32.xlu0 %v3298_v55  ;;  %3384 = vadd.xlane.f32.xlu1 %v3383_v48  ;;  %v3241_v7 = vadd.f32 %v6713_v26, %v3240_v43 }
 0x655   : > { %v3330_v34 = vmul.f32 %v6771_v39, %v3285_v52 }
 0x656   : > { %v6832_v12 = vadd.f32 %v3241_v7, %v849_v17 }
 0x657   : > { %v6823_v40 = vsub.f32 %v6752_v5, %v3330_v34 }
 0x658   : > { %v3304_v22 = vsel %vm618_vm0, %v6832_v12, 0.0 }
 0x659   : > { %v3362_v59 = vmul.f32 %v6823_v40, %v6823_v40 }
 0x65b   : > { %v3386_v53 = vsel %vm618_vm0, %v3362_v59, 0.0  ;;  %v3243_v9 = vpop.f32.mrf.mxu3 }
 0x65c   : > { %v3288_v36 = vpop.xlane.xlu1 %3287  ;;  %3302 = vadd.xlane.f32.xlu0 %v3301_v62  ;;  %3387 = vadd.xlane.f32.xlu1 %v3386_v53  ;;  %v3244_v18 = vadd.f32 %v6713_v26, %v3243_v9  ;;  %v853_v9 = vunpack.c.h.bf16 %v836_v20 }
 0x65d   : > { %v3331_v63 = vmul.f32 %v6771_v39, %v3288_v36 }
 0x65e   : > { %v6845_v2 = vadd.f32 %v3244_v18, %v850_v44 }
 0x65f   : > { %v6835_v5 = vsub.f32 %v6759_v11, %v3331_v63 }
 0x660   : > { %v3307_v10 = vsel %vm618_vm0, %v6845_v2, 0.0 }
 0x661   : > { %v3363_v33 = vmul.f32 %v6835_v5, %v6835_v5 }
 0x663   : > { %v3389_v37 = vsel %vm618_vm0, %v3363_v33, 0.0  ;;  %v3245_v4 = vpop.f32.mrf.mxu3 }
 0x664   : > { %3390 = vadd.xlane.f32.xlu2 %v3389_v37  ;;  %3305 = vadd.xlane.f32.xlu1 %v3304_v22  ;;  %v3291_v50 = vpop.xlane.xlu1 %3290  ;;  %v3246_v1 = vadd.f32 %v6713_v26, %v3245_v4  ;;  %v6894_v22 = vld [vmem:[%s7462_s12] ss:$0 sm:$0xff] }
 0x665   : > { %v3332_v11 = vmul.f32 %v6771_v39, %v3291_v50  ;;  %v6900_v4 = vld [vmem:[%s7463_s13] ss:$0 sm:$0xff] }
 0x666   : > { %v6856_v25 = vadd.f32 %v3246_v1, %v851_v56 }
 0x667   : > { %v6848_v27 = vsub.f32 %v6766_v45, %v3332_v11 }
 0x668   : > { %v3310_v29 = vsel %vm618_vm0, %v6856_v25, 0.0 }
 0x669   : > { %v3364_v30 = vmul.f32 %v6848_v27, %v6848_v27 }
 0x66b   : > { %v3392_v51 = vsel %vm618_vm0, %v3364_v30, 0.0 }
 0x66c   : > { %3308 = vadd.xlane.f32.xlu1 %v3307_v10  ;;  %3393 = vadd.xlane.f32.xlu2 %v3392_v51 }
 0x673   : > { %v3248_v45 = vpop.f32.mrf.mxu3 }
 0x674   : > { %v3249_v13 = vadd.f32 %v6713_v26, %v3248_v45  ;;  %3311 = vadd.xlane.f32.xlu2 %v3310_v29 }
 0x676   : > { %v6862_v54 = vadd.f32 %v3249_v13, %v852_v24 }
 0x678   : > { %v3313_v42 = vsel %vm618_vm0, %v6862_v54, 0.0 }
 0x67c   : > { %3314 = vadd.xlane.f32.xlu2 %v3313_v42 }
 0x68b   : > { %v3376_v61 = vpop.xlane.xlu2 %3375 }
 0x68c   : > { %v3422_v58 = vmul.f32 %v3376_v61, %v6771_v39 }
 0x68e   : > { %v3438_v35 = vadd.f32 1e-05, %v3422_v58 }
 0x690   : > { %5328 = vrsqrt.f32 %v3438_v35  ;;  %vm3460_vm8 = vweird.f32 %v3438_v35 }
 0x693   : > { %v3379_v60 = vpop.xlane.xlu0 %3378  ;;  %v3294_v6 = vpop.xlane.xlu2 %3293 }
 0x694   : > { %v3423_v16 = vmul.f32 %v3379_v60, %v6771_v39  ;;  %v3333_v21 = vmul.f32 %v6771_v39, %v3294_v6 }
 0x696   : > { %v5329_v23 = vpop.eup %5328  ;;  %v3439_v0 = vadd.f32 1e-05, %v3423_v16  ;;  %v6876_v32 = vsub.f32 %v6782_v46, %v3333_v21  ;;  %v3250_v46 = vpop.f32.mrf.mxu3 }
 0x697   : > { %v3455_v31 = vmul.f32 %v5329_v23, %v3438_v35  ;;  %vm3461_vm7 = vweird.f32 %v5329_v23  ;;  %v3251_v57 = vadd.f32 %v6713_v26, %v3250_v46 }
 0x698   : > { %5330 = vrsqrt.f32 %v3439_v0  ;;  %v3365_v19 = vmul.f32 %v6876_v32, %v6876_v32  ;;  %vm3462_vm9 = vmor %vm3460_vm8, %vm3461_vm7  ;;  %vm3470_vm11 = vweird.f32 %v3439_v0 }
 0x699   : > { %v3456_v55 = vmul.f32 %v5329_v23, %v3455_v31  ;;  %v6889_v37 = vadd.f32 %v3251_v57, %v853_v9 }
 0x69a   : > { %v3395_v48 = vsel %vm618_vm0, %v3365_v19, 0.0 }
 0x69b   : > { %v3457_v52 = vmul.f32 0.5, %v3456_v55  ;;  %3396 = vadd.xlane.f32.xlu0 %v3395_v48  ;;  %v3297_v34 = vpop.xlane.xlu2 %3296  ;;  %v3316_v56 = vsel %vm618_vm0, %v6889_v37, 0.0 }
 0x69c   : > { %v3334_v43 = vmul.f32 %v6771_v39, %v3297_v34 }
 0x69d   : > { %v3458_v59 = vsub.f32 1.5, %v3457_v52 }
 0x69e   : > { %v5331_v17 = vpop.eup %5330  ;;  %v6883_v7 = vsub.f32 %v6794_v8, %v3334_v43 }
 0x69f   : > { %v3459_v62 = vmul.f32 %v5329_v23, %v3458_v59  ;;  %v3465_v53 = vmul.f32 %v5331_v17, %v3439_v0  ;;  %vm3471_vm10 = vweird.f32 %v5331_v17 }
 0x6a0   : > { %v3366_v36 = vmul.f32 %v6883_v7, %v6883_v7  ;;  %vm3472_vm12 = vmor %vm3470_vm11, %vm3471_vm10 }
 0x6a1   : > { %v3466_v63 = vmul.f32 %v5331_v17, %v3465_v53  ;;  %v3463_v44 = vsel %vm3462_vm9, %v5329_v23, %v3459_v62 }
 0x6a2   : > { %v3398_v33 = vsel %vm618_vm0, %v3366_v36, 0.0  ;;  %v3614_v50 = vmul.f32 %v3463_v44, %v6775_v28 }
 0x6a3   : > { %v3467_v18 = vmul.f32 0.5, %v3466_v63  ;;  %3399 = vadd.xlane.f32.xlu0 %v3398_v33 }
 0x6a4   : > { %v3633_v30 = vmul.f32 %v6894_v22, %v3614_v50 }
 0x6a5   : > { %v3468_v8 = vsub.f32 1.5, %v3467_v18 }
 0x6a6   : > { %v6908_v28 = vadd.f32 %v6900_v4, %v3633_v30 }
 0x6a7   : > { %v3469_v11 = vmul.f32 %v5331_v17, %v3468_v8 }
 0x6a9   : > { %v3473_v26 = vsel %vm3472_vm12, %v5331_v17, %v3469_v11 }
 0x6aa   : > { %v3615_v10 = vmul.f32 %v3473_v26, %v6785_v41 }
 0x6ab   : > { %3317 = vadd.xlane.f32.xlu0 %v3316_v56 }
 0x6ac   : > { %v3634_v1 = vmul.f32 %v6894_v22, %v3615_v10 }
 0x6ae   : > { %v6911_v51 = vadd.f32 %v6900_v4, %v3634_v1 }
 0x6b0   : > { %v3668_v20 = vpack.c.bf16 %v6911_v51, %v6908_v28 }
 0x6b2   : > { %4886 = vmatmul.msk.bf16.vlgmr.msrb.gmra.mxu0 %vm618_vm0, %v3668_v20 }
 0x6bf   : > { %v3382_v24 = vpop.xlane.xlu0 %3381 }
 0x6c0   : > { %v3424_v41 = vmul.f32 %v3382_v24, %v6771_v39 }
 0x6c2   : > { %v3440_v45 = vadd.f32 1e-05, %v3424_v41 }
 0x6c4   : > { %5332 = vrsqrt.f32 %v3440_v45  ;;  %vm3480_vm14 = vweird.f32 %v3440_v45 }
 0x6c7   : > { %v3300_v29 = vpop.xlane.xlu0 %3299  ;;  %v3385_v13 = vpop.xlane.xlu1 %3384 }
 0x6c8   : > { %v3335_v42 = vmul.f32 %v6771_v39, %v3300_v29  ;;  %v3425_v61 = vmul.f32 %v3385_v13, %v6771_v39 }
 0x6ca   : > { %v5333_v49 = vpop.eup %5332  ;;  %v6920_v58 = vsub.f32 %v6807_v15, %v3335_v42  ;;  %v3441_v35 = vadd.f32 1e-05, %v3425_v61 }
 0x6cb   : > { %v3475_v47 = vmul.f32 %v5333_v49, %v3440_v45  ;;  %vm3481_vm13 = vweird.f32 %v5333_v49 }
 0x6cc   : > { %5334 = vrsqrt.f32 %v3441_v35  ;;  %v3367_v60 = vmul.f32 %v6920_v58, %v6920_v58  ;;  %vm3482_vm15 = vmor %vm3480_vm14, %vm3481_vm13  ;;  %vm3490_vm3 = vweird.f32 %v3441_v35 }
 0x6cd   : > { %v3476_v6 = vmul.f32 %v5333_v49, %v3475_v47 }
 0x6ce   : > { %v3401_v16 = vsel %vm618_vm0, %v3367_v60, 0.0 }
 0x6cf   : > { %v3477_v21 = vmul.f32 0.5, %v3476_v6  ;;  %v3303_v23 = vpop.xlane.xlu0 %3302  ;;  %3402 = vadd.xlane.f32.xlu1 %v3401_v16  ;;  %v3388_v0 = vpop.xlane.xlu1 %3387 }
 0x6d0   : > { %v3336_v31 = vmul.f32 %v6771_v39, %v3303_v23  ;;  %v3426_v19 = vmul.f32 %v3388_v0, %v6771_v39 }
 0x6d1   : > { %v3478_v55 = vsub.f32 1.5, %v3477_v21 }
 0x6d2   : > { %v5335_v15 = vpop.eup %5334  ;;  %v6928_v48 = vsub.f32 %v6820_v38, %v3336_v31  ;;  %v3442_v52 = vadd.f32 1e-05, %v3426_v19 }
 0x6d3   : > { %v3479_v34 = vmul.f32 %v5333_v49, %v3478_v55  ;;  %v3485_v43 = vmul.f32 %v5335_v15, %v3441_v35  ;;  %vm3491_vm2 = vweird.f32 %v5335_v15 }
 0x6d4   : > { %5336 = vrsqrt.f32 %v3442_v52  ;;  %v3368_v59 = vmul.f32 %v6928_v48, %v6928_v48  ;;  %vm3492_vm4 = vmor %vm3490_vm3, %vm3491_vm2  ;;  %vm3500_vm6 = vweird.f32 %v3442_v52 }
 0x6d5   : > { %v3486_v17 = vmul.f32 %v5335_v15, %v3485_v43  ;;  %v3483_v62 = vsel %vm3482_vm15, %v5333_v49, %v3479_v34 }
 0x6d6   : > { %v3404_v46 = vsel %vm618_vm0, %v3368_v59, 0.0  ;;  %v3616_v44 = vmul.f32 %v3483_v62, %v6800_v3 }
 0x6d7   : > { %v3487_v53 = vmul.f32 0.5, %v3486_v17  ;;  %3405 = vadd.xlane.f32.xlu1 %v3404_v46  ;;  %v3306_v36 = vpop.xlane.xlu1 %3305  ;;  %v3391_v63 = vpop.xlane.xlu2 %3390 }
 0x6d8   : > { %v3337_v38 = vmul.f32 %v6771_v39, %v3306_v36  ;;  %v3427_v9 = vmul.f32 %v3391_v63, %v6771_v39  ;;  %v3635_v3 = vmul.f32 %v6894_v22, %v3616_v44 }
 0x6d9   : > { %v3488_v57 = vsub.f32 1.5, %v3487_v53 }
 0x6da   : > { %v5337_v33 = vpop.eup %5336  ;;  %v6937_v18 = vsub.f32 %v6832_v12, %v3337_v38  ;;  %v3443_v8 = vadd.f32 1e-05, %v3427_v9  ;;  %v6950_v61 = vadd.f32 %v6900_v4, %v3635_v3 }
 0x6db   : > { %v3489_v50 = vmul.f32 %v5335_v15, %v3488_v57  ;;  %v3495_v11 = vmul.f32 %v5337_v33, %v3442_v52  ;;  %vm3501_vm5 = vweird.f32 %v5337_v33 }
 0x6dc   : > { %5338 = vrsqrt.f32 %v3443_v8  ;;  %v3369_v26 = vmul.f32 %v6937_v18, %v6937_v18  ;;  %vm3502_vm7 = vmor %vm3500_vm6, %vm3501_vm5  ;;  %vm3510_vm9 = vweird.f32 %v3443_v8 }
 0x6dd   : > { %v3493_v30 = vsel %vm3492_vm4, %v5335_v15, %v3489_v50  ;;  %v3496_v10 = vmul.f32 %v5337_v33, %v3495_v11  ;;  %v5025_v11 = vld [vmem:[%s7460_s10 + $0x20] sm:$0xff] }
 0x6de   : > { %v3617_v56 = vmul.f32 %v3493_v30, %v6810_v14  ;;  %v3407_v1 = vsel %vm618_vm0, %v3369_v26, 0.0 }
 0x6df   : > { %v3497_v20 = vmul.f32 0.5, %v3496_v10  ;;  %3408 = vadd.xlane.f32.xlu2 %v3407_v1  ;;  %v3309_v12 = vpop.xlane.xlu1 %3308  ;;  %v3394_v41 = vpop.xlane.xlu2 %3393 }
 0x6e0   : > { %v3338_v24 = vmul.f32 %v6771_v39, %v3309_v12  ;;  %v3636_v45 = vmul.f32 %v6894_v22, %v3617_v56  ;;  %v3428_v9 = vmul.f32 %v3394_v41, %v6771_v39  ;;  %v5024_v56 = vld [vmem:[%s7460_s10 + $0x18] sm:$0xff]  ;;  %v5022_v41 = vld [vmem:[%s7460_s10 + $0x8] sm:$0xff] }
 0x6e1   : > { %v3498_v29 = vsub.f32 1.5, %v3497_v20  ;;  %v5023_v20 = vld [vmem:[%s7460_s10 + $0x10] sm:$0xff] }
 0x6e2   : > { %v5339_v13 = vpop.eup %5338  ;;  %v6947_v42 = vsub.f32 %v6845_v2, %v3338_v24  ;;  %v6953_v14 = vadd.f32 %v6900_v4, %v3636_v45  ;;  %v3444_v57 = vadd.f32 1e-05, %v3428_v9 }
 0x6e3   : > { %v3499_v49 = vmul.f32 %v5337_v33, %v3498_v29  ;;  %v3505_v35 = vmul.f32 %v5339_v13, %v3443_v8  ;;  %vm3511_vm8 = vweird.f32 %v5339_v13  ;;  %v5026_v8 = vld [vmem:[%s7460_s10 + $0x28] sm:$0xff] }
 0x6e4   : > { %v3669_v47 = vpack.c.bf16 %v6953_v14, %v6950_v61  ;;  %v3370_v60 = vmul.f32 %v6947_v42, %v6947_v42  ;;  %vm3512_vm10 = vmor %vm3510_vm9, %vm3511_vm8  ;;  %5340 = vrsqrt.f32 %v3444_v57  ;;  %vm3520_vm12 = vweird.f32 %v3444_v57 }
 0x6e5   : > { %v3506_v6 = vmul.f32 %v5339_v13, %v3505_v35  ;;  %v3503_v16 = vsel %vm3502_vm7, %v5337_v33, %v3499_v49  ;;  %v5028_v33 = vld [vmem:[%s7460_s10 + $0x38] sm:$0xff]  ;;  %v5021_v49 = vld [vmem:[%s7460_s10] sm:$0xff] }
 0x6e6   : > { %4887 = vmatmul.msk.bf16.gmra.mxu0 %vm618_vm0, %v3669_v47  ;;  %v3410_v2 = vsel %vm618_vm0, %v3370_v60, 0.0  ;;  %v3618_v19 = vmul.f32 %v3503_v16, %v6823_v40  ;;  %3861 = vmatpush.bf16.msrb.mxu1 %v5028_v33 }
 0x6e7   : > { %v3507_v21 = vmul.f32 0.5, %v3506_v6  ;;  %3411 = vadd.xlane.f32.xlu0 %v3410_v2  ;;  %v3312_v23 = vpop.xlane.xlu2 %3311 }
 0x6e8   : > { %v3339_v31 = vmul.f32 %v6771_v39, %v3312_v23  ;;  %v3637_v59 = vmul.f32 %v6894_v22, %v3618_v19 }
 0x6e9   : > { %v3508_v0 = vsub.f32 1.5, %v3507_v21 }
 0x6ea   : > { %v6964_v15 = vsub.f32 %v6856_v25, %v3339_v31  ;;  %v6974_v25 = vadd.f32 %v6900_v4, %v3637_v59  ;;  %v5341_v44 = vpop.eup %5340 }
 0x6eb   : > { %v3509_v55 = vmul.f32 %v5339_v13, %v3508_v0  ;;  %v3515_v50 = vmul.f32 %v5341_v44, %v3444_v57  ;;  %vm3521_vm11 = vweird.f32 %v5341_v44 }
 0x6ec   : > { %v3371_v34 = vmul.f32 %v6964_v15, %v6964_v15  ;;  %vm3522_vm13 = vmor %vm3520_vm12, %vm3521_vm11 }
 0x6ed   : > { %v3513_v52 = vsel %vm3512_vm10, %v5339_v13, %v3509_v55  ;;  %v3516_v26 = vmul.f32 %v5341_v44, %v3515_v50 }
 0x6ee   : > { %v3619_v43 = vmul.f32 %v3513_v52, %v6835_v5  ;;  %v3413_v17 = vsel %vm618_vm0, %v3371_v34, 0.0 }
 0x6ef   : > { %3414 = vadd.xlane.f32.xlu1 %v3413_v17  ;;  %v3315_v46 = vpop.xlane.xlu2 %3314  ;;  %v3517_v3 = vmul.f32 0.5, %v3516_v26 }
 0x6f0   : > { %v3638_v40 = vmul.f32 %v6894_v22, %v3619_v43  ;;  %v3340_v62 = vmul.f32 %v6771_v39, %v3315_v46 }
 0x6f1   : > { %v3518_v12 = vsub.f32 1.5, %v3517_v3 }
 0x6f2   : > { %v6977_v53 = vadd.f32 %v6900_v4, %v3638_v40  ;;  %v6980_v36 = vsub.f32 %v6862_v54, %v3340_v62  ;;  %v5027_v54 = vld [vmem:[%s7460_s10 + $0x30] sm:$0xff]  ;;  %v7038_v40 = vld [vmem:[%s7459_s9] ss:$0 sm:$0xff] }
 0x6f3   : > { %3862 = vmatpush.bf16.msrb.mxu1 %v5027_v54  ;;  %v3519_v29 = vmul.f32 %v5341_v44, %v3518_v12 }
 0x6f4   : > { %v3670_v5 = vpack.c.bf16 %v6977_v53, %v6974_v25  ;;  %v3372_v63 = vmul.f32 %v6980_v36, %v6980_v36 }
 0x6f5   : > { %v3523_v47 = vsel %vm3522_vm13, %v5341_v44, %v3519_v29 }
 0x6f6   : > { %4888 = vmatmul.msk.bf16.gmra.mxu0 %vm618_vm0, %v3670_v5  ;;  %v3416_v38 = vsel %vm618_vm0, %v3372_v63, 0.0  ;;  %v3620_v21 = vmul.f32 %v3523_v47, %v6848_v27 }
 0x6f7   : > { %3417 = vadd.xlane.f32.xlu2 %v3416_v38  ;;  %3863 = vmatpush.bf16.msrb.mxu1 %v5026_v8 }
 0x6f8   : > { %v3639_v34 = vmul.f32 %v6894_v22, %v3620_v21 }
 0x6fa   : > { %v7026_v27 = vadd.f32 %v6900_v4, %v3639_v34 }
 0x6fb   : > { %3864 = vmatpush.bf16.msrb.mxu1 %v5025_v11 }
 0x6ff   : > { %3865 = vmatpush.bf16.msrb.mxu1 %v5024_v56 }
 0x703   : > { %3866 = vmatpush.bf16.msrb.mxu1 %v5023_v20 }
 0x707   : > { %3867 = vmatpush.bf16.msrb.mxu1 %v5022_v41 }
 0x70b   : > { %3868 = vmatpush.bf16.msrb.mxu1 %v5021_v49 }
 0x70e   : > { %v3397_v30 = vpop.xlane.xlu0 %3396 }
 0x70f   : > { %v3429_v10 = vmul.f32 %v3397_v30, %v6771_v39 }
 0x711   : > { %v3445_v1 = vadd.f32 1e-05, %v3429_v10 }
 0x713   : > { %5342 = vrsqrt.f32 %v3445_v1  ;;  %vm3530_vm15 = vweird.f32 %v3445_v1 }
 0x716   : > { %v3400_v24 = vpop.xlane.xlu0 %3399 }
 0x717   : > { %v3430_v17 = vmul.f32 %v3400_v24, %v6771_v39 }
 0x719   : > { %v5343_v45 = vpop.eup %5342  ;;  %v3446_v46 = vadd.f32 1e-05, %v3430_v17 }
 0x71a   : > { %v3525_v13 = vmul.f32 %v5343_v45, %v3445_v1  ;;  %vm3531_vm14 = vweird.f32 %v5343_v45 }
 0x71b   : > { %vm3532_vm2 = vmor %vm3530_vm15, %vm3531_vm14  ;;  %5344 = vrsqrt.f32 %v3446_v46  ;;  %vm3540_vm4 = vweird.f32 %v3446_v46 }
 0x71c   : > { %v3526_v35 = vmul.f32 %v5343_v45, %v3525_v13 }
 0x71e   : > { %v3527_v60 = vmul.f32 0.5, %v3526_v35  ;;  %v3318_v6 = vpop.xlane.xlu0 %3317 }
 0x71f   : > { %v3341_v2 = vmul.f32 %v6771_v39, %v3318_v6 }
 0x720   : > { %v3528_v16 = vsub.f32 1.5, %v3527_v60 }
 0x721   : > { %v7017_v23 = vsub.f32 %v6889_v37, %v3341_v2  ;;  %v5345_v38 = vpop.eup %5344 }
 0x722   : > { %v3529_v0 = vmul.f32 %v5343_v45, %v3528_v16  ;;  %v3535_v54 = vmul.f32 %v5345_v38, %v3446_v46  ;;  %vm3541_vm3 = vweird.f32 %v5345_v38 }
 0x723   : > { %v3373_v31 = vmul.f32 %v7017_v23, %v7017_v23  ;;  %vm3542_vm5 = vmor %vm3540_vm4, %vm3541_vm3 }
 0x724   : > { %v3533_v19 = vsel %vm3532_vm2, %v5343_v45, %v3529_v0  ;;  %v3536_v44 = vmul.f32 %v5345_v38, %v3535_v54 }
 0x725   : > { %v3621_v55 = vmul.f32 %v3533_v19, %v6876_v32  ;;  %v3419_v52 = vsel %vm618_vm0, %v3373_v31, 0.0 }
 0x726   : > { %3420 = vadd.xlane.f32.xlu0 %v3419_v52  ;;  %v3537_v26 = vmul.f32 0.5, %v3536_v44 }
 0x727   : > { %v3640_v43 = vmul.f32 %v6894_v22, %v3621_v55 }
 0x728   : > { %v3538_v30 = vsub.f32 1.5, %v3537_v26 }
 0x729   : > { %v7029_v37 = vadd.f32 %v6900_v4, %v3640_v43 }
 0x72a   : > { %v3539_v20 = vmul.f32 %v5345_v38, %v3538_v30 }
 0x72b   : > { %v3671_v59 = vpack.c.bf16 %v7029_v37, %v7026_v27 }
 0x72c   : > { %v3543_v41 = vsel %vm3542_vm5, %v5345_v38, %v3539_v20 }
 0x72d   : > { %4889 = vmatmul.msk.bf16.gmra.mxu0 %vm618_vm0, %v3671_v59  ;;  %v3622_v47 = vmul.f32 %v3543_v41, %v6883_v7 }
 0x72f   : > { %v3729_v32 = vpop.f32.mrf.mxu0  ;;  %v3641_v31 = vmul.f32 %v6894_v22, %v3622_v47 }
 0x730   : > { %v3730_v62 = vadd.f32 %v7038_v40, %v3729_v32 }
 0x731   : > { %v7051_v17 = vadd.f32 %v6900_v4, %v3641_v31 }
 0x732   : > { %v3769_v9 = vmax.f32 %v3730_v62, 0.0 }
 0x737   : > { %v3731_v5 = vpop.f32.mrf.mxu0 }
 0x738   : > { %v3732_v63 = vadd.f32 %v7038_v40, %v3731_v5 }
 0x73a   : > { %v3770_v57 = vmax.f32 %v3732_v63, 0.0 }
 0x73c   : > { %v3785_v33 = vpack.c.bf16 %v3770_v57, %v3769_v9 }
 0x73e   : > { %3869 = vmatmul.bf16.vlgmr.msrb.gmra.mxu1 %v3785_v33 }
 0x742   : > { %v3403_v8 = vpop.xlane.xlu1 %3402 }
 0x743   : > { %v3431_v50 = vmul.f32 %v3403_v8, %v6771_v39 }
 0x745   : > { %v3447_v11 = vadd.f32 1e-05, %v3431_v50 }
 0x747   : > { %5346 = vrsqrt.f32 %v3447_v11  ;;  %vm3550_vm7 = vweird.f32 %v3447_v11 }
 0x74a   : > { %v3406_v10 = vpop.xlane.xlu1 %3405 }
 0x74b   : > { %v3432_v56 = vmul.f32 %v3406_v10, %v6771_v39 }
 0x74d   : > { %v5347_v1 = vpop.eup %5346  ;;  %v3448_v3 = vadd.f32 1e-05, %v3432_v56 }
 0x74e   : > { %v3545_v12 = vmul.f32 %v5347_v1, %v3447_v11  ;;  %vm3551_vm6 = vweird.f32 %v5347_v1 }
 0x74f   : > { %5348 = vrsqrt.f32 %v3448_v3  ;;  %vm3552_vm8 = vmor %vm3550_vm7, %vm3551_vm6  ;;  %vm3560_vm10 = vweird.f32 %v3448_v3 }
 0x750   : > { %v3546_v24 = vmul.f32 %v5347_v1, %v3545_v12 }
 0x752   : > { %v3547_v45 = vmul.f32 0.5, %v3546_v24  ;;  %v3409_v29 = vpop.xlane.xlu2 %3408 }
 0x753   : > { %v3433_v13 = vmul.f32 %v3409_v29, %v6771_v39 }
 0x754   : > { %v3548_v49 = vsub.f32 1.5, %v3547_v45 }
 0x755   : > { %v5349_v35 = vpop.eup %5348  ;;  %v3449_v60 = vadd.f32 1e-05, %v3433_v13 }
 0x756   : > { %v3549_v6 = vmul.f32 %v5347_v1, %v3548_v49  ;;  %v3555_v2 = vmul.f32 %v5349_v35, %v3448_v3  ;;  %vm3561_vm9 = vweird.f32 %v5349_v35 }
 0x757   : > { %5350 = vrsqrt.f32 %v3449_v60  ;;  %vm3562_vm11 = vmor %vm3560_vm10, %vm3561_vm9  ;;  %vm3570_vm13 = vweird.f32 %v3449_v60 }
 0x758   : > { %v3553_v16 = vsel %vm3552_vm8, %v5347_v1, %v3549_v6  ;;  %v3556_v21 = vmul.f32 %v5349_v35, %v3555_v2 }
 0x759   : > { %v3623_v0 = vmul.f32 %v3553_v16, %v6920_v58 }
 0x75a   : > { %v3557_v19 = vmul.f32 0.5, %v3556_v21  ;;  %v3412_v55 = vpop.xlane.xlu0 %3411 }
 0x75b   : > { %v3434_v52 = vmul.f32 %v3412_v55, %v6771_v39  ;;  %v3642_v34 = vmul.f32 %v6894_v22, %v3623_v0 }
 0x75c   : > { %v3558_v43 = vsub.f32 1.5, %v3557_v19 }
 0x75d   : > { %v5351_v7 = vpop.eup %5350  ;;  %v3450_v59 = vadd.f32 1e-05, %v3434_v52  ;;  %v7054_v32 = vadd.f32 %v6900_v4, %v3642_v34 }
 0x75e   : > { %v3559_v46 = vmul.f32 %v5349_v35, %v3558_v43  ;;  %v3565_v58 = vmul.f32 %v5351_v7, %v3449_v60  ;;  %vm3571_vm12 = vweird.f32 %v5351_v7 }
 0x75f   : > { %5352 = vrsqrt.f32 %v3450_v59  ;;  %v3672_v62 = vpack.c.bf16 %v7054_v32, %v7051_v17  ;;  %vm3572_vm14 = vmor %vm3570_vm13, %vm3571_vm12  ;;  %vm3580_vm2 = vweird.f32 %v3450_v59 }
 0x760   : > { %v3566_v5 = vmul.f32 %v5351_v7, %v3565_v58  ;;  %v3563_v63 = vsel %vm3562_vm11, %v5349_v35, %v3559_v46 }
 0x761   : > { %4890 = vmatmul.msk.bf16.gmra.mxu0 %vm618_vm0, %v3672_v62  ;;  %v3624_v8 = vmul.f32 %v3563_v63, %v6928_v48 }
 0x762   : > { %v3567_v38 = vmul.f32 0.5, %v3566_v5  ;;  %v3415_v9 = vpop.xlane.xlu1 %3414 }
 0x763   : > { %v3734_v57 = vpop.f32.mrf.mxu0  ;;  %v3435_v54 = vmul.f32 %v3415_v9, %v6771_v39  ;;  %v3643_v1 = vmul.f32 %v6894_v22, %v3624_v8 }
 0x764   : > { %v3568_v33 = vsub.f32 1.5, %v3567_v38  ;;  %v3735_v20 = vadd.f32 %v7038_v40, %v3734_v57 }
 0x765   : > { %v5353_v44 = vpop.eup %5352  ;;  %v3451_v26 = vadd.f32 1e-05, %v3435_v54  ;;  %v7067_v45 = vadd.f32 %v6900_v4, %v3643_v1 }
 0x766   : > { %v3569_v50 = vmul.f32 %v5351_v7, %v3568_v33  ;;  %v3575_v11 = vmul.f32 %v5353_v44, %v3450_v59  ;;  %v3771_v49 = vmax.f32 %v3735_v20, 0.0  ;;  %vm3581_vm15 = vweird.f32 %v5353_v44 }
 0x767   : > { %5354 = vrsqrt.f32 %v3451_v26  ;;  %vm3582_vm3 = vmor %vm3580_vm2, %vm3581_vm15  ;;  %vm3590_vm5 = vweird.f32 %v3451_v26 }
 0x768   : > { %v3573_v30 = vsel %vm3572_vm14, %v5351_v7, %v3569_v50  ;;  %v3576_v10 = vmul.f32 %v5353_v44, %v3575_v11 }
 0x769   : > { %v3625_v56 = vmul.f32 %v3573_v30, %v6937_v18 }
 0x76a   : > { %v3577_v3 = vmul.f32 0.5, %v3576_v10  ;;  %v3418_v9 = vpop.xlane.xlu2 %3417 }
 0x76b   : > { %v3736_v12 = vpop.f32.mrf.mxu0  ;;  %v3644_v24 = vmul.f32 %v6894_v22, %v3625_v56  ;;  %v3436_v57 = vmul.f32 %v3418_v9, %v6771_v39 }
 0x76c   : > { %v3578_v41 = vsub.f32 1.5, %v3577_v3  ;;  %v3737_v48 = vadd.f32 %v7038_v40, %v3736_v12 }
 0x76d   : > { %v7070_v29 = vadd.f32 %v6900_v4, %v3644_v24  ;;  %v5355_v13 = vpop.eup %5354  ;;  %v3452_v33 = vadd.f32 1e-05, %v3436_v57 }
 0x76e   : > { %v3772_v18 = vmax.f32 %v3737_v48, 0.0  ;;  %v3579_v35 = vmul.f32 %v5353_v44, %v3578_v41  ;;  %v3585_v47 = vmul.f32 %v5355_v13, %v3451_v26  ;;  %vm3591_vm4 = vweird.f32 %v5355_v13 }
 0x76f   : > { %v3673_v60 = vpack.c.bf16 %v7070_v29, %v7067_v45  ;;  %vm3592_vm6 = vmor %vm3590_vm5, %vm3591_vm4  ;;  %5356 = vrsqrt.f32 %v3452_v33  ;;  %vm3600_vm8 = vweird.f32 %v3452_v33 }
 0x770   : > { %v3786_v6 = vpack.c.bf16 %v3772_v18, %v3771_v49  ;;  %v3586_v2 = vmul.f32 %v5355_v13, %v3585_v47  ;;  %v3583_v16 = vsel %vm3582_vm3, %v5353_v44, %v3579_v35 }
 0x771   : > { %4891 = vmatmul.msk.bf16.gmra.mxu0 %vm618_vm0, %v3673_v60  ;;  %v3626_v19 = vmul.f32 %v3583_v16, %v6947_v42 }
 0x772   : > { %3874 = vmatmul.bf16.gmra.mxu1 %v3786_v6  ;;  %v3587_v21 = vmul.f32 0.5, %v3586_v2 }
 0x773   : > { %v3739_v0 = vpop.f32.mrf.mxu0  ;;  %v3645_v7 = vmul.f32 %v6894_v22, %v3626_v19 }
 0x774   : > { %v3588_v31 = vsub.f32 1.5, %v3587_v21  ;;  %v3740_v43 = vadd.f32 %v7038_v40, %v3739_v0 }
 0x775   : > { %v7082_v63 = vadd.f32 %v6900_v4, %v3645_v7  ;;  %v5357_v54 = vpop.eup %5356 }
 0x776   : > { %v3589_v55 = vmul.f32 %v5355_v13, %v3588_v31  ;;  %v3773_v62 = vmax.f32 %v3740_v43, 0.0  ;;  %v3595_v44 = vmul.f32 %v5357_v54, %v3452_v33  ;;  %vm3601_vm7 = vweird.f32 %v5357_v54 }
 0x777   : > { %vm3602_vm9 = vmor %vm3600_vm8, %vm3601_vm7 }
 0x778   : > { %v3593_v52 = vsel %vm3592_vm6, %v5355_v13, %v3589_v55  ;;  %v3596_v8 = vmul.f32 %v5357_v54, %v3595_v44 }
 0x779   : > { %v3627_v34 = vmul.f32 %v3593_v52, %v6964_v15 }
 0x77a   : > { %v3597_v30 = vmul.f32 0.5, %v3596_v8 }
 0x77b   : > { %v3741_v59 = vpop.f32.mrf.mxu0  ;;  %v3646_v58 = vmul.f32 %v6894_v22, %v3627_v34 }
 0x77c   : > { %v3742_v46 = vadd.f32 %v7038_v40, %v3741_v59  ;;  %v3598_v10 = vsub.f32 1.5, %v3597_v30 }
 0x77d   : > { %v7085_v42 = vadd.f32 %v6900_v4, %v3646_v58 }
 0x77e   : > { %v3774_v5 = vmax.f32 %v3742_v46, 0.0  ;;  %v3599_v1 = vmul.f32 %v5357_v54, %v3598_v10 }
 0x77f   : > { %v3674_v15 = vpack.c.bf16 %v7085_v42, %v7082_v63 }
 0x780   : > { %v3787_v38 = vpack.c.bf16 %v3774_v5, %v3773_v62  ;;  %v3603_v12 = vsel %vm3602_vm9, %v5357_v54, %v3599_v1 }
 0x781   : > { %4892 = vmatmul.msk.bf16.gmra.mxu0 %vm618_vm0, %v3674_v15  ;;  %v3628_v13 = vmul.f32 %v3603_v12, %v6980_v36 }
 0x782   : > { %3879 = vmatmul.bf16.gmra.mxu1 %v3787_v38 }
 0x783   : > { %v3647_v47 = vmul.f32 %v6894_v22, %v3628_v13 }
 0x785   : > { %v7099_v21 = vadd.f32 %v6900_v4, %v3647_v47 }
 0x799   : > { %v3421_v50 = vpop.xlane.xlu0 %3420 }
 0x79a   : > { %v3437_v11 = vmul.f32 %v3421_v50, %v6771_v39 }
 0x79c   : > { %v3453_v26 = vadd.f32 1e-05, %v3437_v11 }
 0x79e   : > { %5358 = vrsqrt.f32 %v3453_v26  ;;  %vm3610_vm11 = vweird.f32 %v3453_v26 }
 0x7a4   : > { %v5359_v56 = vpop.eup %5358 }
 0x7a5   : > { %v3605_v3 = vmul.f32 %v5359_v56, %v3453_v26  ;;  %vm3611_vm10 = vweird.f32 %v5359_v56 }
 0x7a6   : > { %vm3612_vm12 = vmor %vm3610_vm11, %vm3611_vm10 }
 0x7a7   : > { %v3606_v20 = vmul.f32 %v5359_v56, %v3605_v3 }
 0x7a9   : > { %v3607_v24 = vmul.f32 0.5, %v3606_v20 }
 0x7aa   : > { %v3744_v41 = vpop.f32.mrf.mxu0 }
 0x7ab   : > { %v3608_v48 = vsub.f32 1.5, %v3607_v24  ;;  %v3745_v60 = vadd.f32 %v7038_v40, %v3744_v41 }
 0x7ad   : > { %v3609_v49 = vmul.f32 %v5359_v56, %v3608_v48  ;;  %v3775_v0 = vmax.f32 %v3745_v60, 0.0 }
 0x7af   : > { %v3613_v18 = vsel %vm3612_vm12, %v5359_v56, %v3609_v49 }
 0x7b0   : > { %v3629_v35 = vmul.f32 %v3613_v18, %v7017_v23 }
 0x7b2   : > { %v3746_v6 = vpop.f32.mrf.mxu0  ;;  %v3648_v2 = vmul.f32 %v6894_v22, %v3629_v35  ;;  %v7110_v22 = vld [vmem:[%s7461_s11] ss:$0 sm:$0xff] }
 0x7b3   : > { %v3747_v16 = vadd.f32 %v7038_v40, %v3746_v6 }
 0x7b4   : > { %v7102_v36 = vadd.f32 %v6900_v4, %v3648_v2 }
 0x7b5   : > { %v3776_v31 = vmax.f32 %v3747_v16, 0.0 }
 0x7b6   : > { %v3675_v23 = vpack.c.bf16 %v7102_v36, %v7099_v21 }
 0x7b7   : > { %v3788_v19 = vpack.c.bf16 %v3776_v31, %v3775_v0 }
 0x7b8   : > { %4893 = vmatmul.msk.bf16.gmra.mxu0 %vm618_vm0, %v3675_v23 }
 0x7b9   : > { %3884 = vmatmul.bf16.gmra.mxu1 %v3788_v19 }
 0x7bb   : > { %v3870_v55 = vpop.f32.mrf.mxu1 }
 0x7bc   : > { %v3871_v52 = vadd.f32 %v7110_v22, %v3870_v55 }
 0x7be   : > { %v7114_v4 = vadd.f32 %v3871_v52, %v6908_v28 }
 0x7c0   : > { %v3926_v34 = vsel %vm618_vm0, %v7114_v4, 0.0 }
 0x7c1   : > { %3927 = vadd.xlane.f32.xlu1 %v3926_v34 }
 0x7c3   : > { %v3872_v43 = vpop.f32.mrf.mxu1 }
 0x7c4   : > { %v3873_v7 = vadd.f32 %v7110_v22, %v3872_v43 }
 0x7c6   : > { %v7120_v59 = vadd.f32 %v3873_v7, %v6911_v51 }
 0x7c8   : > { %v3929_v46 = vsel %vm618_vm0, %v7120_v59, 0.0 }
 0x7c9   : > { %3930 = vadd.xlane.f32.xlu2 %v3929_v46 }
 0x7de   : > { %v3749_v58 = vpop.f32.mrf.mxu0 }
 0x7df   : > { %v3750_v62 = vadd.f32 %v7038_v40, %v3749_v58 }
 0x7e1   : > { %v3777_v38 = vmax.f32 %v3750_v62, 0.0 }
 0x7e6   : > { %v3751_v5 = vpop.f32.mrf.mxu0 }
 0x7e7   : > { %v3752_v28 = vadd.f32 %v7038_v40, %v3751_v5 }
 0x7e9   : > { %v3778_v15 = vmax.f32 %v3752_v28, 0.0 }
 0x7eb   : > { %v3789_v9 = vpack.c.bf16 %v3778_v15, %v3777_v38 }
 0x7ed   : > { %3889 = vmatmul.bf16.gmra.mxu1 %v3789_v9 }
 0x7ee   : > { %v3754_v57 = vpop.f32.mrf.mxu0 }
 0x7ef   : > { %v3875_v33 = vpop.f32.mrf.mxu1  ;;  %v3755_v8 = vadd.f32 %v7038_v40, %v3754_v57 }
 0x7f0   : > { %v3876_v54 = vadd.f32 %v7110_v22, %v3875_v33 }
 0x7f1   : > { %v3779_v10 = vmax.f32 %v3755_v8, 0.0 }
 0x7f2   : > { %v7128_v51 = vadd.f32 %v3876_v54, %v6950_v61 }
 0x7f4   : > { %v3932_v44 = vsel %vm618_vm0, %v7128_v51, 0.0 }
 0x7f5   : > { %3933 = vadd.xlane.f32.xlu0 %v3932_v44 }
 0x7f6   : > { %v3756_v50 = vpop.f32.mrf.mxu0 }
 0x7f7   : > { %v3757_v11 = vadd.f32 %v7038_v40, %v3756_v50  ;;  %v3877_v26 = vpop.f32.mrf.mxu1 }
 0x7f8   : > { %v3878_v30 = vadd.f32 %v7110_v22, %v3877_v26 }
 0x7f9   : > { %v3780_v56 = vmax.f32 %v3757_v11, 0.0 }
 0x7fa   : > { %v7136_v1 = vadd.f32 %v3878_v30, %v6953_v14 }
 0x7fb   : > { %v3790_v3 = vpack.c.bf16 %v3780_v56, %v3779_v10 }
 0x7fc   : > { %v3935_v61 = vsel %vm618_vm0, %v7136_v1, 0.0 }
 0x7fd   : > { %3936 = vadd.xlane.f32.xlu1 %v3935_v61  ;;  %3894 = vmatmul.bf16.gmra.mxu1 %v3790_v3 }
 0x7fe   : > { %v3759_v20 = vpop.f32.mrf.mxu0 }
 0x7ff   : > { %v3880_v12 = vpop.f32.mrf.mxu1  ;;  %v3760_v14 = vadd.f32 %v7038_v40, %v3759_v20 }
 0x800   : > { %v3881_v24 = vadd.f32 %v7110_v22, %v3880_v12 }
 0x801   : > { %v3781_v47 = vmax.f32 %v3760_v14, 0.0 }
 0x802   : > { %v7142_v41 = vadd.f32 %v3881_v24, %v6974_v25 }
 0x804   : > { %v3938_v48 = vsel %vm618_vm0, %v7142_v41, 0.0 }
 0x805   : > { %3939 = vadd.xlane.f32.xlu2 %v3938_v48 }
 0x806   : > { %v3761_v13 = vpop.f32.mrf.mxu0 }
 0x807   : > { %v3882_v49 = vpop.f32.mrf.mxu1  ;;  %v3762_v18 = vadd.f32 %v7038_v40, %v3761_v13 }
 0x808   : > { %v3883_v35 = vadd.f32 %v7110_v22, %v3882_v49 }
 0x809   : > { %v3782_v60 = vmax.f32 %v3762_v18, 0.0 }
 0x80a   : > { %v7150_v6 = vadd.f32 %v3883_v35, %v6977_v53 }
 0x80b   : > { %v3791_v2 = vpack.c.bf16 %v3782_v60, %v3781_v47 }
 0x80c   : > { %v3941_v25 = vsel %vm618_vm0, %v7150_v6, 0.0 }
 0x80d   : > { %3942 = vadd.xlane.f32.xlu0 %v3941_v25  ;;  %3899 = vmatmul.bf16.gmra.mxu1 %v3791_v2 }
 0x834   : > { %v3928_v56 = vpop.xlane.xlu1 %3927 }
 0x835   : > { %v3764_v16 = vpop.f32.mrf.mxu0  ;;  %v3974_v61 = vmul.f32 %v3928_v56, %v6771_v39 }
 0x836   : > { %v3885_v0 = vpop.f32.mrf.mxu1  ;;  %v3765_v55 = vadd.f32 %v7038_v40, %v3764_v16 }
 0x837   : > { %v3886_v31 = vadd.f32 %v7110_v22, %v3885_v0  ;;  %v7201_v12 = vsub.f32 %v7114_v4, %v3974_v61 }
 0x838   : > { %v3783_v7 = vmax.f32 %v3765_v55, 0.0 }
 0x839   : > { %v3916_v23 = vadd.f32 %v3886_v31, %v7026_v27  ;;  %v4006_v14 = vmul.f32 %v7201_v12, %v7201_v12 }
 0x83b   : > { %v3944_v19 = vsel %vm618_vm0, %v3916_v23, 0.0  ;;  %v4022_v49 = vsel %vm618_vm0, %v4006_v14, 0.0 }
 0x83c   : > { %3945 = vadd.xlane.f32.xlu1 %v3944_v19  ;;  %v3931_v2 = vpop.xlane.xlu2 %3930 }
 0x83d   : > { %v3766_v52 = vpop.f32.mrf.mxu0  ;;  %v3975_v16 = vmul.f32 %v3931_v2, %v6771_v39 }
 0x83e   : > { %v3767_v53 = vadd.f32 %v7038_v40, %v3766_v52  ;;  %v3887_v34 = vpop.f32.mrf.mxu1 }
 0x83f   : > { %v3888_v43 = vadd.f32 %v7110_v22, %v3887_v34  ;;  %v7227_v19 = vsub.f32 %v7120_v59, %v3975_v16 }
 0x840   : > { %v3784_v46 = vmax.f32 %v3767_v53, 0.0 }
 0x841   : > { %v7161_v58 = vadd.f32 %v3888_v43, %v7029_v37 }
 0x842   : > { %v3792_v62 = vpack.c.bf16 %v3784_v46, %v3783_v7 }
 0x843   : > { %v3947_v27 = vsel %vm618_vm0, %v7161_v58, 0.0 }
 0x844   : > { %3948 = vadd.xlane.f32.xlu2 %v3947_v27  ;;  %3904 = vmatmul.bf16.gmra.mxu1 %v3792_v62 }
 0x868   : > { %v3934_v55 = vpop.xlane.xlu0 %3933 }
 0x869   : > { %v3976_v34 = vmul.f32 %v3934_v55, %v6771_v39 }
 0x86a   : > { %v3890_v5 = vpop.f32.mrf.mxu1 }
 0x86b   : > { %v3891_v28 = vadd.f32 %v7110_v22, %v3890_v5  ;;  %v7240_v59 = vsub.f32 %v7128_v51, %v3976_v34 }
 0x86d   : > { %v7167_v38 = vadd.f32 %v3891_v28, %v7051_v17  ;;  %v4008_v51 = vmul.f32 %v7240_v59, %v7240_v59 }
 0x86f   : > { %v3950_v40 = vsel %vm618_vm0, %v7167_v38, 0.0 }
 0x870   : > { %3951 = vadd.xlane.f32.xlu0 %v3950_v40  ;;  %v3937_v24 = vpop.xlane.xlu1 %3936 }
 0x871   : > { %v3977_v48 = vmul.f32 %v3937_v24, %v6771_v39 }
 0x872   : > { %v3892_v15 = vpop.f32.mrf.mxu1 }
 0x873   : > { %v3893_v37 = vadd.f32 %v7110_v22, %v3892_v15  ;;  %v7209_v13 = vsub.f32 %v7136_v1, %v3977_v48 }
 0x875   : > { %v7173_v9 = vadd.f32 %v3893_v37, %v7054_v32 }
 0x877   : > { %v3953_v57 = vsel %vm618_vm0, %v7173_v9, 0.0 }
 0x878   : > { %3954 = vadd.xlane.f32.xlu1 %v3953_v57  ;;  %v3940_v52 = vpop.xlane.xlu2 %3939  ;;  %v4028_v57 = vsel %vm618_vm0, %v4008_v51, 0.0 }
 0x879   : > { %v3978_v43 = vmul.f32 %v3940_v52, %v6771_v39 }
 0x87a   : > { %v3895_v33 = vpop.f32.mrf.mxu1 }
 0x87b   : > { %v3896_v54 = vadd.f32 %v7110_v22, %v3895_v33  ;;  %v7243_v62 = vsub.f32 %v7142_v41, %v3978_v43 }
 0x87d   : > { %v7179_v17 = vadd.f32 %v3896_v54, %v7067_v45  ;;  %v4010_v41 = vmul.f32 %v7243_v62, %v7243_v62 }
 0x87f   : > { %v3956_v44 = vsel %vm618_vm0, %v7179_v17, 0.0  ;;  %v4034_v33 = vsel %vm618_vm0, %v4010_v41, 0.0 }
 0x880   : > { %3957 = vadd.xlane.f32.xlu2 %v3956_v44  ;;  %v3943_v28 = vpop.xlane.xlu0 %3942 }
 0x882   : > { %v3897_v8 = vpop.f32.mrf.mxu1 }
 0x883   : > { %v3898_v50 = vadd.f32 %v7110_v22, %v3897_v8 }
 0x885   : > { %v7185_v32 = vadd.f32 %v3898_v50, %v7070_v29 }
 0x887   : > { %v3959_v11 = vsel %vm618_vm0, %v7185_v32, 0.0 }
 0x888   : > { %3960 = vadd.xlane.f32.xlu0 %v3959_v11 }
 0x88a   : > { %v3900_v26 = vpop.f32.mrf.mxu1 }
 0x88b   : > { %v3901_v30 = vadd.f32 %v7110_v22, %v3900_v26 }
 0x88d   : > { %v7191_v45 = vadd.f32 %v3901_v30, %v7082_v63 }
 0x88f   : > { %v3962_v10 = vsel %vm618_vm0, %v7191_v45, 0.0 }
 0x890   : > { %3963 = vadd.xlane.f32.xlu1 %v3962_v10 }
 0x892   : > { %v3902_v3 = vpop.f32.mrf.mxu1 }
 0x893   : > { %v3903_v29 = vadd.f32 %v7110_v22, %v3902_v3 }
 0x895   : > { %v7198_v20 = vadd.f32 %v3903_v29, %v7085_v42  ;;  %v4009_v42 = vmul.f32 %v7209_v13, %v7209_v13 }
 0x897   : > { %v3965_v63 = vsel %vm618_vm0, %v7198_v20, 0.0  ;;  %v4031_v4 = vsel %vm618_vm0, %v4009_v42, 0.0 }
 0x898   : > { %3966 = vadd.xlane.f32.xlu2 %v3965_v63 }
 0x8a0   : > { %4023 = vadd.xlane.f32.xlu2 %v4022_v49 }
 0x8a8   : > { %4032 = vadd.xlane.f32.xlu2 %v4031_v4 }
 0x8af   : > { %v3946_v18 = vpop.xlane.xlu1 %3945 }
 0x8b0   : > { %v3980_v35 = vmul.f32 %v3946_v18, %v6771_v39 }
 0x8b2   : > { %v7216_v47 = vsub.f32 %v3916_v23, %v3980_v35 }
 0x8b4   : > { %v4012_v60 = vmul.f32 %v7216_v47, %v7216_v47 }
 0x8b6   : > { %v4040_v1 = vsel %vm618_vm0, %v4012_v60, 0.0 }
 0x8b7   : > { %4041 = vadd.xlane.f32.xlu2 %v4040_v1  ;;  %v3949_v40 = vpop.xlane.xlu2 %3948 }
 0x8c1   : > { %v3905_v25 = vpop.f32.mrf.mxu1 }
 0x8c2   : > { %v3906_v0 = vadd.f32 %v7110_v22, %v3905_v25 }
 0x8c4   : > { %v7224_v31 = vadd.f32 %v3906_v0, %v7099_v21  ;;  %v4007_v21 = vmul.f32 %v7227_v19, %v7227_v19 }
 0x8c6   : > { %v3968_v23 = vsel %vm618_vm0, %v7224_v31, 0.0  ;;  %v4025_v5 = vsel %vm618_vm0, %v4007_v21, 0.0 }
 0x8c7   : > { %3969 = vadd.xlane.f32.xlu0 %v3968_v23 }
 0x8c9   : > { %v3907_v53 = vpop.f32.mrf.mxu1 }
 0x8ca   : > { %v3908_v7 = vadd.f32 %v7110_v22, %v3907_v53  ;;  %v3979_v22 = vmul.f32 %v3943_v28, %v6771_v39 }
 0x8cc   : > { %v7237_v46 = vadd.f32 %v3908_v7, %v7102_v36  ;;  %v3981_v36 = vmul.f32 %v3949_v40, %v6771_v39  ;;  %v7255_v15 = vsub.f32 %v7150_v6, %v3979_v22 }
 0x8ce   : > { %v3971_v27 = vsel %vm618_vm0, %v7237_v46, 0.0  ;;  %v7258_v37 = vsub.f32 %v7161_v58, %v3981_v36  ;;  %v4011_v54 = vmul.f32 %v7255_v15, %v7255_v15 }
 0x8cf   : > { %3972 = vadd.xlane.f32.xlu1 %v3971_v27  ;;  %4026 = vadd.xlane.f32.xlu0 %v4025_v5 }
 0x8d0   : > { %v4013_v44 = vmul.f32 %v7258_v37, %v7258_v37  ;;  %v4037_v8 = vsel %vm618_vm0, %v4011_v54, 0.0 }
 0x8d2   : > { %v4043_v6 = vsel %vm618_vm0, %v4013_v44, 0.0  ;;  %v7317_v44 = vld [vmem:[%s7462_s12] ss:$0 sm:$0xff] }
 0x8d7   : > { %4029 = vadd.xlane.f32.xlu1 %v4028_v57  ;;  %4035 = vadd.xlane.f32.xlu0 %v4034_v33 }
 0x8df   : > { %4038 = vadd.xlane.f32.xlu1 %v4037_v8  ;;  %4044 = vadd.xlane.f32.xlu0 %v4043_v6 }
 0x8e3   : > { %v3952_v58 = vpop.xlane.xlu0 %3951 }
 0x8e4   : > { %v3982_v50 = vmul.f32 %v3952_v58, %v6771_v39 }
 0x8e6   : > { %v7270_v11 = vsub.f32 %v7167_v38, %v3982_v50  ;;  %v7323_v50 = vld [vmem:[%s7463_s13] ss:$0 sm:$0xff] }
 0x8e8   : > { %v4014_v26 = vmul.f32 %v7270_v11, %v7270_v11 }
 0x8ea   : > { %v4046_v30 = vsel %vm618_vm0, %v4014_v26, 0.0 }
 0x8eb   : > { %v3955_v10 = vpop.xlane.xlu1 %3954  ;;  %4047 = vadd.xlane.f32.xlu1 %v4046_v30 }
 0x8ec   : > { %v3983_v56 = vmul.f32 %v3955_v10, %v6771_v39 }
 0x8ee   : > { %v7277_v3 = vsub.f32 %v7173_v9, %v3983_v56 }
 0x8f0   : > { %v4015_v61 = vmul.f32 %v7277_v3, %v7277_v3 }
 0x8f2   : > { %v4049_v29 = vsel %vm618_vm0, %v4015_v61, 0.0 }
 0x8f3   : > { %4050 = vadd.xlane.f32.xlu2 %v4049_v29  ;;  %v3958_v38 = vpop.xlane.xlu2 %3957 }
 0x8f4   : > { %v3984_v63 = vmul.f32 %v3958_v38, %v6771_v39 }
 0x8f6   : > { %v7284_v24 = vsub.f32 %v7179_v17, %v3984_v63 }
 0x8f8   : > { %v4016_v48 = vmul.f32 %v7284_v24, %v7284_v24 }
 0x8fa   : > { %v4052_v14 = vsel %vm618_vm0, %v4016_v48, 0.0 }
 0x8fb   : > { %v3961_v49 = vpop.xlane.xlu0 %3960  ;;  %4053 = vadd.xlane.f32.xlu0 %v4052_v14 }
 0x8fc   : > { %v3985_v9 = vmul.f32 %v3961_v49, %v6771_v39 }
 0x8fe   : > { %v7291_v42 = vsub.f32 %v7185_v32, %v3985_v9 }
 0x900   : > { %v4017_v4 = vmul.f32 %v7291_v42, %v7291_v42 }
 0x902   : > { %v4055_v18 = vsel %vm618_vm0, %v4017_v4, 0.0 }
 0x903   : > { %4056 = vadd.xlane.f32.xlu1 %v4055_v18  ;;  %v3964_v17 = vpop.xlane.xlu1 %3963 }
 0x904   : > { %v3986_v35 = vmul.f32 %v3964_v17, %v6771_v39 }
 0x906   : > { %v7298_v60 = vsub.f32 %v7191_v45, %v3986_v35 }
 0x908   : > { %v4018_v1 = vmul.f32 %v7298_v60, %v7298_v60 }
 0x90a   : > { %v4058_v2 = vsel %vm618_vm0, %v4018_v1, 0.0 }
 0x90b   : > { %4059 = vadd.xlane.f32.xlu2 %v4058_v2  ;;  %v3967_v32 = vpop.xlane.xlu2 %3966 }
 0x90c   : > { %v3987_v25 = vmul.f32 %v3967_v32, %v6771_v39 }
 0x90e   : > { %v7305_v16 = vsub.f32 %v7198_v20, %v3987_v25 }
 0x910   : > { %v4019_v0 = vmul.f32 %v7305_v16, %v7305_v16 }
 0x912   : > { %v4061_v23 = vsel %vm618_vm0, %v4019_v0, 0.0 }
 0x913   : > { %4062 = vadd.xlane.f32.xlu0 %v4061_v23  ;;  %v4024_v45 = vpop.xlane.xlu2 %4023 }
 0x914   : > { %v4070_v55 = vmul.f32 %v4024_v45, %v6771_v39 }
 0x916   : > { %v4086_v52 = vadd.f32 1e-05, %v4070_v55 }
 0x918   : > { %5360 = vrsqrt.f32 %v4086_v52  ;;  %vm4108_vm14 = vweird.f32 %v4086_v52 }
 0x91b   : > { %v4033_v53 = vpop.xlane.xlu2 %4032 }
 0x91c   : > { %v4073_v34 = vmul.f32 %v4033_v53, %v6771_v39 }
 0x91e   : > { %v5361_v43 = vpop.eup %5360  ;;  %v4089_v7 = vadd.f32 1e-05, %v4073_v34 }
 0x91f   : > { %v4103_v21 = vmul.f32 %v5361_v43, %v4086_v52  ;;  %vm4109_vm13 = vweird.f32 %v5361_v43 }
 0x920   : > { %5362 = vrsqrt.f32 %v4089_v7  ;;  %vm4110_vm15 = vmor %vm4108_vm14, %vm4109_vm13  ;;  %vm4138_vm3 = vweird.f32 %v4089_v7 }
 0x921   : > { %v4104_v20 = vmul.f32 %v5361_v43, %v4103_v21 }
 0x923   : > { %v4105_v27 = vmul.f32 0.5, %v4104_v20 }
 0x925   : > { %v4106_v5 = vsub.f32 1.5, %v4105_v27 }
 0x926   : > { %v5363_v28 = vpop.eup %5362 }
 0x927   : > { %v4107_v40 = vmul.f32 %v5361_v43, %v4106_v5  ;;  %v4133_v22 = vmul.f32 %v5363_v28, %v4089_v7  ;;  %vm4139_vm2 = vweird.f32 %v5363_v28 }
 0x928   : > { %vm4140_vm4 = vmor %vm4138_vm3, %vm4139_vm2 }
 0x929   : > { %v4111_v36 = vsel %vm4110_vm15, %v5361_v43, %v4107_v40  ;;  %v4134_v51 = vmul.f32 %v5363_v28, %v4133_v22 }
 0x92a   : > { %v4262_v41 = vmul.f32 %v4111_v36, %v7201_v12  ;;  %v4042_v57 = vpop.xlane.xlu2 %4041 }
 0x92b   : > { %v4135_v33 = vmul.f32 0.5, %v4134_v51  ;;  %v4076_v54 = vmul.f32 %v4042_v57, %v6771_v39 }
 0x92c   : > { %v4278_v8 = vmul.f32 %v7317_v44, %v4262_v41 }
 0x92d   : > { %v4136_v6 = vsub.f32 1.5, %v4135_v33  ;;  %v4092_v58 = vadd.f32 1e-05, %v4076_v54 }
 0x92e   : > { %v4294_v12 = vadd.f32 %v7323_v50, %v4278_v8 }
 0x92f   : > { %v4137_v26 = vmul.f32 %v5363_v28, %v4136_v6  ;;  %5364 = vrsqrt.f32 %v4092_v58  ;;  %vm4168_vm6 = vweird.f32 %v4092_v58 }
 0x930   : > { %v4310_v30 = vpack.c.bf16 %v4294_v12, %v4294_v12 }
 0x931   : > { %v4141_v10 = vsel %vm4140_vm4, %v5363_v28, %v4137_v26 }
 0x932   : > { %4327 = vst.msk [vmem:[%s7330_s24] sm:$0xf] %vm708_vm1, %v4310_v30  ;;  %v4265_v56 = vmul.f32 %v4141_v10, %v7209_v13 }
 0x934   : > { %v4281_v61 = vmul.f32 %v7317_v44, %v4265_v56 }
 0x935   : > { %v5365_v29 = vpop.eup %5364 }
 0x936   : > { %v4297_v38 = vadd.f32 %v7323_v50, %v4281_v61  ;;  %v4163_v63 = vmul.f32 %v5365_v29, %v4092_v58  ;;  %vm4169_vm5 = vweird.f32 %v5365_v29 }
 0x937   : > { %vm4170_vm7 = vmor %vm4168_vm6, %vm4169_vm5 }
 0x938   : > { %v4313_v48 = vpack.c.bf16 %v4297_v38, %v4297_v38  ;;  %v4164_v14 = vmul.f32 %v5365_v29, %v4163_v63 }
 0x93a   : > { %4330 = vst.msk [vmem:[%s7330_s24 + $0xc] sm:$0xf] %vm708_vm1, %v4313_v48  ;;  %v4165_v49 = vmul.f32 0.5, %v4164_v14  ;;  %v3970_v9 = vpop.xlane.xlu0 %3969 }
 0x93b   : > { %v3988_v4 = vmul.f32 %v3970_v9, %v6771_v39 }
 0x93c   : > { %v4166_v18 = vsub.f32 1.5, %v4165_v49 }
 0x93d   : > { %v7341_v17 = vsub.f32 %v7224_v31, %v3988_v4 }
 0x93e   : > { %v4167_v13 = vmul.f32 %v5365_v29, %v4166_v18 }
 0x93f   : > { %v4020_v35 = vmul.f32 %v7341_v17, %v7341_v17 }
 0x940   : > { %v4171_v1 = vsel %vm4170_vm7, %v5365_v29, %v4167_v13 }
 0x941   : > { %v4268_v2 = vmul.f32 %v4171_v1, %v7216_v47  ;;  %v4064_v32 = vsel %vm618_vm0, %v4020_v35, 0.0 }
 0x942   : > { %v3973_v25 = vpop.xlane.xlu1 %3972  ;;  %4065 = vadd.xlane.f32.xlu1 %v4064_v32  ;;  %v4027_v0 = vpop.xlane.xlu0 %4026 }
 0x943   : > { %v4284_v23 = vmul.f32 %v7317_v44, %v4268_v2  ;;  %v3989_v31 = vmul.f32 %v3973_v25, %v6771_v39  ;;  %v4071_v45 = vmul.f32 %v4027_v0, %v6771_v39 }
 0x945   : > { %v4300_v55 = vadd.f32 %v7323_v50, %v4284_v23  ;;  %v7352_v52 = vsub.f32 %v7237_v46, %v3989_v31  ;;  %v4087_v53 = vadd.f32 1e-05, %v4071_v45 }
 0x947   : > { %v4316_v34 = vpack.c.bf16 %v4300_v55, %v4300_v55  ;;  %5366 = vrsqrt.f32 %v4087_v53  ;;  %v4021_v47 = vmul.f32 %v7352_v52, %v7352_v52  ;;  %vm4118_vm8 = vweird.f32 %v4087_v53 }
 0x949   : > { %4333 = vst.msk [vmem:[%s7330_s24 + $0x18] sm:$0xf] %vm708_vm1, %v4316_v34  ;;  %v4067_v43 = vsel %vm618_vm0, %v4021_v47, 0.0 }
 0x94a   : > { %4068 = vadd.xlane.f32.xlu2 %v4067_v43  ;;  %v4030_v7 = vpop.xlane.xlu1 %4029  ;;  %v4036_v21 = vpop.xlane.xlu0 %4035 }
 0x94b   : > { %v4072_v20 = vmul.f32 %v4030_v7, %v6771_v39  ;;  %v4074_v27 = vmul.f32 %v4036_v21, %v6771_v39 }
 0x94d   : > { %v5367_v5 = vpop.eup %5366  ;;  %v4088_v46 = vadd.f32 1e-05, %v4072_v20  ;;  %v4090_v28 = vadd.f32 1e-05, %v4074_v27 }
 0x94e   : > { %v4113_v40 = vmul.f32 %v5367_v5, %v4087_v53  ;;  %vm4119_vm0 = vweird.f32 %v5367_v5 }
 0x94f   : > { %5368 = vrsqrt.f32 %v4088_v46  ;;  %vm4120_vm9 = vmor %vm4118_vm8, %vm4119_vm0  ;;  %vm4128_vm12 = vweird.f32 %v4088_v46  ;;  %vm4148_vm14 = vweird.f32 %v4090_v28 }
 0x950   : > { %v4114_v22 = vmul.f32 %v5367_v5, %v4113_v40  ;;  %5370 = vrsqrt.f32 %v4090_v28 }
 0x952   : > { %v4115_v36 = vmul.f32 0.5, %v4114_v22  ;;  %v4039_v51 = vpop.xlane.xlu1 %4038  ;;  %v4045_v41 = vpop.xlane.xlu0 %4044 }
 0x953   : > { %v4075_v57 = vmul.f32 %v4039_v51, %v6771_v39  ;;  %v4077_v33 = vmul.f32 %v4045_v41, %v6771_v39 }
 0x954   : > { %v4116_v54 = vsub.f32 1.5, %v4115_v36 }
 0x955   : > { %v5369_v8 = vpop.eup %5368  ;;  %v4091_v6 = vadd.f32 1e-05, %v4075_v57  ;;  %v7363_v58 = vadd.f32 1e-05, %v4077_v33 }
 0x956   : > { %v5371_v12 = vpop.eup %5370  ;;  %v4117_v26 = vmul.f32 %v5367_v5, %v4116_v54  ;;  %v4123_v30 = vmul.f32 %v5369_v8, %v4088_v46  ;;  %vm4129_vm10 = vweird.f32 %v5369_v8 }
 0x957   : > { %v4143_v10 = vmul.f32 %v5371_v12, %v4090_v28  ;;  %5372 = vrsqrt.f32 %v4091_v6  ;;  %vm4149_vm11 = vweird.f32 %v5371_v12  ;;  %vm4130_vm13 = vmor %vm4128_vm12, %vm4129_vm10  ;;  %vm4158_vm4 = vweird.f32 %v4091_v6 }
 0x958   : > { %v4121_v56 = vsel %vm4120_vm9, %v5367_v5, %v4117_v26  ;;  %v4124_v61 = vmul.f32 %v5369_v8, %v4123_v30  ;;  %5374 = vrsqrt.f32 %v7363_v58  ;;  %vm4150_vm15 = vmor %vm4148_vm14, %vm4149_vm11  ;;  %vm4178_vm6 = vweird.f32 %v7363_v58 }
 0x959   : > { %v4263_v29 = vmul.f32 %v4121_v56, %v7227_v19  ;;  %v4144_v38 = vmul.f32 %v5371_v12, %v4143_v10 }
 0x95a   : > { %v4125_v63 = vmul.f32 0.5, %v4124_v61 }
 0x95b   : > { %v4279_v48 = vmul.f32 %v7317_v44, %v4263_v29  ;;  %v4145_v14 = vmul.f32 0.5, %v4144_v38 }
 0x95c   : > { %v4126_v49 = vsub.f32 1.5, %v4125_v63 }
 0x95d   : > { %v5373_v9 = vpop.eup %5372  ;;  %v4295_v4 = vadd.f32 %v7323_v50, %v4279_v48  ;;  %v4146_v18 = vsub.f32 1.5, %v4145_v14 }
 0x95e   : > { %v4048_v13 = vpop.xlane.xlu1 %4047  ;;  %v5375_v35 = vpop.eup %5374  ;;  %v4127_v1 = vmul.f32 %v5369_v8, %v4126_v49  ;;  %v4153_v2 = vmul.f32 %v5373_v9, %v4091_v6  ;;  %vm4159_vm2 = vweird.f32 %v5373_v9 }
 0x95f   : > { %v4078_v19 = vmul.f32 %v4048_v13, %v6771_v39  ;;  %v4311_v32 = vpack.c.bf16 %v4295_v4, %v4295_v4  ;;  %v4147_v25 = vmul.f32 %v5371_v12, %v4146_v18  ;;  %v4173_v0 = vmul.f32 %v5375_v35, %v7363_v58  ;;  %vm4160_vm5 = vmor %vm4158_vm4, %vm4159_vm2 }
 0x960   : > { %v4131_v23 = vsel %vm4130_vm13, %v5369_v8, %v4127_v1  ;;  %v4154_v31 = vmul.f32 %v5373_v9, %v4153_v2  ;;  %vm4179_vm3 = vweird.f32 %v5375_v35 }
 0x961   : > { %v4094_v45 = vadd.f32 1e-05, %v4078_v19  ;;  %4328 = vst.msk [vmem:[%s7330_s24 + $0x4] sm:$0xf] %vm708_vm1, %v4311_v32  ;;  %v4264_v55 = vmul.f32 %v4131_v23, %v7240_v59  ;;  %v4151_v53 = vsel %vm4150_vm15, %v5371_v12, %v4147_v25  ;;  %v4174_v34 = vmul.f32 %v5375_v35, %v4173_v0  ;;  %vm4180_vm7 = vmor %vm4178_vm6, %vm4179_vm3 }
 0x962   : > { %v4266_v47 = vmul.f32 %v4151_v53, %v7243_v62  ;;  %v4155_v43 = vmul.f32 0.5, %v4154_v31 }
 0x963   : > { %5376 = vrsqrt.f32 %v4094_v45  ;;  %v4280_v7 = vmul.f32 %v7317_v44, %v4264_v55  ;;  %v4175_v21 = vmul.f32 0.5, %v4174_v34  ;;  %vm4188_vm8 = vweird.f32 %v4094_v45 }
 0x964   : > { %v4282_v20 = vmul.f32 %v7317_v44, %v4266_v47  ;;  %v4156_v27 = vsub.f32 1.5, %v4155_v43 }
 0x965   : > { %v4296_v5 = vadd.f32 %v7323_v50, %v4280_v7  ;;  %v4176_v46 = vsub.f32 1.5, %v4175_v21 }
 0x966   : > { %v4051_v28 = vpop.xlane.xlu2 %4050  ;;  %v4298_v59 = vadd.f32 %v7323_v50, %v4282_v20  ;;  %v4157_v40 = vmul.f32 %v5373_v9, %v4156_v27 }
 0x967   : > { %v4079_v62 = vmul.f32 %v4051_v28, %v6771_v39  ;;  %v4312_v22 = vpack.c.bf16 %v4296_v5, %v4296_v5  ;;  %v4177_v36 = vmul.f32 %v5375_v35, %v4176_v46 }
 0x968   : > { %v4314_v41 = vpack.c.bf16 %v4298_v59, %v4298_v59  ;;  %v4161_v57 = vsel %vm4160_vm5, %v5373_v9, %v4157_v40 }
 0x969   : > { %v5377_v51 = vpop.eup %5376  ;;  %v4095_v33 = vadd.f32 1e-05, %v4079_v62  ;;  %4329 = vst.msk [vmem:[%s7330_s24 + $0x8] sm:$0xf] %vm708_vm1, %v4312_v22  ;;  %v4267_v54 = vmul.f32 %v4161_v57, %v7255_v15  ;;  %v4181_v8 = vsel %vm4180_vm7, %v5375_v35, %v4177_v36 }
 0x96a   : > { %v4183_v12 = vmul.f32 %v5377_v51, %v4094_v45  ;;  %4331 = vst.msk [vmem:[%s7330_s24 + $0x10] sm:$0xf] %vm708_vm1, %v4314_v41  ;;  %v4269_v6 = vmul.f32 %v4181_v8, %v7258_v37  ;;  %vm4189_vm0 = vweird.f32 %v5377_v51 }
 0x96b   : > { %5378 = vrsqrt.f32 %v4095_v33  ;;  %v4283_v26 = vmul.f32 %v7317_v44, %v4267_v54  ;;  %vm4190_vm9 = vmor %vm4188_vm8, %vm4189_vm0  ;;  %vm4198_vm11 = vweird.f32 %v4095_v33 }
 0x96c   : > { %v4184_v58 = vmul.f32 %v5377_v51, %v4183_v12  ;;  %v4285_v30 = vmul.f32 %v7317_v44, %v4269_v6 }
 0x96d   : > { %v4299_v10 = vadd.f32 %v7323_v50, %v4283_v26 }
 0x96e   : > { %v4185_v56 = vmul.f32 0.5, %v4184_v58  ;;  %v4054_v61 = vpop.xlane.xlu0 %4053  ;;  %v4301_v15 = vadd.f32 %v7323_v50, %v4285_v30 }
 0x96f   : > { %v4080_v29 = vmul.f32 %v4054_v61, %v6771_v39  ;;  %v4315_v38 = vpack.c.bf16 %v4299_v10, %v4299_v10 }
 0x970   : > { %v4186_v63 = vsub.f32 1.5, %v4185_v56  ;;  %v4317_v48 = vpack.c.bf16 %v4301_v15, %v4301_v15 }
 0x971   : > { %v5379_v37 = vpop.eup %5378  ;;  %v4096_v14 = vadd.f32 1e-05, %v4080_v29  ;;  %4332 = vst.msk [vmem:[%s7330_s24 + $0x14] sm:$0xf] %vm708_vm1, %v4315_v38 }
 0x972   : > { %v4187_v49 = vmul.f32 %v5377_v51, %v4186_v63  ;;  %v4193_v9 = vmul.f32 %v5379_v37, %v4095_v33  ;;  %4334 = vst.msk [vmem:[%s7330_s24 + $0x1c] sm:$0xf] %vm708_vm1, %v4317_v48  ;;  %vm4199_vm10 = vweird.f32 %v5379_v37 }
 0x973   : > { %5380 = vrsqrt.f32 %v4096_v14  ;;  %vm4200_vm12 = vmor %vm4198_vm11, %vm4199_vm10  ;;  %vm4208_vm14 = vweird.f32 %v4096_v14 }
 0x974   : > { %v4191_v4 = vsel %vm4190_vm9, %v5377_v51, %v4187_v49  ;;  %v4194_v18 = vmul.f32 %v5379_v37, %v4193_v9 }
 0x975   : > { %v4270_v13 = vmul.f32 %v4191_v4, %v7270_v11 }
 0x976   : > { %v4195_v35 = vmul.f32 0.5, %v4194_v18  ;;  %v4057_v1 = vpop.xlane.xlu1 %4056 }
 0x977   : > { %v4286_v2 = vmul.f32 %v7317_v44, %v4270_v13  ;;  %v4081_v19 = vmul.f32 %v4057_v1, %v6771_v39 }
 0x978   : > { %v4196_v32 = vsub.f32 1.5, %v4195_v35 }
 0x979   : > { %v5381_v25 = vpop.eup %5380  ;;  %v4302_v0 = vadd.f32 %v7323_v50, %v4286_v2  ;;  %v4097_v23 = vadd.f32 1e-05, %v4081_v19 }
 0x97a   : > { %v4197_v31 = vmul.f32 %v5379_v37, %v4196_v32  ;;  %v4203_v45 = vmul.f32 %v5381_v25, %v4096_v14  ;;  %vm4209_vm13 = vweird.f32 %v5381_v25 }
 0x97b   : > { %v4318_v55 = vpack.c.bf16 %v4302_v0, %v4302_v0  ;;  %5382 = vrsqrt.f32 %v4097_v23  ;;  %vm4210_vm15 = vmor %vm4208_vm14, %vm4209_vm13  ;;  %vm4218_vm3 = vweird.f32 %v4097_v23 }
 0x97c   : > { %v4201_v11 = vsel %vm4200_vm12, %v5379_v37, %v4197_v31  ;;  %v4204_v53 = vmul.f32 %v5381_v25, %v4203_v45 }
 0x97d   : > { %4335 = vst.msk [vmem:[%s7330_s24 + $0x20] sm:$0xf] %vm708_vm1, %v4318_v55  ;;  %v4271_v34 = vmul.f32 %v4201_v11, %v7277_v3 }
 0x97e   : > { %v4205_v47 = vmul.f32 0.5, %v4204_v53  ;;  %v4060_v7 = vpop.xlane.xlu2 %4059 }
 0x97f   : > { %v4287_v43 = vmul.f32 %v7317_v44, %v4271_v34  ;;  %v4082_v20 = vmul.f32 %v4060_v7, %v6771_v39 }
 0x980   : > { %v4206_v21 = vsub.f32 1.5, %v4205_v47 }
 0x981   : > { %v5383_v27 = vpop.eup %5382  ;;  %v4303_v5 = vadd.f32 %v7323_v50, %v4287_v43  ;;  %v4098_v59 = vadd.f32 1e-05, %v4082_v20 }
 0x982   : > { %v4207_v46 = vmul.f32 %v5381_v25, %v4206_v21  ;;  %v4213_v28 = vmul.f32 %v5383_v27, %v4097_v23  ;;  %vm4219_vm2 = vweird.f32 %v5383_v27 }
 0x983   : > { %v4319_v40 = vpack.c.bf16 %v4303_v5, %v4303_v5  ;;  %5384 = vrsqrt.f32 %v4098_v59  ;;  %vm4220_vm4 = vmor %vm4218_vm3, %vm4219_vm2  ;;  %vm4228_vm6 = vweird.f32 %v4098_v59 }
 0x984   : > { %v4211_v62 = vsel %vm4210_vm15, %v5381_v25, %v4207_v46  ;;  %v4214_v3 = vmul.f32 %v5383_v27, %v4213_v28 }
 0x985   : > { %4336 = vst.msk [vmem:[%s7330_s24 + $0x24] sm:$0xf] %vm708_vm1, %v4319_v40  ;;  %v4272_v22 = vmul.f32 %v4211_v62, %v7284_v24 }
 0x986   : > { %v4215_v36 = vmul.f32 0.5, %v4214_v3  ;;  %v4063_v41 = vpop.xlane.xlu0 %4062 }
 0x987   : > { %v4288_v51 = vmul.f32 %v7317_v44, %v4272_v22  ;;  %v4083_v33 = vmul.f32 %v4063_v41, %v6771_v39 }
 0x988   : > { %v4216_v57 = vsub.f32 1.5, %v4215_v36 }
 0x989   : > { %v4304_v54 = vadd.f32 %v7323_v50, %v4288_v51  ;;  %v5385_v8 = vpop.eup %5384  ;;  %v4099_v6 = vadd.f32 1e-05, %v4083_v33 }
 0x98a   : > { %v4217_v12 = vmul.f32 %v5383_v27, %v4216_v57  ;;  %v4223_v58 = vmul.f32 %v5385_v8, %v4098_v59  ;;  %vm4229_vm5 = vweird.f32 %v5385_v8 }
 0x98b   : > { %v4320_v26 = vpack.c.bf16 %v4304_v54, %v4304_v54  ;;  %5386 = vrsqrt.f32 %v4099_v6  ;;  %vm4230_vm7 = vmor %vm4228_vm6, %vm4229_vm5  ;;  %vm4238_vm8 = vweird.f32 %v4099_v6 }
 0x98c   : > { %v4221_v30 = vsel %vm4220_vm4, %v5383_v27, %v4217_v12  ;;  %v4224_v10 = vmul.f32 %v5385_v8, %v4223_v58 }
 0x98d   : > { %4337 = vst.msk [vmem:[%s7330_s24 + $0x28] sm:$0xf] %vm708_vm1, %v4320_v26  ;;  %v4273_v24 = vmul.f32 %v4221_v30, %v7291_v42 }
 0x98e   : > { %v4225_v61 = vmul.f32 0.5, %v4224_v10 }
 0x98f   : > { %v4289_v56 = vmul.f32 %v7317_v44, %v4273_v24 }
 0x990   : > { %v4226_v29 = vsub.f32 1.5, %v4225_v61 }
 0x991   : > { %v4305_v15 = vadd.f32 %v7323_v50, %v4289_v56  ;;  %v5387_v38 = vpop.eup %5386 }
 0x992   : > { %v4227_v37 = vmul.f32 %v5385_v8, %v4226_v29  ;;  %v4233_v48 = vmul.f32 %v5387_v38, %v4099_v6  ;;  %vm4239_vm0 = vweird.f32 %v5387_v38 }
 0x993   : > { %v4321_v63 = vpack.c.bf16 %v4305_v15, %v4305_v15  ;;  %vm4240_vm9 = vmor %vm4238_vm8, %vm4239_vm0 }
 0x994   : > { %v4231_v14 = vsel %vm4230_vm7, %v5385_v8, %v4227_v37  ;;  %v4234_v49 = vmul.f32 %v5387_v38, %v4233_v48 }
 0x995   : > { %4338 = vst.msk [vmem:[%s7330_s24 + $0x2c] sm:$0xf] %vm708_vm1, %v4321_v63  ;;  %v4274_v42 = vmul.f32 %v4231_v14, %v7298_v60 }
 0x996   : > { %v4235_v9 = vmul.f32 0.5, %v4234_v49 }
 0x997   : > { %v4290_v4 = vmul.f32 %v7317_v44, %v4274_v42 }
 0x998   : > { %v4236_v18 = vsub.f32 1.5, %v4235_v9 }
 0x999   : > { %v4306_v13 = vadd.f32 %v7323_v50, %v4290_v4 }
 0x99a   : > { %v4237_v35 = vmul.f32 %v5387_v38, %v4236_v18 }
 0x99b   : > { %v4322_v1 = vpack.c.bf16 %v4306_v13, %v4306_v13 }
 0x99c   : > { %v4241_v2 = vsel %vm4240_vm9, %v5387_v38, %v4237_v35 }
 0x99d   : > { %4339 = vst.msk [vmem:[%s7330_s24 + $0x30] sm:$0xf] %vm708_vm1, %v4322_v1  ;;  %v4275_v19 = vmul.f32 %v4241_v2, %v7305_v16 }
 0x99f   : > { %v4291_v32 = vmul.f32 %v7317_v44, %v4275_v19 }
 0x9a1   : > { %v4307_v60 = vadd.f32 %v7323_v50, %v4291_v32 }
 0x9a3   : > { %v4323_v25 = vpack.c.bf16 %v4307_v60, %v4307_v60 }
 0x9a5   : > { %4340 = vst.msk [vmem:[%s7330_s24 + $0x34] sm:$0xf] %vm708_vm1, %v4323_v25 }
 0x9b5   : > { %v4066_v0 = vpop.xlane.xlu1 %4065 }
 0x9b6   : > { %v4084_v23 = vmul.f32 %v4066_v0, %v6771_v39 }
 0x9b8   : > { %v4100_v31 = vadd.f32 1e-05, %v4084_v23 }
 0x9ba   : > { %5388 = vrsqrt.f32 %v4100_v31  ;;  %vm4248_vm11 = vweird.f32 %v4100_v31 }
 0x9bd   : > { %v4069_v45 = vpop.xlane.xlu2 %4068 }
 0x9be   : > { %v4085_v55 = vmul.f32 %v4069_v45, %v6771_v39 }
 0x9c0   : > { %v5389_v11 = vpop.eup %5388  ;;  %v4101_v53 = vadd.f32 1e-05, %v4085_v55 }
 0x9c1   : > { %v4243_v34 = vmul.f32 %v5389_v11, %v4100_v31  ;;  %vm4249_vm10 = vweird.f32 %v5389_v11 }
 0x9c2   : > { %5390 = vrsqrt.f32 %v4101_v53  ;;  %vm4250_vm12 = vmor %vm4248_vm11, %vm4249_vm10  ;;  %vm4258_vm14 = vweird.f32 %v4101_v53 }
 0x9c3   : > { %v4244_v16 = vmul.f32 %v5389_v11, %v4243_v34 }
 0x9c5   : > { %v4245_v47 = vmul.f32 0.5, %v4244_v16 }
 0x9c7   : > { %v4246_v43 = vsub.f32 1.5, %v4245_v47 }
 0x9c8   : > { %v5391_v7 = vpop.eup %5390 }
 0x9c9   : > { %v4247_v21 = vmul.f32 %v5389_v11, %v4246_v43  ;;  %v4253_v20 = vmul.f32 %v5391_v7, %v4101_v53  ;;  %vm4259_vm13 = vweird.f32 %v5391_v7 }
 0x9ca   : > { %vm4260_vm15 = vmor %vm4258_vm14, %vm4259_vm13 }
 0x9cb   : > { %v4251_v27 = vsel %vm4250_vm12, %v5389_v11, %v4247_v21  ;;  %v4254_v5 = vmul.f32 %v5391_v7, %v4253_v20 }
 0x9cc   : > { %v4276_v46 = vmul.f32 %v4251_v27, %v7341_v17 }
 0x9cd   : > { %v4255_v39 = vmul.f32 0.5, %v4254_v5 }
 0x9ce   : > { %v4292_v28 = vmul.f32 %v7317_v44, %v4276_v46 }
 0x9cf   : > { %v4256_v59 = vsub.f32 1.5, %v4255_v39 }
 0x9d0   : > { %v4308_v40 = vadd.f32 %v7323_v50, %v4292_v28 }
 0x9d1   : > { %v4257_v62 = vmul.f32 %v5391_v7, %v4256_v59 }
 0x9d2   : > { %v4324_v3 = vpack.c.bf16 %v4308_v40, %v4308_v40 }
 0x9d3   : > { %v4261_v22 = vsel %vm4260_vm15, %v5391_v7, %v4257_v62 }
 0x9d4   : > { %4341 = vst.msk [vmem:[%s7330_s24 + $0x38] sm:$0xf] %vm708_vm1, %v4324_v3  ;;  %v4277_v36 = vmul.f32 %v4261_v22, %v7352_v52 }
 0x9d6   : > { %v4293_v51 = vmul.f32 %v7317_v44, %v4277_v36 }
 0x9d8   : > { %v4309_v17 = vadd.f32 %v7323_v50, %v4293_v51 }
 0x9da   : > { %v4325_v41 = vpack.c.bf16 %v4309_v17, %v4309_v17 }
 0x9dc   : > { %4342 = vst.msk [vmem:[%s7330_s24 + $0x3c] sm:$0xf] %vm708_vm1, %v4325_v41 }
 0x9dd PF: > { %s24_s15 = sadd.s32 1, %s5417_s15   ;;  %s7465_s29 = smov %s5413_s30 }
 0x9de   : > { %p21_p5 = scmp.ge.s32.totalorder %s24_s15, 4   ;;  %s7466_s30 = smov %s7468_s16 }
 0x9e0   :  { %23 = sbr.rel (!%p21_p5) target bundleno = 2 (0x2), region = 116 }

</bundles_post_ra>
